<compile_context>
chip_gen: v5e
topology: v5e:2x2
jax: 0.10.0
libtpu: 0.0.40
codegen_flags: <defaults>
</compile_context>

<pallas_src>
import functools

import numpy as np
import jax
import jax.numpy as jnp
from jax import lax
from jax.experimental import pallas as pl
from jax.experimental.pallas import tpu as pltpu


# ---------------------------------------------------------------------------
# Pallas kernel: per-lane-tile partial sums of the three CIASSD loss terms.
# ---------------------------------------------------------------------------
def _smooth_l1(d, sigma):
    ad = jnp.abs(d)
    th = 1.0 / (sigma * sigma)
    lt = (ad <= th).astype(jnp.float32)
    return lt * (0.5 * sigma * sigma) * d * d + (ad - 0.5 * th) * (1.0 - lt)


def _ciassd_tile_kernel(inv_ref, cls_ref, pos_ref, neg_ref, regp_ref, regt_ref,
                        dir_ref, out_ref, *, pos_cls_weight, sigma, encode_sin,
                        k_total, tile_k, mask_tail):
    f32 = jnp.float32
    inv = inv_ref[:, 0:1].astype(f32)                  # (M, 1) per-row 1/pos_norm

    # pos_equal_one / neg_equal_one are 0/1 -> labels == pos_mask (drop cared/labels).
    pos_mask = (pos_ref[...] > 0).astype(f32)          # (M, TK)
    neg_mask = (neg_ref[...] > 0).astype(f32)

    # Tail-tile lane validity mask (only emitted when K % tile_k != 0). OOB lanes of
    # the last block contain stale VMEM garbage (possibly NaN/Inf), so the per-element
    # loss terms are selected to exactly 0.0 there right before the reduction.
    if mask_tail:
        col = lax.broadcasted_iota(jnp.int32, pos_mask.shape, 1)
        valid = (pl.program_id(0) * tile_k + col) < k_total
        _mask = lambda t: jnp.where(valid, t, 0.0)
    else:
        _mask = lambda t: t

    # ---- weighted sigmoid binary cross-entropy (cls) ----
    x = cls_ref[...].astype(f32)
    cls_w = (pos_mask * pos_cls_weight + neg_mask) * inv
    bce = jnp.maximum(x, 0.0) - x * pos_mask + jnp.log(1.0 + jnp.exp(-jnp.abs(x)))
    cls_row = jnp.sum(_mask(bce * cls_w), axis=0, keepdims=True)        # (1, TK)

    # ---- weighted smooth-L1 with sin-difference angle encoding (reg) ----
    # Per-channel loop keeps f32 scratch to ~one (M, TK) slice at a time.
    reg_w = pos_mask * inv
    reg_acc = None
    rt_rot = None
    for c in range(7):
        rp = regp_ref[:, c, :].astype(f32)             # sublane-strided channel load
        rt = regt_ref[:, c, :].astype(f32)
        if c == 6:
            rt_rot = rt
        d = rp - rt
        if c == 6 and encode_sin:
            d = jnp.sin(d)                             # sin(a)cos(b)-cos(a)sin(b) == sin(a-b)
        term = _smooth_l1(d, sigma)
        reg_acc = term if reg_acc is None else reg_acc + term
    reg_row = jnp.sum(_mask(reg_acc * reg_w), axis=0, keepdims=True)    # (1, TK)

    # ---- 2-class softmax CE (dir) == softplus(other_logit - selected_logit) ----
    # TODO(synk): dir-bin target is derived from the encoded target angle channel
    # (matches the JAX reference); original OpenCOOD builds it from anchor+residual
    # yaw, which requires anchor boxes not present in the provided inputs.
    l0 = dir_ref[:, 0, :].astype(f32)
    l1 = dir_ref[:, 1, :].astype(f32)
    z = jnp.where(rt_rot > 0.0, l0 - l1, l1 - l0)
    dir_ce = jnp.maximum(z, 0.0) + jnp.log(1.0 + jnp.exp(-jnp.abs(z)))
    dir_row = jnp.sum(_mask(dir_ce * reg_w), axis=0, keepdims=True)     # (1, TK)

    # Lane-dense (1, 3, TK) output block; final lane reduction happens in JAX.
    out_ref[0, 0:1, :] = cls_row
    out_ref[0, 1:2, :] = reg_row
    out_ref[0, 2:3, :] = dir_row


# ---------------------------------------------------------------------------
# Generation-aware tiling + pallas_call wrapper
# ---------------------------------------------------------------------------
_TILE_CANDIDATES = (16384, 8192, 4096, 2048, 1024, 512, 256, 128)


def _vmem_params():
    """(per-tile-set VMEM budget, vmem_limit_bytes) — conservative unless we know
    the chip has 128 MiB VMEM (v4/v5/v6). v7x only has 64 MiB per TensorCore."""
    big = False
    try:
        kind = jax.devices()[0].device_kind.lower()
        big = any(t in kind for t in ("v4", "v5", "v6"))
    except Exception:
        pass
    if big:
        return 40 * 1024 * 1024, 96 * 1024 * 1024
    return 12 * 1024 * 1024, 48 * 1024 * 1024


def _pick_tile_k(K, M, itemsize, budget):
    """Largest lane tile (multiple of 128) under the VMEM budget with a small garbage
    tail; prefer >= 2 grid steps so the two megacore TensorCores both get work."""
    mp = ((M + 7) // 8) * 8
    # cls/pos/neg (M pad 8) + reg preds/targets (7->8 sublanes) + dir (2->8 sublanes)
    per_lane = itemsize * (3 * mp + 24 * M)
    feasible = []
    for c in _TILE_CANDIDATES:
        if c * per_lane > budget:
            continue
        nt = pl.cdiv(K, c)
        waste = nt * c - K
        if waste > max(K // 8, 128):
            continue
        feasible.append((c, nt))
    if not feasible:
        return _TILE_CANDIDATES[-1]
    multi = [c for c, nt in feasible if nt >= 2]
    return multi[0] if multi else feasible[0][0]


def _ciassd_sums_pallas(inv_rows, cls_p, pos2, neg2, reg_p, reg_t, dir_p,
                        pos_cls_weight, sigma, encode_sin):
    M, K = cls_p.shape
    itemsize = max(jnp.dtype(a.dtype).itemsize
                   for a in (cls_p, pos2, neg2, reg_p, reg_t, dir_p))
    budget, vmem_limit = _vmem_params()
    tile_k = _pick_tile_k(K, M, itemsize, budget)
    num_tiles = int(pl.cdiv(K, tile_k))
    mask_tail = (K % tile_k) != 0

    inv_arr = jnp.broadcast_to(inv_rows.astype(jnp.float32)[:, None], (M, 128))

    kernel = functools.partial(_ciassd_tile_kernel,
                               pos_cls_weight=float(pos_cls_weight),
                               sigma=float(sigma),
                               encode_sin=bool(encode_sin),
                               k_total=int(K),
                               tile_k=int(tile_k),
                               mask_tail=bool(mask_tail))

    out = pl.pallas_call(
        kernel,
        out_shape=jax.ShapeDtypeStruct((num_tiles, 3, tile_k), jnp.float32),
        grid=(num_tiles,),
        in_specs=[
            pl.BlockSpec((M, 128), lambda i: (0, 0)),             # 1/pos_norm per row
            pl.BlockSpec((M, tile_k), lambda i: (0, i)),          # cls preds
            pl.BlockSpec((M, tile_k), lambda i: (0, i)),          # pos_equal_one
            pl.BlockSpec((M, tile_k), lambda i: (0, i)),          # neg_equal_one
            pl.BlockSpec((M, 7, tile_k), lambda i: (0, 0, i)),    # reg preds
            pl.BlockSpec((M, 7, tile_k), lambda i: (0, 0, i)),    # reg targets
            pl.BlockSpec((M, 2, tile_k), lambda i: (0, 0, i)),    # dir logits
        ],
        out_specs=pl.BlockSpec((1, 3, tile_k), lambda i: (i, 0, 0)),
        compiler_params=pltpu.CompilerParams(
            dimension_semantics=("parallel",),
            vmem_limit_bytes=vmem_limit),
    )(inv_arr, cls_p, pos2, neg2, reg_p, reg_t, dir_p)

    sums = out.sum(axis=(0, 2))
    return sums[0], sums[1], sums[2]


# ---------------------------------------------------------------------------
# CiassdLoss wrappers (layout glue + scalar re-weighting)
# ---------------------------------------------------------------------------
def ciassd_loss_pallas(preds, labels, cfg, batch_size):
    B = int(batch_size)
    cls_nchw = preds['cls_preds']          # (B,   A, H, W)
    reg_nchw = preds['reg_preds']          # (B, 7*A, H, W)
    dir_nchw = preds['dir_preds']          # (B, 2*A, H, W)
    _, A, H, W = cls_nchw.shape
    K = H * W
    M = B * A

    # Predictions: FREE reshapes only (no transposes / extra HBM round trips).
    cls_p = cls_nchw.reshape(M, K)
    reg_p = reg_nchw.reshape(M, 7, K)
    dir_p = dir_nchw.reshape(M, 2, K)

    # Labels: a single transpose each into the prediction-aligned anchor-major layout.
    pos = labels['pos_equal_one']          # (B, H, W, A)
    neg = labels['neg_equal_one']
    tgt = labels['targets']                # (B, H, W, 7*A)
    pos2 = jnp.transpose(pos, (0, 3, 1, 2)).reshape(M, K)
    neg2 = jnp.transpose(neg, (0, 3, 1, 2)).reshape(M, K)
    tgt2 = jnp.transpose(tgt.reshape(B, H, W, A, 7), (0, 3, 4, 1, 2)).reshape(M, 7, K)

    # Per-sample positive-anchor normalizer, hoisted out of the kernel so the lane
    # axis can be tiled/pipelined.
    pos_cnt = jnp.sum((pos2 > 0).astype(jnp.float32).reshape(B, A * K), axis=1)
    inv_rows = jnp.repeat(1.0 / jnp.maximum(pos_cnt, 1.0), A)       # (M,)

    cls_s, reg_s, dir_s = _ciassd_sums_pallas(
        inv_rows, cls_p, pos2, neg2, reg_p, tgt2, dir_p,
        cfg['pos_cls_weight'], cfg['reg']['sigma'], cfg['encode_rad_error_by_sin'])

    return (cls_s * cfg['cls']['weight']
            + reg_s * cfg['reg']['weight']
            + dir_s * cfg['dir']['weight']) / B


def ciassd_loss_ref(preds, labels, cfg, batch_size):
    """Pure-JAX reference following the original PyTorch permute/view path."""
    B = int(batch_size)
    f32 = jnp.float32
    pcw = cfg['pos_cls_weight']
    sigma = cfg['reg']['sigma']

    cls = jnp.transpose(preds['cls_preds'], (0, 2, 3, 1)).reshape(B, -1).astype(f32)
    box = jnp.transpose(preds['reg_preds'], (0, 2, 3, 1)).reshape(B, -1, 7).astype(f32)
    dirp = jnp.transpose(preds['dir_preds'], (0, 2, 3, 1)).reshape(B, -1, 2).astype(f32)
    pos = labels['pos_equal_one'].reshape(B, -1).astype(f32)
    neg = labels['neg_equal_one'].reshape(B, -1).astype(f32)
    tgt = labels['targets'].reshape(B, -1, 7).astype(f32)

    pos_mask = (pos > 0).astype(f32)
    neg_mask = (neg > 0).astype(f32)
    cared = jnp.maximum(pos_mask, neg_mask)
    y = pos * cared
    pos_norm = jnp.maximum(jnp.sum(pos_mask, axis=1, keepdims=True), 1.0)

    cls_w = (pos_mask * pcw + neg_mask) / pos_norm
    bce = jnp.maximum(cls, 0.0) - cls * y + jnp.log(1.0 + jnp.exp(-jnp.abs(cls)))
    cls_sum = jnp.sum(bce * cls_w)

    reg_w = pos_mask / pos_norm
    diff = box - tgt
    if cfg['encode_rad_error_by_sin']:
        rp, rt = box[..., 6], tgt[..., 6]
        sind = jnp.sin(rp) * jnp.cos(rt) - jnp.cos(rp) * jnp.sin(rt)
        diff = jnp.concatenate([diff[..., :6], sind[..., None]], axis=-1)
    ad = jnp.abs(diff)
    th = 1.0 / (sigma * sigma)
    lt = (ad <= th).astype(f32)
    sl1 = lt * 0.5 * jnp.square(sigma * diff) + (ad - 0.5 * th) * (1.0 - lt)
    reg_sum = jnp.sum(sl1 * reg_w[..., None])

    l0, l1 = dirp[..., 0], dirp[..., 1]
    m = jnp.maximum(l0, l1)
    lse = m + jnp.log(jnp.exp(l0 - m) + jnp.exp(l1 - m))
    sel = jnp.where(tgt[..., 6] > 0.0, l1, l0)
    dir_sum = jnp.sum((lse - sel) * reg_w)

    return (cls_sum * cfg['cls']['weight']
            + reg_sum * cfg['reg']['weight']
            + dir_sum * cfg['dir']['weight']) / B


def kd_mse_loss(a, b):
    # Plain JAX: a standalone Pallas call on a few-hundred-KB reduction is
    # launch-overhead dominated and XLA fuses it for free.
    d = a.astype(jnp.float32) - b.astype(jnp.float32)
    return jnp.mean(d * d)


# ---------------------------------------------------------------------------
# HeterceptionReDetLoss forward
# ---------------------------------------------------------------------------
def heterception_redet_loss(output_dict, label_dict, args, use_pallas=True):
    record_len = np.asarray(output_dict['record_len'])
    cfg1 = args['shared_head_out']
    cfg2 = args['stage2']
    loss_fn = ciassd_loss_pallas if use_pallas else ciassd_loss_ref

    # stage-1 CIASSD loss: per-agent predictions, batch = sum(record_len)
    bs1 = int(record_len.sum())
    ciassd = loss_fn(output_dict['shared_head_out'], label_dict['stage1'], cfg1, bs1)

    if 'stage2_out' not in output_dict:
        return ciassd, {'loss': ciassd}

    # forward sets output_dict['batch_size'] = len(record_len) and pops record_len
    bs2 = int(len(record_len))
    # TODO(synk): for tiny K (launch-overhead dominated), the two CIASSD stages could be
    # fused into one pallas_call by concatenating along M when their static cfgs match.
    redet = loss_fn(output_dict['stage2_out'], label_dict['stage2'], cfg2, bs2)
    loss = redet + ciassd
    loss_dict = {'redet_loss': redet}

    if 'kd_items' in output_dict:
        kd = kd_mse_loss(output_dict['kd_items']['lidar_roi_features'],
                         output_dict['kd_items']['camera_roi_features']) * cfg2['kd']['weight']
        loss = loss + kd
        loss_dict['kd_loss'] = kd

    loss_dict['loss'] = loss
    # TODO(synk): loss_dict bookkeeping / logging() is host-side only and not kernelized.
    return loss, loss_dict


# ---------------------------------------------------------------------------
# Demo
# ---------------------------------------------------------------------------
if __name__ == "__main__":
    key = jax.random.PRNGKey(0)
    H, W, A = 16, 20, 2                 # BEV grid + anchors per location (K=320 -> 3 lane tiles, masked tail)
    record_len = np.array([2, 1], np.int32)
    B1 = int(record_len.sum())          # stage-1 (per-agent) batch = 3
    B2 = len(record_len)                # stage-2 batch = 2
    R, C, RH, RW = 8, 16, 8, 8          # ROI feature shape for KD

    ks = jax.random.split(key, 10)
    randn = lambda k, s: jax.random.normal(k, s, dtype=jnp.float32)

    def make_labels(k, B):
        k1, k2, k3 = jax.random.split(k, 3)
        pos = (jax.random.uniform(k1, (B, H, W, A)) > 0.9).astype(jnp.float32)
        neg = (jax.random.uniform(k2, (B, H, W, A)) > 0.2).astype(jnp.float32) * (1.0 - pos)
        tgt = randn(k3, (B, H, W, 7 * A))
        return {'pos_equal_one': pos, 'neg_equal_one': neg, 'targets': tgt}

    output_dict = {
        'record_len': record_len,
        'shared_head_out': {
            'cls_preds': randn(ks[0], (B1, A, H, W)),        # NCHW
            'reg_preds': randn(ks[1], (B1, 7 * A, H, W)),
            'dir_preds': randn(ks[2], (B1, 2 * A, H, W)),
        },
        'stage2_out': {
            'cls_preds': randn(ks[3], (B2, A, H, W)),
            'reg_preds': randn(ks[4], (B2, 7 * A, H, W)),
            'dir_preds': randn(ks[5], (B2, 2 * A, H, W)),
        },
        'kd_items': {
            'lidar_roi_features': randn(ks[6], (R, C, RH, RW)),
            'camera_roi_features': randn(ks[7], (R, C, RH, RW)),
        },
    }
    label_dict = {'stage1': make_labels(ks[8], B1),
                  'stage2': make_labels(ks[9], B2)}

    args = {
        'shared_head_out': {
            'pos_cls_weight': 2.0,
            'encode_rad_error_by_sin': True,
            'cls': {'weight': 1.0},
            'reg': {'sigma': 3.0, 'weight': 2.0},
            'dir': {'weight': 0.2},
        },
        'stage2': {
            'pos_cls_weight': 2.0,
            'encode_rad_error_by_sin': True,
            'cls': {'weight': 1.0},
            'reg': {'sigma': 3.0, 'weight': 2.0},
            'dir': {'weight': 0.2},
            'kd': {'weight': 0.1},
        },
    }

    loss, loss_dict = heterception_redet_loss(output_dict, label_dict, args,
                                              use_pallas=True)
    loss = jax.block_until_ready(loss)

    # Pure-JAX reference following the original PyTorch layout path.
    ref_loss, _ = heterception_redet_loss(output_dict, label_dict, args,
                                          use_pallas=False)
    ref_loss = jax.block_until_ready(ref_loss)
    np.testing.assert_allclose(float(loss), float(ref_loss), rtol=1e-3, atol=1e-3)
    np.testing.assert_allclose(float(loss_dict['redet_loss']),
                               float(ciassd_loss_ref(output_dict['stage2_out'],
                                                     label_dict['stage2'],
                                                     args['stage2'], B2)),
                               rtol=1e-3, atol=1e-3)

    print("KERNEL_OK")
</pallas_src>

<mosaic_0001>
module attributes {stable_mosaic.version = 11 : i64} {
  func.func @_ciassd_tile_kernel(%arg0: i32, %arg1: memref<6x128xf32, #tpu.memory_space<vmem>>, %arg2: memref<6x128xf32, #tpu.memory_space<vmem>>, %arg3: memref<6x128xf32, #tpu.memory_space<vmem>>, %arg4: memref<6x128xf32, #tpu.memory_space<vmem>>, %arg5: memref<6x7x128xf32, #tpu.memory_space<vmem>>, %arg6: memref<6x7x128xf32, #tpu.memory_space<vmem>>, %arg7: memref<6x2x128xf32, #tpu.memory_space<vmem>>, %arg8: memref<1x3x128xf32, #tpu.memory_space<vmem>>) attributes {dimension_semantics = [#tpu.dimension_semantics<parallel>], iteration_bounds = array<i64: 3>, scalar_prefetch = 0 : i64, scratch_operands = 0 : i64, tpu.core_type = #tpu.core_type<tc>, window_params = [{pipeline_mode = #tpu.pipeline_mode<synchronous>, transform_indices = @transform_0, window_bounds = array<i64: 6, 128>}, {transform_indices = @transform_1, window_bounds = array<i64: 6, 128>}, {transform_indices = @transform_2, window_bounds = array<i64: 6, 128>}, {transform_indices = @transform_3, window_bounds = array<i64: 6, 128>}, {transform_indices = @transform_4, window_bounds = array<i64: 6, 7, 128>}, {transform_indices = @transform_5, window_bounds = array<i64: 6, 7, 128>}, {transform_indices = @transform_6, window_bounds = array<i64: 6, 2, 128>}, {transform_indices = @transform_7, window_bounds = array<i64: 1, 3, 128>}]} {
    %c0 = arith.constant 0 : index
    %c0_0 = arith.constant 0 : index
    %0 = vector.load %arg1[%c0, %c0_0] : memref<6x128xf32, #tpu.memory_space<vmem>>, vector<6x1xf32>
    %c0_1 = arith.constant 0 : index
    %c0_2 = arith.constant 0 : index
    %1 = vector.load %arg3[%c0_1, %c0_2] : memref<6x128xf32, #tpu.memory_space<vmem>>, vector<6x128xf32>
    %cst = arith.constant 0.000000e+00 : f32
    %2 = vector.broadcast %cst : f32 to vector<6x128xf32>
    %3 = arith.cmpf ogt, %1, %2 : vector<6x128xf32>
    %4 = arith.extui %3 : vector<6x128xi1> to vector<6x128xi32>
    %5 = arith.sitofp %4 : vector<6x128xi32> to vector<6x128xf32>
    %c0_3 = arith.constant 0 : index
    %c0_4 = arith.constant 0 : index
    %6 = vector.load %arg4[%c0_3, %c0_4] : memref<6x128xf32, #tpu.memory_space<vmem>>, vector<6x128xf32>
    %cst_5 = arith.constant 0.000000e+00 : f32
    %7 = vector.broadcast %cst_5 : f32 to vector<6x128xf32>
    %8 = arith.cmpf ogt, %6, %7 : vector<6x128xf32>
    %9 = arith.extui %8 : vector<6x128xi1> to vector<6x128xi32>
    %10 = arith.sitofp %9 : vector<6x128xi32> to vector<6x128xf32>
    %11 = tpu.iota {dimensions = array<i32: 1>} : vector<6x128xi32>
    %c128_i32 = arith.constant 128 : i32
    %12 = arith.muli %arg0, %c128_i32 : i32
    %13 = vector.broadcast %12 : i32 to vector<6x128xi32>
    %14 = arith.addi %13, %11 : vector<6x128xi32>
    %c320_i32 = arith.constant 320 : i32
    %15 = vector.broadcast %c320_i32 : i32 to vector<6x128xi32>
    %16 = arith.cmpi slt, %14, %15 : vector<6x128xi32>
    %c0_6 = arith.constant 0 : index
    %c0_7 = arith.constant 0 : index
    %17 = vector.load %arg2[%c0_6, %c0_7] : memref<6x128xf32, #tpu.memory_space<vmem>>, vector<6x128xf32>
    %cst_8 = arith.constant 2.000000e+00 : f32
    %18 = vector.broadcast %cst_8 : f32 to vector<6x128xf32>
    %19 = arith.mulf %5, %18 : vector<6x128xf32>
    %20 = arith.addf %19, %10 : vector<6x128xf32>
    %21 = vector.broadcast %0 : vector<6x1xf32> to vector<6x128xf32>
    %22 = arith.mulf %20, %21 : vector<6x128xf32>
    %cst_9 = arith.constant 0.000000e+00 : f32
    %23 = vector.broadcast %cst_9 : f32 to vector<6x128xf32>
    %24 = arith.maximumf %17, %23 : vector<6x128xf32>
    %25 = arith.mulf %17, %5 : vector<6x128xf32>
    %26 = arith.subf %24, %25 : vector<6x128xf32>
    %27 = math.absf %17 : vector<6x128xf32>
    %cst_10 = arith.constant 0.000000e+00 : f32
    %28 = vector.broadcast %cst_10 : f32 to vector<6x128xf32>
    %29 = arith.subf %28, %27 : vector<6x128xf32>
    %30 = math.exp %29 : vector<6x128xf32>
    %cst_11 = arith.constant 1.000000e+00 : f32
    %31 = vector.broadcast %cst_11 : f32 to vector<6x128xf32>
    %32 = arith.addf %31, %30 : vector<6x128xf32>
    %33 = math.log %32 : vector<6x128xf32>
    %34 = arith.addf %26, %33 : vector<6x128xf32>
    %35 = arith.mulf %34, %22 : vector<6x128xf32>
    %cst_12 = arith.constant 0.000000e+00 : f32
    %36 = vector.broadcast %cst_12 : f32 to vector<6x128xf32>
    %37 = arith.select %16, %35, %36 : vector<6x128xi1>, vector<6x128xf32>
    %cst_13 = arith.constant dense<0.000000e+00> : vector<128xf32>
    %38 = vector.multi_reduction <add>, %37, %cst_13 [0] : vector<6x128xf32> to vector<128xf32>
    %39 = vector.shape_cast %38 : vector<128xf32> to vector<1x128xf32>
    %40 = vector.broadcast %0 : vector<6x1xf32> to vector<6x128xf32>
    %41 = arith.mulf %5, %40 : vector<6x128xf32>
    %c0_14 = arith.constant 0 : index
    %c0_15 = arith.constant 0 : index
    %c0_16 = arith.constant 0 : index
    %42 = vector.load %arg5[%c0_14, %c0_15, %c0_16] : memref<6x7x128xf32, #tpu.memory_space<vmem>>, vector<6x1x128xf32>
    %43 = vector.shape_cast %42 : vector<6x1x128xf32> to vector<6x128xf32>
    %c0_17 = arith.constant 0 : index
    %c0_18 = arith.constant 0 : index
    %c0_19 = arith.constant 0 : index
    %44 = vector.load %arg6[%c0_17, %c0_18, %c0_19] : memref<6x7x128xf32, #tpu.memory_space<vmem>>, vector<6x1x128xf32>
    %45 = vector.shape_cast %44 : vector<6x1x128xf32> to vector<6x128xf32>
    %46 = arith.subf %43, %45 : vector<6x128xf32>
    %47 = math.absf %46 : vector<6x128xf32>
    %cst_20 = arith.constant 0.111111112 : f32
    %48 = vector.broadcast %cst_20 : f32 to vector<6x128xf32>
    %49 = arith.cmpf ole, %47, %48 : vector<6x128xf32>
    %50 = arith.extui %49 : vector<6x128xi1> to vector<6x128xi32>
    %51 = arith.sitofp %50 : vector<6x128xi32> to vector<6x128xf32>
    %cst_21 = arith.constant 4.500000e+00 : f32
    %52 = vector.broadcast %cst_21 : f32 to vector<6x128xf32>
    %53 = arith.mulf %51, %52 : vector<6x128xf32>
    %54 = arith.mulf %53, %46 : vector<6x128xf32>
    %55 = arith.mulf %54, %46 : vector<6x128xf32>
    %cst_22 = arith.constant 0.055555556 : f32
    %56 = vector.broadcast %cst_22 : f32 to vector<6x128xf32>
    %57 = arith.subf %47, %56 : vector<6x128xf32>
    %cst_23 = arith.constant 1.000000e+00 : f32
    %58 = vector.broadcast %cst_23 : f32 to vector<6x128xf32>
    %59 = arith.subf %58, %51 : vector<6x128xf32>
    %60 = arith.mulf %57, %59 : vector<6x128xf32>
    %61 = arith.addf %55, %60 : vector<6x128xf32>
    %c0_24 = arith.constant 0 : index
    %c1 = arith.constant 1 : index
    %c0_25 = arith.constant 0 : index
    %62 = vector.load %arg5[%c0_24, %c1, %c0_25] : memref<6x7x128xf32, #tpu.memory_space<vmem>>, vector<6x1x128xf32>
    %63 = vector.shape_cast %62 : vector<6x1x128xf32> to vector<6x128xf32>
    %c0_26 = arith.constant 0 : index
    %c1_27 = arith.constant 1 : index
    %c0_28 = arith.constant 0 : index
    %64 = vector.load %arg6[%c0_26, %c1_27, %c0_28] : memref<6x7x128xf32, #tpu.memory_space<vmem>>, vector<6x1x128xf32>
    %65 = vector.shape_cast %64 : vector<6x1x128xf32> to vector<6x128xf32>
    %66 = arith.subf %63, %65 : vector<6x128xf32>
    %67 = math.absf %66 : vector<6x128xf32>
    %cst_29 = arith.constant 0.111111112 : f32
    %68 = vector.broadcast %cst_29 : f32 to vector<6x128xf32>
    %69 = arith.cmpf ole, %67, %68 : vector<6x128xf32>
    %70 = arith.extui %69 : vector<6x128xi1> to vector<6x128xi32>
    %71 = arith.sitofp %70 : vector<6x128xi32> to vector<6x128xf32>
    %cst_30 = arith.constant 4.500000e+00 : f32
    %72 = vector.broadcast %cst_30 : f32 to vector<6x128xf32>
    %73 = arith.mulf %71, %72 : vector<6x128xf32>
    %74 = arith.mulf %73, %66 : vector<6x128xf32>
    %75 = arith.mulf %74, %66 : vector<6x128xf32>
    %cst_31 = arith.constant 0.055555556 : f32
    %76 = vector.broadcast %cst_31 : f32 to vector<6x128xf32>
    %77 = arith.subf %67, %76 : vector<6x128xf32>
    %cst_32 = arith.constant 1.000000e+00 : f32
    %78 = vector.broadcast %cst_32 : f32 to vector<6x128xf32>
    %79 = arith.subf %78, %71 : vector<6x128xf32>
    %80 = arith.mulf %77, %79 : vector<6x128xf32>
    %81 = arith.addf %75, %80 : vector<6x128xf32>
    %82 = arith.addf %61, %81 : vector<6x128xf32>
    %c0_33 = arith.constant 0 : index
    %c2 = arith.constant 2 : index
    %c0_34 = arith.constant 0 : index
    %83 = vector.load %arg5[%c0_33, %c2, %c0_34] : memref<6x7x128xf32, #tpu.memory_space<vmem>>, vector<6x1x128xf32>
    %84 = vector.shape_cast %83 : vector<6x1x128xf32> to vector<6x128xf32>
    %c0_35 = arith.constant 0 : index
    %c2_36 = arith.constant 2 : index
    %c0_37 = arith.constant 0 : index
    %85 = vector.load %arg6[%c0_35, %c2_36, %c0_37] : memref<6x7x128xf32, #tpu.memory_space<vmem>>, vector<6x1x128xf32>
    %86 = vector.shape_cast %85 : vector<6x1x128xf32> to vector<6x128xf32>
    %87 = arith.subf %84, %86 : vector<6x128xf32>
    %88 = math.absf %87 : vector<6x128xf32>
    %cst_38 = arith.constant 0.111111112 : f32
    %89 = vector.broadcast %cst_38 : f32 to vector<6x128xf32>
    %90 = arith.cmpf ole, %88, %89 : vector<6x128xf32>
    %91 = arith.extui %90 : vector<6x128xi1> to vector<6x128xi32>
    %92 = arith.sitofp %91 : vector<6x128xi32> to vector<6x128xf32>
    %cst_39 = arith.constant 4.500000e+00 : f32
    %93 = vector.broadcast %cst_39 : f32 to vector<6x128xf32>
    %94 = arith.mulf %92, %93 : vector<6x128xf32>
    %95 = arith.mulf %94, %87 : vector<6x128xf32>
    %96 = arith.mulf %95, %87 : vector<6x128xf32>
    %cst_40 = arith.constant 0.055555556 : f32
    %97 = vector.broadcast %cst_40 : f32 to vector<6x128xf32>
    %98 = arith.subf %88, %97 : vector<6x128xf32>
    %cst_41 = arith.constant 1.000000e+00 : f32
    %99 = vector.broadcast %cst_41 : f32 to vector<6x128xf32>
    %100 = arith.subf %99, %92 : vector<6x128xf32>
    %101 = arith.mulf %98, %100 : vector<6x128xf32>
    %102 = arith.addf %96, %101 : vector<6x128xf32>
    %103 = arith.addf %82, %102 : vector<6x128xf32>
    %c0_42 = arith.constant 0 : index
    %c3 = arith.constant 3 : index
    %c0_43 = arith.constant 0 : index
    %104 = vector.load %arg5[%c0_42, %c3, %c0_43] : memref<6x7x128xf32, #tpu.memory_space<vmem>>, vector<6x1x128xf32>
    %105 = vector.shape_cast %104 : vector<6x1x128xf32> to vector<6x128xf32>
    %c0_44 = arith.constant 0 : index
    %c3_45 = arith.constant 3 : index
    %c0_46 = arith.constant 0 : index
    %106 = vector.load %arg6[%c0_44, %c3_45, %c0_46] : memref<6x7x128xf32, #tpu.memory_space<vmem>>, vector<6x1x128xf32>
    %107 = vector.shape_cast %106 : vector<6x1x128xf32> to vector<6x128xf32>
    %108 = arith.subf %105, %107 : vector<6x128xf32>
    %109 = math.absf %108 : vector<6x128xf32>
    %cst_47 = arith.constant 0.111111112 : f32
    %110 = vector.broadcast %cst_47 : f32 to vector<6x128xf32>
    %111 = arith.cmpf ole, %109, %110 : vector<6x128xf32>
    %112 = arith.extui %111 : vector<6x128xi1> to vector<6x128xi32>
    %113 = arith.sitofp %112 : vector<6x128xi32> to vector<6x128xf32>
    %cst_48 = arith.constant 4.500000e+00 : f32
    %114 = vector.broadcast %cst_48 : f32 to vector<6x128xf32>
    %115 = arith.mulf %113, %114 : vector<6x128xf32>
    %116 = arith.mulf %115, %108 : vector<6x128xf32>
    %117 = arith.mulf %116, %108 : vector<6x128xf32>
    %cst_49 = arith.constant 0.055555556 : f32
    %118 = vector.broadcast %cst_49 : f32 to vector<6x128xf32>
    %119 = arith.subf %109, %118 : vector<6x128xf32>
    %cst_50 = arith.constant 1.000000e+00 : f32
    %120 = vector.broadcast %cst_50 : f32 to vector<6x128xf32>
    %121 = arith.subf %120, %113 : vector<6x128xf32>
    %122 = arith.mulf %119, %121 : vector<6x128xf32>
    %123 = arith.addf %117, %122 : vector<6x128xf32>
    %124 = arith.addf %103, %123 : vector<6x128xf32>
    %c0_51 = arith.constant 0 : index
    %c4 = arith.constant 4 : index
    %c0_52 = arith.constant 0 : index
    %125 = vector.load %arg5[%c0_51, %c4, %c0_52] : memref<6x7x128xf32, #tpu.memory_space<vmem>>, vector<6x1x128xf32>
    %126 = vector.shape_cast %125 : vector<6x1x128xf32> to vector<6x128xf32>
    %c0_53 = arith.constant 0 : index
    %c4_54 = arith.constant 4 : index
    %c0_55 = arith.constant 0 : index
    %127 = vector.load %arg6[%c0_53, %c4_54, %c0_55] : memref<6x7x128xf32, #tpu.memory_space<vmem>>, vector<6x1x128xf32>
    %128 = vector.shape_cast %127 : vector<6x1x128xf32> to vector<6x128xf32>
    %129 = arith.subf %126, %128 : vector<6x128xf32>
    %130 = math.absf %129 : vector<6x128xf32>
    %cst_56 = arith.constant 0.111111112 : f32
    %131 = vector.broadcast %cst_56 : f32 to vector<6x128xf32>
    %132 = arith.cmpf ole, %130, %131 : vector<6x128xf32>
    %133 = arith.extui %132 : vector<6x128xi1> to vector<6x128xi32>
    %134 = arith.sitofp %133 : vector<6x128xi32> to vector<6x128xf32>
    %cst_57 = arith.constant 4.500000e+00 : f32
    %135 = vector.broadcast %cst_57 : f32 to vector<6x128xf32>
    %136 = arith.mulf %134, %135 : vector<6x128xf32>
    %137 = arith.mulf %136, %129 : vector<6x128xf32>
    %138 = arith.mulf %137, %129 : vector<6x128xf32>
    %cst_58 = arith.constant 0.055555556 : f32
    %139 = vector.broadcast %cst_58 : f32 to vector<6x128xf32>
    %140 = arith.subf %130, %139 : vector<6x128xf32>
    %cst_59 = arith.constant 1.000000e+00 : f32
    %141 = vector.broadcast %cst_59 : f32 to vector<6x128xf32>
    %142 = arith.subf %141, %134 : vector<6x128xf32>
    %143 = arith.mulf %140, %142 : vector<6x128xf32>
    %144 = arith.addf %138, %143 : vector<6x128xf32>
    %145 = arith.addf %124, %144 : vector<6x128xf32>
    %c0_60 = arith.constant 0 : index
    %c5 = arith.constant 5 : index
    %c0_61 = arith.constant 0 : index
    %146 = vector.load %arg5[%c0_60, %c5, %c0_61] : memref<6x7x128xf32, #tpu.memory_space<vmem>>, vector<6x1x128xf32>
    %147 = vector.shape_cast %146 : vector<6x1x128xf32> to vector<6x128xf32>
    %c0_62 = arith.constant 0 : index
    %c5_63 = arith.constant 5 : index
    %c0_64 = arith.constant 0 : index
    %148 = vector.load %arg6[%c0_62, %c5_63, %c0_64] : memref<6x7x128xf32, #tpu.memory_space<vmem>>, vector<6x1x128xf32>
    %149 = vector.shape_cast %148 : vector<6x1x128xf32> to vector<6x128xf32>
    %150 = arith.subf %147, %149 : vector<6x128xf32>
    %151 = math.absf %150 : vector<6x128xf32>
    %cst_65 = arith.constant 0.111111112 : f32
    %152 = vector.broadcast %cst_65 : f32 to vector<6x128xf32>
    %153 = arith.cmpf ole, %151, %152 : vector<6x128xf32>
    %154 = arith.extui %153 : vector<6x128xi1> to vector<6x128xi32>
    %155 = arith.sitofp %154 : vector<6x128xi32> to vector<6x128xf32>
    %cst_66 = arith.constant 4.500000e+00 : f32
    %156 = vector.broadcast %cst_66 : f32 to vector<6x128xf32>
    %157 = arith.mulf %155, %156 : vector<6x128xf32>
    %158 = arith.mulf %157, %150 : vector<6x128xf32>
    %159 = arith.mulf %158, %150 : vector<6x128xf32>
    %cst_67 = arith.constant 0.055555556 : f32
    %160 = vector.broadcast %cst_67 : f32 to vector<6x128xf32>
    %161 = arith.subf %151, %160 : vector<6x128xf32>
    %cst_68 = arith.constant 1.000000e+00 : f32
    %162 = vector.broadcast %cst_68 : f32 to vector<6x128xf32>
    %163 = arith.subf %162, %155 : vector<6x128xf32>
    %164 = arith.mulf %161, %163 : vector<6x128xf32>
    %165 = arith.addf %159, %164 : vector<6x128xf32>
    %166 = arith.addf %145, %165 : vector<6x128xf32>
    %c0_69 = arith.constant 0 : index
    %c6 = arith.constant 6 : index
    %c0_70 = arith.constant 0 : index
    %167 = vector.load %arg5[%c0_69, %c6, %c0_70] : memref<6x7x128xf32, #tpu.memory_space<vmem>>, vector<6x1x128xf32>
    %168 = vector.shape_cast %167 : vector<6x1x128xf32> to vector<6x128xf32>
    %c0_71 = arith.constant 0 : index
    %c6_72 = arith.constant 6 : index
    %c0_73 = arith.constant 0 : index
    %169 = vector.load %arg6[%c0_71, %c6_72, %c0_73] : memref<6x7x128xf32, #tpu.memory_space<vmem>>, vector<6x1x128xf32>
    %170 = vector.shape_cast %169 : vector<6x1x128xf32> to vector<6x128xf32>
    %171 = arith.subf %168, %170 : vector<6x128xf32>
    %172 = math.sin %171 : vector<6x128xf32>
    %173 = math.absf %172 : vector<6x128xf32>
    %cst_74 = arith.constant 0.111111112 : f32
    %174 = vector.broadcast %cst_74 : f32 to vector<6x128xf32>
    %175 = arith.cmpf ole, %173, %174 : vector<6x128xf32>
    %176 = arith.extui %175 : vector<6x128xi1> to vector<6x128xi32>
    %177 = arith.sitofp %176 : vector<6x128xi32> to vector<6x128xf32>
    %cst_75 = arith.constant 4.500000e+00 : f32
    %178 = vector.broadcast %cst_75 : f32 to vector<6x128xf32>
    %179 = arith.mulf %177, %178 : vector<6x128xf32>
    %180 = arith.mulf %179, %172 : vector<6x128xf32>
    %181 = arith.mulf %180, %172 : vector<6x128xf32>
    %cst_76 = arith.constant 0.055555556 : f32
    %182 = vector.broadcast %cst_76 : f32 to vector<6x128xf32>
    %183 = arith.subf %173, %182 : vector<6x128xf32>
    %cst_77 = arith.constant 1.000000e+00 : f32
    %184 = vector.broadcast %cst_77 : f32 to vector<6x128xf32>
    %185 = arith.subf %184, %177 : vector<6x128xf32>
    %186 = arith.mulf %183, %185 : vector<6x128xf32>
    %187 = arith.addf %181, %186 : vector<6x128xf32>
    %188 = arith.addf %166, %187 : vector<6x128xf32>
    %189 = arith.mulf %188, %41 : vector<6x128xf32>
    %cst_78 = arith.constant 0.000000e+00 : f32
    %190 = vector.broadcast %cst_78 : f32 to vector<6x128xf32>
    %191 = arith.select %16, %189, %190 : vector<6x128xi1>, vector<6x128xf32>
    %cst_79 = arith.constant dense<0.000000e+00> : vector<128xf32>
    %192 = vector.multi_reduction <add>, %191, %cst_79 [0] : vector<6x128xf32> to vector<128xf32>
    %193 = vector.shape_cast %192 : vector<128xf32> to vector<1x128xf32>
    %c0_80 = arith.constant 0 : index
    %c0_81 = arith.constant 0 : index
    %c0_82 = arith.constant 0 : index
    %194 = vector.load %arg7[%c0_80, %c0_81, %c0_82] : memref<6x2x128xf32, #tpu.memory_space<vmem>>, vector<6x1x128xf32>
    %195 = vector.shape_cast %194 : vector<6x1x128xf32> to vector<6x128xf32>
    %c0_83 = arith.constant 0 : index
    %c1_84 = arith.constant 1 : index
    %c0_85 = arith.constant 0 : index
    %196 = vector.load %arg7[%c0_83, %c1_84, %c0_85] : memref<6x2x128xf32, #tpu.memory_space<vmem>>, vector<6x1x128xf32>
    %197 = vector.shape_cast %196 : vector<6x1x128xf32> to vector<6x128xf32>
    %cst_86 = arith.constant 0.000000e+00 : f32
    %198 = vector.broadcast %cst_86 : f32 to vector<6x128xf32>
    %199 = arith.cmpf ogt, %170, %198 : vector<6x128xf32>
    %200 = arith.subf %195, %197 : vector<6x128xf32>
    %201 = arith.subf %197, %195 : vector<6x128xf32>
    %202 = arith.select %199, %200, %201 : vector<6x128xi1>, vector<6x128xf32>
    %cst_87 = arith.constant 0.000000e+00 : f32
    %203 = vector.broadcast %cst_87 : f32 to vector<6x128xf32>
    %204 = arith.maximumf %202, %203 : vector<6x128xf32>
    %205 = math.absf %202 : vector<6x128xf32>
    %cst_88 = arith.constant 0.000000e+00 : f32
    %206 = vector.broadcast %cst_88 : f32 to vector<6x128xf32>
    %207 = arith.subf %206, %205 : vector<6x128xf32>
    %208 = math.exp %207 : vector<6x128xf32>
    %cst_89 = arith.constant 1.000000e+00 : f32
    %209 = vector.broadcast %cst_89 : f32 to vector<6x128xf32>
    %210 = arith.addf %209, %208 : vector<6x128xf32>
    %211 = math.log %210 : vector<6x128xf32>
    %212 = arith.addf %204, %211 : vector<6x128xf32>
    %213 = arith.mulf %212, %41 : vector<6x128xf32>
    %cst_90 = arith.constant 0.000000e+00 : f32
    %214 = vector.broadcast %cst_90 : f32 to vector<6x128xf32>
    %215 = arith.select %16, %213, %214 : vector<6x128xi1>, vector<6x128xf32>
    %cst_91 = arith.constant dense<0.000000e+00> : vector<128xf32>
    %216 = vector.multi_reduction <add>, %215, %cst_91 [0] : vector<6x128xf32> to vector<128xf32>
    %217 = vector.shape_cast %216 : vector<128xf32> to vector<1x128xf32>
    %c0_92 = arith.constant 0 : index
    %c0_93 = arith.constant 0 : index
    %c0_94 = arith.constant 0 : index
    %218 = vector.load %arg8[%c0_92, %c0_93, %c0_94] : memref<1x3x128xf32, #tpu.memory_space<vmem>>, vector<1x1x128xf32>
    %219 = vector.shape_cast %218 : vector<1x1x128xf32> to vector<1x128xf32>
    %220 = vector.shape_cast %39 : vector<1x128xf32> to vector<1x1x128xf32>
    tpu.vector_store %arg8[%c0_92, %c0_93, %c0_94], %220 {strides = array<i32>} : memref<1x3x128xf32, #tpu.memory_space<vmem>>, vector<1x1x128xf32>,
    %c0_95 = arith.constant 0 : index
    %c1_96 = arith.constant 1 : index
    %c0_97 = arith.constant 0 : index
    %221 = vector.load %arg8[%c0_95, %c1_96, %c0_97] : memref<1x3x128xf32, #tpu.memory_space<vmem>>, vector<1x1x128xf32>
    %222 = vector.shape_cast %221 : vector<1x1x128xf32> to vector<1x128xf32>
    %223 = vector.shape_cast %193 : vector<1x128xf32> to vector<1x1x128xf32>
    tpu.vector_store %arg8[%c0_95, %c1_96, %c0_97], %223 {strides = array<i32>} : memref<1x3x128xf32, #tpu.memory_space<vmem>>, vector<1x1x128xf32>,
    %c0_98 = arith.constant 0 : index
    %c2_99 = arith.constant 2 : index
    %c0_100 = arith.constant 0 : index
    %224 = vector.load %arg8[%c0_98, %c2_99, %c0_100] : memref<1x3x128xf32, #tpu.memory_space<vmem>>, vector<1x1x128xf32>
    %225 = vector.shape_cast %224 : vector<1x1x128xf32> to vector<1x128xf32>
    %226 = vector.shape_cast %217 : vector<1x128xf32> to vector<1x1x128xf32>
    tpu.vector_store %arg8[%c0_98, %c2_99, %c0_100], %226 {strides = array<i32>} : memref<1x3x128xf32, #tpu.memory_space<vmem>>, vector<1x1x128xf32>,
    return
  }
  func.func @transform_0(%arg0: i32) -> (i32, i32) {
    %c0_i32 = arith.constant 0 : i32
    %c0_i32_0 = arith.constant 0 : i32
    %c0_i32_1 = arith.constant 0 : i32
    return %c0_i32, %c0_i32_0 : i32, i32
  }
  func.func @transform_1(%arg0: i32) -> (i32, i32) {
    %c0_i32 = arith.constant 0 : i32
    %c0_i32_0 = arith.constant 0 : i32
    return %c0_i32, %arg0 : i32, i32
  }
  func.func @transform_2(%arg0: i32) -> (i32, i32) {
    %c0_i32 = arith.constant 0 : i32
    %c0_i32_0 = arith.constant 0 : i32
    return %c0_i32, %arg0 : i32, i32
  }
  func.func @transform_3(%arg0: i32) -> (i32, i32) {
    %c0_i32 = arith.constant 0 : i32
    %c0_i32_0 = arith.constant 0 : i32
    return %c0_i32, %arg0 : i32, i32
  }
  func.func @transform_4(%arg0: i32) -> (i32, i32, i32) {
    %c0_i32 = arith.constant 0 : i32
    %c0_i32_0 = arith.constant 0 : i32
    %c0_i32_1 = arith.constant 0 : i32
    return %c0_i32, %c0_i32_0, %arg0 : i32, i32, i32
  }
  func.func @transform_5(%arg0: i32) -> (i32, i32, i32) {
    %c0_i32 = arith.constant 0 : i32
    %c0_i32_0 = arith.constant 0 : i32
    %c0_i32_1 = arith.constant 0 : i32
    return %c0_i32, %c0_i32_0, %arg0 : i32, i32, i32
  }
  func.func @transform_6(%arg0: i32) -> (i32, i32, i32) {
    %c0_i32 = arith.constant 0 : i32
    %c0_i32_0 = arith.constant 0 : i32
    %c0_i32_1 = arith.constant 0 : i32
    return %c0_i32, %c0_i32_0, %arg0 : i32, i32, i32
  }
  func.func @transform_7(%arg0: i32) -> (i32, i32, i32) {
    %c0_i32 = arith.constant 0 : i32
    %c0_i32_0 = arith.constant 0 : i32
    %c0_i32_1 = arith.constant 0 : i32
    return %arg0, %c0_i32, %c0_i32_0 : i32, i32, i32
  }
}

</mosaic_0001>

<bundles_post_ra>
// kernel: tpu_custom_call.1
= control target key start
LH: loop header
LB: loop body
LE: loop exit
PB: predicated region body
PF: predicated region fallthrough
CT: control target
= control target key end

     0   :  { %s5321_s0 = inlined_call_operand.hbm [shape: f32[6,128], index: 0, kind: input, shape index: {}]   ;;  %s5322_s1 = inlined_call_operand.hbm [shape: f32[6,320], index: 1, kind: input, shape index: {}]   ;;  %s5323_s2 = inlined_call_operand.hbm [shape: f32[6,320], index: 2, kind: input, shape index: {}]   ;;  %s5324_s3 = inlined_call_operand.hbm [shape: f32[6,320], index: 3, kind: input, shape index: {}]   ;;  %s5325_s4 = inlined_call_operand.hbm [shape: f32[6,7,320], index: 4, kind: input, shape index: {}]   ;;  %s5326_s5 = inlined_call_operand.hbm [shape: f32[6,7,320], index: 5, kind: input, shape index: {}]   ;;  %s5327_s6 = inlined_call_operand.hbm [shape: f32[6,2,320], index: 6, kind: input, shape index: {}]   ;;  %s5328_s7 = inlined_call_operand.hbm [shape: f32[3,3,128], index: 7, kind: output, shape index: {}]  }
   0x1   :  { %5387 = sst [smem:[#allocation38_spill]] %s5321_s0 }
   0x2   :  { %5388 = sst [smem:[#allocation39_spill]] %s5322_s1 }
   0x3   :  { %5389 = sst [smem:[#allocation40_spill]] %s5324_s3 }
   0x4   :  { %5390 = sst [smem:[#allocation41_spill]] %s5326_s5 }
   0x5   :  { %5391 = sst [smem:[#allocation42_spill]] %s5328_s7 }
   0x6   :  { %12 = vsyncpa [#allocation3], 0 }
   0x7   :  { %13 = vsyncpa [#allocation6], 0 }
   0x8   :  { %15 = vsyncpa [#allocation6 + $0x1], 0 }
   0x9   :  { %16 = vsyncpa [#allocation9], 0 }
   0xa   :  { %18 = vsyncpa [#allocation9 + $0x1], 0 }
   0xb   :  { %19 = vsyncpa [#allocation12], 0 }
   0xc   :  { %21 = vsyncpa [#allocation12 + $0x1], 0 }
   0xd   :  { %22 = vsyncpa [#allocation4], 0 }
   0xe   :  { %24 = vsyncpa [#allocation4 + $0x1], 0  ;;  %s3088_s24 = smov 0   ;;  %s3090_s25 = smov 0  }
   0xf   :  { %s3092_s26 = smov 0   ;;  %s3094_s27 = smov 0  }
  0x10 LB: > { %5392 = sst [smem:[#allocation20_spill]] %s3027_s26  ;;  %s3109_s28 = sadd.s32 1, %s3031_s27   ;;  %s3031_s27 = sphi %s3094_s27, %s5520_s27   ;;  %s3027_s26 = sphi %s3092_s26, %s5522_s26   ;;  %s3023_s25 = sphi %s3090_s25, %s5524_s25   ;;  %s3019_s24 = sphi %s3088_s24, %s5523_s24  }
  0x11   : > { %5393 = sst [smem:[#allocation21_spill]] %s3109_s28  ;;  %s58_s29 = sadd.s32 1, %s3027_s26 }
  0x12   : > { %s55_s30 = ssub.s32 %s3031_s27, %s3109_s28  ;;  %p65_p0 = scmp.ne.s32.totalorder %s3027_s26, %s3023_s25 }
  0x13   : > { %p56_p1 = scmp.eq.s32.totalorder %s55_s30, 0  ;;  %p66_p2 = scmp.eq.s32.totalorder %s3031_s27, 0 }
  0x14   : > { %p2658_p3 = scmp.lt.s32.totalorder %s3031_s27, 3  ;;  %s3125_s9 = sand.u32 1, %s3031_s27  }
  0x15   : > { %s3119_s8 = scalar_select %p56_p1, %s3027_s26, %s58_s29  }
  0x16   : > { %p67_p4 = por %p66_p2, %p65_p0  ;;  %s3128_s10 = sand.u32 1, %s3027_s26  }
  0x17   : > { %5394 = sst [smem:[#allocation22_spill]] %s3119_s8  ;;  %s3131_s11 = sshll.u32 %s3128_s10, 3 }
  0x18   : > { %s3134_s12 = sshll.u32 %s3031_s27, 3  ;;  %s5395_s1 = sld [smem:[#allocation39_spill]] }
  0x19   : > { %s267_s17 = scalar_lea.vmem [#allocation5], %s3131_s11  ;;  %p3143_p5 = pnand %p2658_p3, %p67_p4 }
  0x1a   : > { %s275_s18 = sshll.u32 %s267_s17, 4  ;;  %s2609_s21 = smul.u32 12, %s3128_s10  ;;  %s276_s18 = int_to_ptr.vmem [resolvable:$true] %s275_s18 }
  0x1b   : > { %s5332_s22 = scalar_lea.sflag [#allocation6], %s3125_s9  ;;  %p3152_p7 = pneg %p3143_p5 }
  0x1e   : > { %s271_s15 = scalar_lea.hbm %s5395_s1, %s3134_s12 }
  0x1f   : > { %s273_s16 = sshll.u32 %s271_s15, 4  ;;  %s2750_s15 = scalar_lea.hbm %s5395_s1, 24  ;;  %s274_s16 = int_to_ptr.hbm [resolvable:$true] %s273_s16 }
  0x20   : > { %s2743_s23 = sshra.s32 %s274_s16, 4  ;;  %s2744_s23 = int_to_ptr.hbm [resolvable:$true] %s2743_s23 }
  0x21   : > { %s2745_s29 = scalar_lea.hbm %s2744_s23, 8  ;;  %p2751_p10 = scmp.lt.s32.totalorder %s2744_s23, %s5395_s1 }
  0x22   : > { %p2746_p6 = scmp.ne.s32.totalorder %s2744_s23, %s2745_s29  ;;  %p2752_p11 = scmp.lt.s32.totalorder %s2750_s15, %s2745_s29 }
  0x24   : > { %p2748_p8 = pnand %p3152_p7, %p2746_p6  ;;  %p2753_p12 = por %p2752_p11, %p2751_p10 }
  0x26   : > { %p2749_p9 = pneg %p2748_p8 }
  0x28   : > { %p2754_p13 = pnand %p2753_p12, %p2749_p9 }
  0x2a   : > { %2757 = shalt.err (!%p2754_p13)
}
  0x2b   : > { %2637 = dma.hbm_to_vmem [thread:$0]  (!%p3143_p5), %s274_s16, 128, %s276_s18, %s5332_s22  }
  0x2c   : > { %s5398_s8 = smul.u32 48, %s3128_s10  ;;  %s366_s20 = scalar_lea.vmem [#allocation13], %s2609_s21 }
  0x2d   : > { %s373_s23 = sshll.u32 %s366_s20, 4  ;;  %s5399_s3 = sld [smem:[#allocation40_spill]]  ;;  %s3172_s23 = int_to_ptr.vmem [resolvable:$true] %s373_s23 }
  0x2e   : > { %s324_s13 = scalar_lea.vmem [#allocation10], %s5398_s8  ;;  %s305_s28 = scalar_lea.vmem [#allocation8], %s3131_s11 }
  0x2f   : > { %s331_s14 = sshll.u32 %s324_s13, 4  ;;  %s313_s7 = sshll.u32 %s305_s28, 4  ;;  %s3170_s14 = int_to_ptr.vmem [resolvable:$true] %s331_s14  ;;  %s314_s7 = int_to_ptr.vmem [resolvable:$true] %s313_s7 }
  0x30   : > { %s5334_s16 = scalar_lea.sflag [#allocation9], %s3125_s9 }
  0x33   : > { %s309_s17 = scalar_lea.hbm %s5399_s3, %s3134_s12  ;;  %s2780_s20 = scalar_lea.hbm %s5399_s3, 24 }
  0x34   : > { %s311_s1 = sshll.u32 %s309_s17, 4  ;;  %s312_s1 = int_to_ptr.hbm [resolvable:$true] %s311_s1 }
  0x35   : > { %s2773_s18 = sshra.s32 %s312_s1, 4  ;;  %s2774_s18 = int_to_ptr.hbm [resolvable:$true] %s2773_s18 }
  0x36   : > { %s2775_s8 = scalar_lea.hbm %s2774_s18, 8  ;;  %p2781_p4 = scmp.lt.s32.totalorder %s2774_s18, %s5399_s3 }
  0x37   : > { %p2776_p1 = scmp.ne.s32.totalorder %s2774_s18, %s2775_s8  ;;  %p2782_p6 = scmp.lt.s32.totalorder %s2780_s20, %s2775_s8 }
  0x39   : > { %p2778_p2 = pnand %p2776_p1, %p3152_p7  ;;  %p2783_p8 = por %p2782_p6, %p2781_p4 }
  0x3b   : > { %p2779_p3 = pneg %p2778_p2 }
  0x3d   : > { %p2784_p9 = pnand %p2783_p8, %p2779_p3 }
  0x3f   : > { %2787 = shalt.err (!%p2784_p9)
}
  0x40   : > { %2643 = dma.hbm_to_vmem [thread:$0]  (!%p3143_p5), %s312_s1, 128, %s314_s7, %s5334_s16  }
  0x41   : > { %s5400_s5 = sld [smem:[#allocation41_spill]]  ;;  %s5401_s21 = smul.u32 48, %s3128_s10 }
  0x42   : > { %s5333_s13 = scalar_lea.sflag [#allocation12], %s3125_s9 }
  0x43   : > { %s345_s22 = scalar_lea.vmem [#allocation11], %s5401_s21 }
  0x44   : > { %s352_s18 = sshll.u32 %s345_s22, 4  ;;  %s353_s18 = int_to_ptr.vmem [resolvable:$true] %s352_s18 }
  0x47   : > { %s349_s17 = scalar_lea.hbm %s5400_s5, %s3134_s12  ;;  %s2810_s7 = scalar_lea.hbm %s5400_s5, 144 }
  0x48   : > { %s350_s8 = sshll.u32 %s349_s17, 4  ;;  %s351_s8 = int_to_ptr.hbm [resolvable:$true] %s350_s8 }
  0x49   : > { %s2803_s20 = sshra.s32 %s351_s8, 4  ;;  %s2804_s20 = int_to_ptr.hbm [resolvable:$true] %s2803_s20 }
  0x4a   : > { %s2805_s29 = scalar_lea.hbm %s2804_s20, 48  ;;  %p2811_p13 = scmp.lt.s32.totalorder %s2804_s20, %s5400_s5 }
  0x4b   : > { %p2806_p10 = scmp.ne.s32.totalorder %s2804_s20, %s2805_s29  ;;  %p2812_p1 = scmp.lt.s32.totalorder %s2810_s7, %s2805_s29 }
  0x4d   : > { %p2808_p11 = pnand %p2806_p10, %p3152_p7  ;;  %p2813_p2 = por %p2812_p1, %p2811_p13 }
  0x4f   : > { %p2809_p12 = pneg %p2808_p11 }
  0x51   : > { %p2814_p3 = pnand %p2813_p2, %p2809_p12 }
  0x53   : > { %2817 = shalt.err (!%p2814_p3)
}
  0x54   : > { %s5335_s10 = smov 384   ;;  %s5336_s3 = smov 128  }
  0x55   : > { %s5337_s17 = smov 8   ;;  %s3215_s21 = sadd.s32 4294967295, %s3031_s27  }
  0x56   : > { %2649 = dma.hbm_to_vmem [thread:$0]  (!%p3143_p5), %s351_s8, 768, %s353_s18, %s5333_s13, %s5335_s10, %s5336_s3, %s5337_s17  }
  0x57   : > { %s2479_s22 = sadd.s32 4294967294, %s3031_s27   ;;  %p71_p4 = scmp.ne.s32.totalorder %s3023_s25, %s3019_s24 }
  0x58   : > { %p5339_p6 = scmp.eq.s32.totalorder %s3215_s21, 0  ;;  %p225_p8 = scmp.eq.s32.totalorder %s3215_s21, 2 }
  0x59   : > { %p231_p9 = scmp.eq.s32.totalorder %s2479_s22, 2  ;;  %p2480_p10 = scmp.ge.s32.totalorder %s3031_s27, 1 }
  0x5a   : > { %p3225_p11 = por %p5339_p6, %p71_p4  ;;  %p3232_p12 = por %p225_p8, %p65_p0 }
  0x5b   : > { %p3236_p13 = por %p231_p9, %p71_p4  ;;  %p238_p1 = scmp.lt.s32.totalorder %s3031_s27, 4 }
  0x5c   : > { %s5405_s0 = sld [smem:[#allocation38_spill]]  ;;  %s3036_s15 = smov [#allocation2]  }
  0x5d   : > { %p3244_p2 = pnand %p2480_p10, %p238_p1  ;;  %s252_s22 = sshll.u32 %s3036_s15, 4  ;;  %s253_s22 = int_to_ptr.vmem [resolvable:$true] %s252_s22 }
  0x5e   : > { %s290_s10 = scalar_lea.hbm %s5323_s2, %s3134_s12  ;;  %s286_s1 = scalar_lea.vmem [#allocation7], %s3131_s11 }
  0x5f   : > { %p2630_p0 = pneg %p3244_p2  ;;  %s292_s29 = sshll.u32 %s290_s10, 4  ;;  %s293_s29 = int_to_ptr.hbm [resolvable:$true] %s292_s29 }
  0x60   : > { %s294_s3 = sshll.u32 %s286_s1, 4  ;;  %s2863_s17 = sshra.s32 %s293_s29, 4  ;;  %s295_s3 = int_to_ptr.vmem [resolvable:$true] %s294_s3  ;;  %s2864_s17 = int_to_ptr.hbm [resolvable:$true] %s2863_s17 }
  0x61   : > { %p2631_p3 = pnand %p2630_p0, %p5339_p6  ;;  %s2870_s16 = scalar_lea.hbm %s5323_s2, 24 }
  0x62   : > { %s250_s7 = sshll.u32 %s5405_s0, 4  ;;  %s2865_s0 = scalar_lea.hbm %s2864_s17, 8  ;;  %s251_s7 = int_to_ptr.hbm [resolvable:$true] %s250_s7 }
  0x63   : > { %2633 = dma.hbm_to_vmem [thread:$0]  (!%p2631_p3), %s251_s7, 128, %s253_s22, [#allocation3]  }
  0x64   : > { %p2866_p4 = scmp.ne.s32.totalorder %s2864_s17, %s2865_s0  ;;  %p2871_p10 = scmp.lt.s32.totalorder %s2864_s17, %s5323_s2 }
  0x65   : > { %p2872_p1 = scmp.lt.s32.totalorder %s2870_s16, %s2865_s0 }
  0x66   : > { %p2868_p8 = pnand %p2866_p4, %p3152_p7 }
  0x67   : > { %p2873_p0 = por %p2872_p1, %p2871_p10 }
  0x68   : > { %p2869_p9 = pneg %p2868_p8 }
  0x6a   : > { %p2874_p6 = pnand %p2873_p0, %p2869_p9 }
  0x6c   : > { %2877 = shalt.err (!%p2874_p6)
}
  0x6d   : > { %s5407_s11 = scalar_lea.sflag [#allocation6], %s3125_s9  ;;  %s328_s5 = scalar_lea.hbm %s5325_s4, %s3134_s12 }
  0x6e   : > { %2640 = dma.hbm_to_vmem [thread:$0]  (!%p3143_p5), %s293_s29, 128, %s295_s3, %s5407_s11  }
  0x6f   : > { %s2491_s22 = sshll.u32 %s3031_s27, 1  ;;  %s329_s1 = sshll.u32 %s328_s5, 4  ;;  %s330_s1 = int_to_ptr.hbm [resolvable:$true] %s329_s1 }
  0x70   : > { %s370_s0 = scalar_lea.hbm %s5327_s6, %s2491_s22  ;;  %s2893_s16 = sshra.s32 %s330_s1, 4  ;;  %s2894_s16 = int_to_ptr.hbm [resolvable:$true] %s2893_s16 }
  0x71   : > { %s371_s15 = sshll.u32 %s370_s0, 4  ;;  %s2895_s13 = scalar_lea.hbm %s2894_s16, 48  ;;  %s372_s15 = int_to_ptr.hbm [resolvable:$true] %s371_s15 }
  0x72   : > { %p2896_p6 = scmp.ne.s32.totalorder %s2894_s16, %s2895_s13  ;;  %s2900_s11 = scalar_lea.hbm %s5325_s4, 144 }
  0x73   : > { %p2901_p8 = scmp.lt.s32.totalorder %s2894_s16, %s5325_s4  ;;  %p2902_p9 = scmp.lt.s32.totalorder %s2900_s11, %s2895_s13 }
  0x74   : > { %p2898_p3 = pnand %p2896_p6, %p3152_p7 }
  0x75   : > { %p2903_p10 = por %p2902_p9, %p2901_p8 }
  0x76   : > { %p2899_p4 = pneg %p2898_p3 }
  0x78   : > { %p2904_p1 = pnand %p2903_p10, %p2899_p4 }
  0x7a   : > { %2907 = shalt.err (!%p2904_p1)
}
  0x7b   : > { %s5408_s7 = smov 8   ;;  %s5409_s5 = smov 128  }
  0x7c   : > { %s5410_s22 = smov 384   ;;  %s5411_s26 = scalar_lea.sflag [#allocation9], %s3125_s9 }
  0x7d   : > { %2646 = dma.hbm_to_vmem [thread:$0]  (!%p3143_p5), %s330_s1, 768, %s3170_s14, %s5411_s26, %s5410_s22, %s5409_s5, %s5408_s7  }
  0x7e   : > { %s2923_s17 = sshra.s32 %s372_s15, 4  ;;  %s2930_s3 = scalar_lea.hbm %s5327_s6, 36  ;;  %s2924_s17 = int_to_ptr.hbm [resolvable:$true] %s2923_s17 }
  0x7f   : > { %s2925_s0 = scalar_lea.hbm %s2924_s17, 12  ;;  %p2931_p4 = scmp.lt.s32.totalorder %s2924_s17, %s5327_s6 }
  0x80   : > { %p2926_p0 = scmp.ne.s32.totalorder %s2924_s17, %s2925_s0  ;;  %p2932_p8 = scmp.lt.s32.totalorder %s2930_s3, %s2925_s0 }
  0x82   : > { %p2928_p6 = pnand %p2926_p0, %p3152_p7  ;;  %p2933_p9 = por %p2932_p8, %p2931_p4 }
  0x84   : > { %p2929_p3 = pneg %p2928_p6 }
  0x86   : > { %p2934_p10 = pnand %p2933_p9, %p2929_p3 }
  0x88   : > { %2937 = shalt.err (!%p2934_p10)
}
  0x89   : > { %s3037_s14 = smov 96   ;;  %s3038_s1 = smov 32  }
  0x8a   : > { %s3039_s30 = smov 2   ;;  %s5412_s12 = scalar_lea.sflag [#allocation12], %s3125_s9 }
  0x8b   : > { %2652 = dma.hbm_to_vmem [thread:$0]  (!%p3143_p5), %s372_s15, 192, %s3172_s23, %s5412_s12, %s3037_s14, %s3038_s1, %s3039_s30  }
  0x8c   : > { %385 = sbr.rel (%p3244_p2) target bundleno = 662 (0x296), region = 48 }
  0x91   : > { %p5413_p7 = scmp.eq.s32.totalorder %s3215_s21, 0 }
  0x93   : > { %2998 = dma.done.wait (%p5413_p7), [#allocation3], 128   ;;  %p5414_p1 = pmov %p5413_p7 }
  0x94   : > { %s392_s10 = sand.u32 1, %s3215_s21   ;;  %s3314_s7 = sand.u32 1, %s3023_s25  }
  0x95   : > { %3000 = vsyncadd (%p5414_p1), [#allocation3], 4294967168  ;;  %s3317_s5 = sshll.u32 %s3314_s7, 3  ;;  %s393_s9 = scalar_lea.sflag [#allocation6], %s392_s10 }
  0x96   : > { %s396_s19 = scalar_lea.vmem [#allocation5], %s3317_s5 }
  0x97   : > { %3002 = dma.done.wait (%p3225_p11), %s393_s9, 256  }
  0x98   : > { %3004 = vsyncadd (%p3225_p11), %s393_s9, 4294967040  ;;  %s406_s23 = scalar_lea.vmem [#allocation7], %s3317_s5  ;;  %s413_s28 = scalar_lea.sflag [#allocation9], %s392_s10 }
  0x99   : > { %s416_s15 = scalar_lea.vmem [#allocation8], %s3317_s5 }
  0x9a   : > { %3006 = dma.done.wait (%p3225_p11), %s413_s28, 896  }
  0x9b   : > { %3008 = vsyncadd (%p3225_p11), %s413_s28, 4294966400  ;;  %s2610_s22 = smul.u32 48, %s3314_s7  ;;  %s433_s17 = scalar_lea.sflag [#allocation12], %s392_s10 }
  0x9d   : > { %s3331_s26 = scalar_lea.vmem [#allocation10], %s2610_s22  ;;  %s3333_s0 = scalar_lea.vmem [#allocation11], %s2610_s22 }
  0x9e   : > { %3010 = dma.done.wait (%p3225_p11), %s433_s17, 960  }
  0x9f   : > { %3012 = vsyncadd (%p3225_p11), %s433_s17, 4294966336  ;;  %v5340_v0 = vmov 0   ;;  %v503_v1 = vld [vmem:[#allocation2] sm:$0x3f]  ;;  %v3340_v2 = vld [vmem:[%s396_s19] sm:$0x3f] }
  0xa0   : > { %2708 = vset.pattern.permute.xlu0 %v5340_v0  ;;  %v530_v3 = vand.u32 2147483647, %v3340_v2  ;;  %v549_v5 = vld [vmem:[%s3331_s26] sm:$0x1]  ;;  %v550_v6 = vld [vmem:[%s3331_s26 + $0x8] sm:$0x1] }
  0xa1   : > { %523 = vperm.xlu0 %2708, %v503_v1   ;;  %v555_v7 = vld [vmem:[%s3333_s0] sm:$0x1]  ;;  %v551_v8 = vld [vmem:[%s3331_s26 + $0x10] sm:$0x1]  ;;  %v556_v9 = vld [vmem:[%s3333_s0 + $0x8] sm:$0x1] }
  0xa2   : > { %v531_v4 = vsub.f32 0.0, %v530_v3  ;;  %v557_v10 = vld [vmem:[%s3333_s0 + $0x10] sm:$0x1]  ;;  %v552_v11 = vld [vmem:[%s3331_s26 + $0x18] sm:$0x1]  ;;  %v3355_v18 = vsub.f32 %v549_v5, %v555_v7  ;;  %v3357_v19 = vsub.f32 %v550_v6, %v556_v9  ;;  %v5343_v33 = vmov 0.0  }
  0xa3   : > { %v553_v12 = vld [vmem:[%s3331_s26 + $0x20] sm:$0x1]  ;;  %v558_v14 = vld [vmem:[%s3333_s0 + $0x18] sm:$0x1]  ;;  %v554_v16 = vld [vmem:[%s3331_s26 + $0x28] sm:$0x1]  ;;  %v3359_v20 = vsub.f32 %v551_v8, %v557_v10  ;;  %v512_v10 = vlaneseq }
  0xa4   : > { %v532_v13 = vmul.f32 1.442695, %v531_v4  ;;  %v559_v15 = vld [vmem:[%s3333_s0 + $0x20] sm:$0x1]  ;;  %v560_v17 = vld [vmem:[%s3333_s0 + $0x28] sm:$0x1]  ;;  %v3361_v21 = vsub.f32 %v552_v11, %v558_v14 }
  0xa5   : > { %v3363_v22 = vsub.f32 %v553_v12, %v559_v15  ;;  %v3365_v23 = vsub.f32 %v554_v16, %v560_v17  ;;  %v567_v24 = vand.u32 2147483647, %v3355_v18  ;;  %v568_v25 = vand.u32 2147483647, %v3357_v19  ;;  %v1083_v31 = vld [vmem:[%s3331_s26 + $0x6] sm:$0x1] }
  0xa6   : > { %2709 = vpow2.f32 %v532_v13  ;;  %v569_v26 = vand.u32 2147483647, %v3359_v20  ;;  %v570_v27 = vand.u32 2147483647, %v3361_v21  ;;  %v1089_v32 = vld [vmem:[%s3333_s0 + $0x6] sm:$0x1] }
  0xa7   : > { %v571_v28 = vand.u32 2147483647, %v3363_v22  ;;  %v572_v29 = vand.u32 2147483647, %v3365_v23  ;;  %vm573_vm0 = vcmp.le.f32.partialorder %v567_v24, 0.11111111  ;;  %v3407_v46 = vsub.f32 %v1083_v31, %v1089_v32 }
  0xa8   : > { %vm574_vm1 = vcmp.le.f32.partialorder %v568_v25, 0.11111111  ;;  %vm575_vm2 = vcmp.le.f32.partialorder %v569_v26, 0.11111111  ;;  %vm576_vm3 = vcmp.le.f32.partialorder %v570_v27, 0.11111111 }
  0xa9   : > { %vm577_vm4 = vcmp.le.f32.partialorder %v571_v28, 0.11111111  ;;  %vm578_vm5 = vcmp.le.f32.partialorder %v572_v29, 0.11111111  ;;  %v3386_v34 = vsel %vm573_vm0, 1.0, %v5343_v33  ;;  %v3389_v35 = vsel %vm574_vm1, 1.0, %v5343_v33 }
  0xaa   : > { %v3392_v36 = vsel %vm575_vm2, 1.0, %v5343_v33  ;;  %v504_v37 = vld [vmem:[%s406_s23] sm:$0x3f]  ;;  %v1084_v39 = vld [vmem:[%s3331_s26 + $0xe] sm:$0x1]  ;;  %v3400_v42 = vsel %vm576_vm3, 1.0, %v5343_v33 }
  0xab   : > { %v1085_v40 = vld [vmem:[%s3331_s26 + $0x16] sm:$0x1]  ;;  %v1086_v41 = vld [vmem:[%s3331_s26 + $0x1e] sm:$0x1]  ;;  %v3403_v43 = vsel %vm577_vm4, 1.0, %v5343_v33  ;;  %5415 = vst [vmem:[#allocation23_spill] sm:$0xff] %v3407_v46 }
  0xac   : > { %v2710_v30 = vpop.eup %2709  ;;  %v1090_v44 = vld [vmem:[%s3333_s0 + $0xe] sm:$0x1]  ;;  %v1091_v45 = vld [vmem:[%s3333_s0 + $0x16] sm:$0x1]  ;;  %v3410_v47 = vsel %vm578_vm5, 1.0, %v5343_v33  ;;  %v591_v48 = vmul.f32 4.5, %v3386_v34 }
  0xad   : > { %v534_v38 = vadd.f32 1.0, %v2710_v30  ;;  %v592_v49 = vmul.f32 4.5, %v3389_v35  ;;  %v593_v50 = vmul.f32 4.5, %v3392_v36  ;;  %v1087_v51 = vld [vmem:[%s3331_s26 + $0x26] sm:$0x1]  ;;  %vm505_vm6 = vcmp.gt.f32.partialorder %v504_v37, 0.0 }
  0xae   : > { %v1092_v52 = vld [vmem:[%s3333_s0 + $0x1e] sm:$0x1]  ;;  %v1088_v53 = vld [vmem:[%s3331_s26 + $0x2e] sm:$0x1]  ;;  %v1093_v54 = vld [vmem:[%s3333_s0 + $0x26] sm:$0x1]  ;;  %v3426_v62 = vsub.f32 %v1084_v39, %v1090_v44  ;;  %v3428_v63 = vsub.f32 %v1085_v40, %v1091_v45  ;;  %v597_v5 = vmul.f32 %v591_v48, %v3355_v18 }
  0xaf   : > { %2711 = vlog2.f32 %v534_v38  ;;  %v594_v55 = vmul.f32 4.5, %v3400_v42  ;;  %v595_v56 = vmul.f32 4.5, %v3403_v43  ;;  %v1094_v57 = vld [vmem:[%s3333_s0 + $0x2e] sm:$0x1]  ;;  %v5342_v58 = vand.u32 2147483647, %v3407_v46 }
  0xb0   : > { %v596_v59 = vmul.f32 4.5, %v3410_v47  ;;  %v633_v60 = vld [vmem:[%s3331_s26 + $0x1] sm:$0x1]  ;;  %5416 = vst [vmem:[#allocation24_spill] sm:$0xff] %v3426_v62  ;;  %v3430_v1 = vsub.f32 %v1086_v41, %v1092_v52  ;;  %v3433_v3 = vsel %vm505_vm6, 1.0, %v5343_v33  ;;  %s2500_s20 = sshll.u32 %s3215_s21, 7  ;;  %v598_v6 = vmul.f32 %v592_v49, %v3357_v19 }
  0xb1   : > { %v639_v61 = vld [vmem:[%s3333_s0 + $0x1] sm:$0x1]  ;;  %5417 = vst [vmem:[#allocation25_spill] sm:$0xff] %v3428_v63  ;;  %v508_v4 = vld [vmem:[%s416_s15] sm:$0x3f]  ;;  %v599_v7 = vmul.f32 %v593_v50, %v3359_v20  ;;  %v3447_v14 = vsub.f32 %v1087_v51, %v1093_v54  ;;  %v3449_v15 = vsub.f32 %v1088_v53, %v1094_v57  ;;  %v600_v16 = vmul.f32 %v594_v55, %v3361_v21  ;;  %s2497_s16 = sshll.u32 %s3314_s7, 2 }
  0xb2   : > { %5418 = vst [vmem:[#allocation26_spill] sm:$0xff] %v3430_v1  ;;  %v634_v8 = vld [vmem:[%s3331_s26 + $0x9] sm:$0x1]  ;;  %v635_v9 = vld [vmem:[%s3331_s26 + $0x11] sm:$0x1]  ;;  %v601_v17 = vmul.f32 %v595_v56, %v3363_v22  ;;  %v3459_v32 = vsub.f32 %v633_v60, %v639_v61  ;;  %vm509_vm7 = vcmp.gt.f32.partialorder %v508_v4, 0.0  ;;  %v528_v38 = vmul.f32 %v3433_v3, %v3340_v2 }
  0xb3   : > { %v3443_v11 = vadd.f32 -0.055555556, %v567_v24  ;;  %v636_v12 = vld [vmem:[%s3331_s26 + $0x19] sm:$0x1]  ;;  %v637_v13 = vld [vmem:[%s3331_s26 + $0x21] sm:$0x1]  ;;  %v602_v39 = vmul.f32 %v596_v59, %v3365_v23  ;;  %v3471_v45 = vmul.f32 %v598_v6, %v3357_v19  ;;  %v3474_v48 = vmul.f32 %v599_v7, %v3359_v20 }
  0xb4   : > { %5419 = vst [vmem:[#allocation27_spill] sm:$0xff] %v3447_v14  ;;  %v3455_v30 = vadd.f32 -0.055555556, %v568_v25  ;;  %v640_v31 = vld [vmem:[%s3333_s0 + $0x9] sm:$0x1]  ;;  %v527_v37 = vmax.f32 %v3340_v2, 0.0  ;;  %v3468_v25 = vmul.f32 %v597_v5, %v3355_v18  ;;  %v515_v19 = vstv %s2500_s20 }
  0xb5   : > { %5420 = vst [vmem:[#allocation28_spill] sm:$0xff] %v3449_v15  ;;  %v641_v24 = vld [vmem:[%s3333_s0 + $0x11] sm:$0x1]  ;;  %v642_v40 = vld [vmem:[%s3333_s0 + $0x19] sm:$0x1]  ;;  %v2712_v44 = vpop.eup %2711  ;;  %v513_v51 = vand.u32 127, %v512_v10  ;;  %v3481_v53 = vsub.f32 %v634_v8, %v640_v31  ;;  %v3498_v60 = vmul.f32 %v600_v16, %v3361_v21 }
  0xb6   : > { %v643_v41 = vld [vmem:[%s3333_s0 + $0x21] sm:$0x1]  ;;  %v2509_v49 = vadd.f32 -0.055555556, %v569_v26  ;;  %v638_v50 = vld [vmem:[%s3331_s26 + $0x29] sm:$0x1]  ;;  %v3483_v54 = vsub.f32 %v635_v9, %v641_v24  ;;  %v3489_v55 = vsub.f32 %v636_v12, %v642_v40  ;;  %v529_v20 = vsub.f32 %v527_v37, %v528_v38 }
  0xb7   : > { %v644_v2 = vld [vmem:[%s3333_s0 + $0x29] sm:$0x1]  ;;  %v519_v52 = vmul.f32 2.0, %v3433_v3  ;;  %v2499_v18 = vsel %vm509_vm7, 1.0, %v5343_v33  ;;  %v3491_v56 = vsub.f32 %v637_v13, %v643_v41  ;;  %v536_v26 = vmul.f32 0.6931472, %v2712_v44 }
  0xb8   : > { %v2510_v57 = vadd.f32 -0.055555556, %v570_v27  ;;  %v3495_v59 = vsub.f32 %v638_v50, %v644_v2  ;;  %v2511_v61 = vadd.f32 -0.055555556, %v571_v28  ;;  %v2512_v4 = vadd.f32 -0.055555556, %v572_v29 }
  0xb9   : > { %v651_v5 = vand.u32 2147483647, %v3459_v32  ;;  %v3505_v6 = vadd.s32 %v515_v19, %v513_v51  ;;  %v520_v7 = vadd.f32 %v2499_v18, %v519_v52  ;;  %v615_v8 = vsub.f32 1.0, %v3386_v34  ;;  %v725_v51 = vld [vmem:[%s3331_s26 + $0x12] sm:$0x1]  ;;  %s3646_s13 = scalar_lea.vmem [#allocation14], %s2497_s16 }
  0xba   : > { %v652_v27 = vand.u32 2147483647, %v3481_v53  ;;  %v3510_v9 = vmul.f32 %v601_v17, %v3363_v22  ;;  %v653_v21 = vand.u32 2147483647, %v3483_v54  ;;  %v654_v10 = vand.u32 2147483647, %v3489_v55 }
  0xbb   : > { %5421 = vst [vmem:[#allocation29_spill] sm:$0xff] %v3505_v6  ;;  %v655_v28 = vand.u32 2147483647, %v3491_v56  ;;  %v537_v12 = vadd.f32 %v536_v26, %v529_v20  ;;  %v616_v29 = vsub.f32 1.0, %v3389_v35  ;;  %v617_v13 = vsub.f32 1.0, %v3392_v36  ;;  %s2611_s3 = smul.u32 12, %s3314_s7 }
  0xbc   : > { %v656_v16 = vand.u32 2147483647, %v3495_v59  ;;  %v618_v34 = vsub.f32 1.0, %v3400_v42  ;;  %v619_v24 = vsub.f32 1.0, %v3403_v43  ;;  %v620_v22 = vsub.f32 1.0, %v3410_v47  ;;  %s2604_s11 = sshll.u32 %s3215_s21, 2 }
  0xbd   : > { %vm657_vm8 = vcmp.le.f32.partialorder %v651_v5, 0.11111111  ;;  %vm517_vm9 = vcmp.lt.s32.totalorder %v3505_v6, 320  ;;  %vm658_vm10 = vcmp.le.f32.partialorder %v652_v27, 0.11111111  ;;  %v3530_v35 = vmul.f32 %v602_v39, %v3365_v23  ;;  %s446_s29 = scalar_lea.vmem [#allocation13], %s2611_s3 }
  0xbe   : > { %vm659_vm11 = vcmp.le.f32.partialorder %v653_v21, 0.11111111  ;;  %vm660_vm12 = vcmp.le.f32.partialorder %v654_v10, 0.11111111  ;;  %vm661_vm13 = vcmp.le.f32.partialorder %v655_v28, 0.11111111  ;;  %v621_v42 = vmul.f32 %v3443_v11, %v615_v8 }
  0xbf   : > { %vm540_vm14 = vcmask 1045504   ;;  %vm662_vm15 = vcmp.le.f32.partialorder %v656_v16, 0.11111111  ;;  %v3541_v23 = vsel %vm657_vm8, 1.0, %v5343_v33  ;;  %v622_v43 = vmul.f32 %v3455_v30, %v616_v29  ;;  %v723_v11 = vld [vmem:[%s3331_s26 + $0x2] sm:$0x1] }
  0xc0   : > { %v623_v47 = vmul.f32 %v2509_v49, %v617_v13  ;;  %v3551_v39 = vsel %vm659_vm11, 1.0, %v5343_v33  ;;  %v3554_v40 = vsel %vm660_vm12, 1.0, %v5343_v33  ;;  %v3557_v41 = vsel %vm661_vm13, 1.0, %v5343_v33  ;;  %v724_v30 = vld [vmem:[%s3331_s26 + $0xa] sm:$0x1]  ;;  %s5519_s30 = sld [smem:[#allocation42_spill]] }
  0xc1   : > { %v624_v49 = vmul.f32 %v2510_v57, %v618_v34  ;;  %v3563_v50 = vsel %vm662_vm15, 1.0, %v5343_v33  ;;  %v675_v2 = vmul.f32 4.5, %v3541_v23  ;;  %v3567_v18 = vmul.f32 %v2511_v61, %v619_v24  ;;  %v729_v26 = vld [vmem:[%s3333_s0 + $0x2] sm:$0x1]  ;;  %v731_v61 = vld [vmem:[%s3333_s0 + $0x12] sm:$0x1] }
  0xc2   : > { %v3569_v19 = vmul.f32 %v2512_v4, %v620_v22  ;;  %v3575_v57 = vadd.f32 %v621_v42, %v3468_v25  ;;  %v677_v8 = vmul.f32 4.5, %v3551_v39  ;;  %v679_v29 = vmul.f32 4.5, %v3557_v41  ;;  %v726_v24 = vld [vmem:[%s3331_s26 + $0x1a] sm:$0x1]  ;;  %v727_v25 = vld [vmem:[%s3331_s26 + $0x22] sm:$0x1] }
  0xc3   : > { %v3582_v4 = vadd.f32 %v622_v43, %v3471_v45  ;;  %v680_v34 = vmul.f32 4.5, %v3563_v50  ;;  %v3591_v22 = vadd.f32 %v624_v49, %v3498_v60  ;;  %v732_v42 = vld [vmem:[%s3333_s0 + $0x1a] sm:$0x1]  ;;  %v3605_v0 = vsub.f32 %v725_v51, %v731_v61  ;;  %s2288_s10 = sshll.u32 %s3646_s13, 4  ;;  %s2276_s9 = scalar_lea.sflag [#allocation4], %s3314_s7  ;;  %s2289_s10 = int_to_ptr.vmem [resolvable:$true] %s2288_s10 }
  0xc4   : > { %v683_v60 = vmul.f32 %v677_v8, %v3483_v54  ;;  %v2523_v61 = vadd.f32 -0.055555556, %v655_v28  ;;  %v703_v28 = vsub.f32 1.0, %v3557_v41 }
  0xc6   : > { %s2286_s12 = scalar_lea.hbm %s5519_s30, %s2604_s11  ;;  %s2973_s15 = scalar_lea.hbm %s5519_s30, 12 }
  0xc7   : > { %s2290_s5 = sshll.u32 %s2286_s12, 4  ;;  %s2291_s5 = int_to_ptr.hbm [resolvable:$true] %s2290_s5 }
  0xc8   : > { %s2967_s19 = sshra.s32 %s2291_s5, 4  ;;  %s2968_s19 = int_to_ptr.hbm [resolvable:$true] %s2967_s19 }
  0xc9   : > { %s2969_s21 = scalar_lea.hbm %s2968_s19, 4  ;;  %p2974_p0 = scmp.lt.s32.totalorder %s2968_s19, %s5519_s30 }
  0xca   : > { %p2970_p5 = scmp.ne.s32.totalorder %s2968_s19, %s2969_s21  ;;  %p2975_p6 = scmp.lt.s32.totalorder %s2973_s15, %s2969_s21 }
  0xcc   : > { %p2971_p11 = pnand %p2970_p5, %p3232_p12  ;;  %p2976_p3 = por %p2975_p6, %p2974_p0 }
  0xce   : > { %p2972_p2 = pneg %p2971_p11 }
  0xd0   : > { %p2977_p4 = pnand %p2976_p3, %p2972_p2 }
 0x113   : > { %v524_v31 = vpop.permute.xlu0 %523 }
 0x114   : > { %v526_v17 = vmul.f32 %v524_v31, %v520_v7  ;;  %v3525_v37 = vmul.f32 %v3433_v3, %v524_v31  ;;  %v3546_v3 = vsel %vm658_vm10, 1.0, %v5343_v33  ;;  %v730_v7 = vld [vmem:[%s3333_s0 + $0xa] sm:$0x1]  ;;  %v3585_v31 = vadd.f32 %v623_v47, %v3474_v48 }
 0x115   : > { %v676_v20 = vmul.f32 4.5, %v3546_v3  ;;  %v3599_v45 = vsub.f32 %v724_v30, %v730_v7  ;;  %v2519_v47 = vadd.f32 -0.055555556, %v651_v5  ;;  %v3616_v5 = vsub.f32 %v726_v24, %v732_v42 }
 0x116   : > { %5422 = vst [vmem:[#allocation30_spill] sm:$0xff] %v3525_v37  ;;  %v538_v36 = vmul.f32 %v537_v12, %v526_v17  ;;  %v678_v12 = vmul.f32 4.5, %v3554_v40  ;;  %v681_v17 = vmul.f32 %v675_v2, %v3459_v32  ;;  %v685_v2 = vmul.f32 %v679_v29, %v3491_v56 }
 0x117   : > { %v682_v48 = vmul.f32 %v676_v20, %v3481_v53  ;;  %v2521_v20 = vadd.f32 -0.055555556, %v653_v21  ;;  %v2522_v7 = vadd.f32 -0.055555556, %v654_v10  ;;  %v699_v21 = vsub.f32 1.0, %v3541_v23 }
 0x118   : > { %v539_v38 = vsel %vm517_vm9, %v538_v36, 0.0  ;;  %v728_v36 = vld [vmem:[%s3331_s26 + $0x2a] sm:$0x1]  ;;  %v684_v49 = vmul.f32 %v678_v12, %v3489_v55  ;;  %v687_v51 = vmul.f32 %v681_v17, %v3459_v32  ;;  %v701_v32 = vsub.f32 1.0, %v3551_v39 }
 0x119   : > { %v541_v44 = vsel %vm540_vm14, %v539_v38, 0.0  ;;  %v733_v38 = vld [vmem:[%s3333_s0 + $0x22] sm:$0x1]  ;;  %v742_v10 = vand.u32 2147483647, %v3599_v45 }
 0x11a   : > { %v542_v52 = vrot.slane %v541_v44, 4  ;;  %v3621_v8 = vsub.f32 %v727_v25, %v733_v38  ;;  %v702_v25 = vsub.f32 1.0, %v3554_v40  ;;  %v743_v17 = vand.u32 2147483647, %v3605_v0 }
 0x11b   : > { %v2524_v39 = vadd.f32 -0.055555556, %v656_v16  ;;  %v704_v38 = vsub.f32 1.0, %v3563_v50  ;;  %v705_v40 = vmul.f32 %v2519_v47, %v699_v21  ;;  %vm748_vm1 = vcmp.le.f32.partialorder %v742_v10, 0.11111111 }
 0x11c   : > { %v543_v13 = vadd.f32 %v542_v52, %v541_v44  ;;  %v3597_v44 = vsub.f32 %v723_v11, %v729_v26  ;;  %v734_v52 = vld [vmem:[%s3333_s0 + $0x2a] sm:$0x1]  ;;  %v2520_v11 = vadd.f32 -0.055555556, %v652_v27  ;;  %v686_v26 = vmul.f32 %v680_v34, %v3495_v59  ;;  %v817_v21 = vld [vmem:[%s3331_s26 + $0x23] sm:$0x1] }
 0x11d   : > { %v3623_v12 = vsub.f32 %v728_v36, %v734_v52  ;;  %v688_v27 = vmul.f32 %v682_v48, %v3481_v53  ;;  %v700_v34 = vsub.f32 1.0, %v3546_v3  ;;  %v744_v53 = vand.u32 2147483647, %v3616_v5  ;;  %v823_v50 = vld [vmem:[%s3333_s0 + $0x23] sm:$0x1] }
 0x11e   : > { %v544_v43 = vrot.slane %v543_v13, 2  ;;  %v689_v36 = vmul.f32 %v683_v60, %v3483_v54  ;;  %v745_v42 = vand.u32 2147483647, %v3621_v8  ;;  %v690_v3 = vmul.f32 %v684_v49, %v3489_v55 }
 0x11f   : > { %v746_v23 = vand.u32 2147483647, %v3623_v12  ;;  %v691_v54 = vmul.f32 %v685_v2, %v3491_v56  ;;  %v706_v41 = vmul.f32 %v2520_v11, %v700_v34  ;;  %v707_v55 = vmul.f32 %v2521_v20, %v701_v32  ;;  %v813_v11 = vld [vmem:[%s3331_s26 + $0x3] sm:$0x1] }
 0x120   : > { %v545_v30 = vadd.f32 %v544_v43, %v543_v13  ;;  %v741_v13 = vand.u32 2147483647, %v3597_v44  ;;  %v708_v16 = vmul.f32 %v2522_v7, %v702_v25  ;;  %vm749_vm2 = vcmp.le.f32.partialorder %v743_v17, 0.11111111 }
 0x121   : > { %vm3656_vm3 = vcmp.le.f32.partialorder %v744_v53, 0.11111111  ;;  %v709_v56 = vmul.f32 %v2523_v61, %v703_v28  ;;  %vm3662_vm4 = vcmp.le.f32.partialorder %v745_v42, 0.11111111  ;;  %vm3668_vm5 = vcmp.le.f32.partialorder %v746_v23, 0.11111111 }
 0x122   : > { %v546_v29 = vrot.slane %v545_v30, 1  ;;  %vm747_vm0 = vcmp.le.f32.partialorder %v741_v13, 0.11111111  ;;  %v3677_v52 = vadd.f32 %v3567_v18, %v3510_v9  ;;  %v692_v60 = vmul.f32 %v686_v26, %v3495_v59  ;;  %v815_v59 = vld [vmem:[%s3331_s26 + $0x13] sm:$0x1] }
 0x123   : > { %v3673_v47 = vsel %vm747_vm0, 1.0, %v5343_v33  ;;  %v710_v49 = vmul.f32 %v2524_v39, %v704_v38  ;;  %v3681_v2 = vsel %vm748_vm1, 1.0, %v5343_v33  ;;  %v3687_v20 = vadd.f32 %v3569_v19, %v3530_v35  ;;  %v819_v18 = vld [vmem:[%s3333_s0 + $0x3] sm:$0x1]  ;;  %v820_v26 = vld [vmem:[%s3333_s0 + $0xb] sm:$0x1] }
 0x124   : > { %v547_v24 = vadd.f32 %v546_v29, %v545_v30  ;;  %v814_v30 = vld [vmem:[%s3331_s26 + $0xb] sm:$0x1]  ;;  %v711_v7 = vadd.f32 %v705_v40, %v687_v51  ;;  %v712_v29 = vadd.f32 %v706_v41, %v688_v27  ;;  %v3690_v9 = vsel %vm749_vm2, 1.0, %v5343_v33  ;;  %v816_v27 = vld [vmem:[%s3331_s26 + $0x1b] sm:$0x1] }
 0x125   : > { %v3698_v61 = vsel %vm3656_vm3, 1.0, %v5343_v33  ;;  %v3703_v35 = vsel %vm3662_vm4, 1.0, %v5343_v33  ;;  %v3708_v19 = vsel %vm3668_vm5, 1.0, %v5343_v33  ;;  %v765_v51 = vmul.f32 4.5, %v3673_v47  ;;  %v818_v28 = vld [vmem:[%s3331_s26 + $0x2b] sm:$0x1] }
 0x126   : > { %2272 = vst [vmem:[%s3646_s13] sm:$0x1] %v547_v24  ;;  %v3713_v34 = vadd.f32 %v707_v55, %v689_v36  ;;  %v3715_v32 = vadd.f32 %v708_v16, %v690_v3  ;;  %v3717_v24 = vadd.f32 %v709_v56, %v691_v54  ;;  %v766_v25 = vmul.f32 4.5, %v3681_v2  ;;  %v821_v39 = vld [vmem:[%s3333_s0 + $0x13] sm:$0x1]  ;;  %v822_v41 = vld [vmem:[%s3333_s0 + $0x1b] sm:$0x1] }
 0x127   : > { %v3722_v38 = vadd.f32 %v710_v49, %v692_v60  ;;  %v767_v40 = vmul.f32 4.5, %v3690_v9  ;;  %v3727_v43 = vsub.f32 %v813_v11, %v819_v18  ;;  %v3729_v48 = vsub.f32 %v814_v30, %v820_v26  ;;  %v824_v16 = vld [vmem:[%s3333_s0 + $0x2b] sm:$0x1] }
 0x128   : > { %v3732_v36 = vadd.f32 %v711_v7, %v3575_v57  ;;  %v768_v3 = vmul.f32 4.5, %v3698_v61  ;;  %v769_v54 = vmul.f32 4.5, %v3703_v35  ;;  %v770_v55 = vmul.f32 4.5, %v3708_v19 }
 0x129   : > { %v3739_v56 = vadd.f32 %v712_v29, %v3582_v4  ;;  %v771_v60 = vmul.f32 %v765_v51, %v3597_v44  ;;  %v2531_v49 = vadd.f32 -0.055555556, %v741_v13  ;;  %v3744_v11 = vsub.f32 %v815_v59, %v821_v39 }
 0x12a   : > { %v772_v57 = vmul.f32 %v766_v25, %v3599_v45  ;;  %v2532_v30 = vadd.f32 -0.055555556, %v742_v10  ;;  %v3749_v7 = vsub.f32 %v816_v27, %v822_v41  ;;  %v3751_v18 = vsub.f32 %v817_v21, %v823_v50 }
 0x12b   : > { %v773_v26 = vmul.f32 %v767_v40, %v3605_v0  ;;  %v3754_v4 = vsub.f32 %v818_v28, %v824_v16  ;;  %v831_v29 = vand.u32 2147483647, %v3727_v43  ;;  %v832_v51 = vand.u32 2147483647, %v3729_v48 }
 0x12c   : > { %v774_v13 = vmul.f32 %v768_v3, %v3616_v5  ;;  %v775_v59 = vmul.f32 %v769_v54, %v3621_v8  ;;  %v776_v25 = vmul.f32 %v770_v55, %v3623_v12  ;;  %v2533_v10 = vadd.f32 -0.055555556, %v743_v17 }
 0x12d   : > { %v777_v27 = vmul.f32 %v771_v60, %v3597_v44  ;;  %v2534_v21 = vadd.f32 -0.055555556, %v744_v53  ;;  %v789_v28 = vsub.f32 1.0, %v3673_v47  ;;  %v833_v39 = vand.u32 2147483647, %v3744_v11 }
 0x12e   : > { %v790_v40 = vsub.f32 1.0, %v3681_v2  ;;  %v791_v41 = vsub.f32 1.0, %v3690_v9  ;;  %v834_v50 = vand.u32 2147483647, %v3749_v7  ;;  %v835_v3 = vand.u32 2147483647, %v3751_v18 }
 0x12f   : > { %v778_v54 = vmul.f32 %v772_v57, %v3599_v45  ;;  %v836_v17 = vand.u32 2147483647, %v3754_v4  ;;  %vm837_vm6 = vcmp.le.f32.partialorder %v831_v29, 0.11111111  ;;  %vm838_vm7 = vcmp.le.f32.partialorder %v832_v51, 0.11111111 }
 0x130   : > { %v779_v44 = vmul.f32 %v773_v26, %v3605_v0  ;;  %v2535_v53 = vadd.f32 -0.055555556, %v745_v42  ;;  %v2536_v47 = vadd.f32 -0.055555556, %v746_v23  ;;  %v792_v2 = vsub.f32 1.0, %v3698_v61 }
 0x131   : > { %v793_v45 = vsub.f32 1.0, %v3703_v35  ;;  %v794_v9 = vsub.f32 1.0, %v3708_v19  ;;  %v795_v55 = vmul.f32 %v2531_v49, %v789_v28  ;;  %vm839_vm8 = vcmp.le.f32.partialorder %v833_v39, 0.11111111 }
 0x132   : > { %vm840_vm10 = vcmp.le.f32.partialorder %v834_v50, 0.11111111  ;;  %vm841_vm11 = vcmp.le.f32.partialorder %v835_v3, 0.11111111  ;;  %v3793_v0 = vsel %vm837_vm6, 1.0, %v5343_v33  ;;  %v3796_v42 = vsel %vm838_vm7, 1.0, %v5343_v33 }
 0x133   : > { %v780_v23 = vmul.f32 %v774_v13, %v3616_v5  ;;  %v796_v61 = vmul.f32 %v2532_v30, %v790_v40  ;;  %v797_v35 = vmul.f32 %v2533_v10, %v791_v41  ;;  %vm842_vm12 = vcmp.le.f32.partialorder %v836_v17, 0.11111111  ;;  %v903_v40 = vld [vmem:[%s3331_s26 + $0x4] sm:$0x1]  ;;  %v904_v41 = vld [vmem:[%s3331_s26 + $0xc] sm:$0x1] }
 0x134   : > { %v781_v19 = vmul.f32 %v775_v59, %v3621_v8  ;;  %v782_v16 = vmul.f32 %v776_v25, %v3623_v12  ;;  %v798_v60 = vmul.f32 %v2534_v21, %v792_v2  ;;  %v3804_v49 = vsel %vm839_vm8, 1.0, %v5343_v33  ;;  %v909_v2 = vld [vmem:[%s3333_s0 + $0x4] sm:$0x1] }
 0x135   : > { %v3807_v57 = vsel %vm840_vm10, 1.0, %v5343_v33  ;;  %v3810_v5 = vsel %vm841_vm11, 1.0, %v5343_v33  ;;  %v855_v30 = vmul.f32 4.5, %v3793_v0  ;;  %v856_v26 = vmul.f32 4.5, %v3796_v42 }
 0x136   : > { %v799_v8 = vmul.f32 %v2535_v53, %v793_v45  ;;  %v800_v13 = vmul.f32 %v2536_v47, %v794_v9  ;;  %v801_v12 = vadd.f32 %v795_v55, %v777_v27  ;;  %v3815_v59 = vsel %vm842_vm12, 1.0, %v5343_v33  ;;  %v905_v55 = vld [vmem:[%s3331_s26 + $0x14] sm:$0x1] }
 0x137   : > { %v719_v25 = vadd.f32 %v3713_v34, %v3585_v31  ;;  %v3821_v10 = vadd.f32 %v3715_v32, %v3591_v22  ;;  %v802_v21 = vadd.f32 %v796_v61, %v778_v54  ;;  %v803_v28 = vadd.f32 %v797_v35, %v779_v44  ;;  %v910_v34 = vld [vmem:[%s3333_s0 + $0xc] sm:$0x1]  ;;  %v906_v61 = vld [vmem:[%s3331_s26 + $0x1c] sm:$0x1] }
 0x138   : > { %v3828_v27 = vadd.f32 %v3717_v24, %v3677_v52  ;;  %v857_v53 = vmul.f32 4.5, %v3804_v49  ;;  %v858_v31 = vmul.f32 4.5, %v3807_v57  ;;  %v859_v22 = vmul.f32 4.5, %v3810_v5 }
 0x139   : > { %v3836_v32 = vadd.f32 %v3722_v38, %v3687_v20  ;;  %v860_v54 = vmul.f32 4.5, %v3815_v59  ;;  %v861_v44 = vmul.f32 %v855_v30, %v3727_v43  ;;  %v862_v52 = vmul.f32 %v856_v26, %v3729_v48  ;;  %v907_v20 = vld [vmem:[%s3331_s26 + $0x24] sm:$0x1]  ;;  %v908_v30 = vld [vmem:[%s3331_s26 + $0x2c] sm:$0x1] }
 0x13a   : > { %v804_v24 = vadd.f32 %v798_v60, %v780_v23  ;;  %v3841_v47 = vadd.f32 %v799_v8, %v781_v19  ;;  %v3843_v45 = vadd.f32 %v800_v13, %v782_v16  ;;  %v3846_v9 = vadd.f32 %v801_v12, %v3732_v36  ;;  %v911_v26 = vld [vmem:[%s3333_s0 + $0x14] sm:$0x1]  ;;  %v912_v23 = vld [vmem:[%s3333_s0 + $0x1c] sm:$0x1]  ;;  %v914_v12 = vld [vmem:[%s3333_s0 + $0x2c] sm:$0x1] }
 0x13b   : > { %v3852_v38 = vadd.f32 %v802_v21, %v3739_v56  ;;  %v3854_v35 = vadd.f32 %v803_v28, %v719_v25  ;;  %v3859_v19 = vsub.f32 %v903_v40, %v909_v2  ;;  %v3861_v16 = vsub.f32 %v904_v41, %v910_v34  ;;  %v913_v56 = vld [vmem:[%s3333_s0 + $0x24] sm:$0x1] }
 0x13c   : > { %v863_v60 = vmul.f32 %v857_v53, %v3744_v11  ;;  %v864_v36 = vmul.f32 %v858_v31, %v3749_v7  ;;  %v865_v8 = vmul.f32 %v859_v22, %v3751_v18  ;;  %v2543_v13 = vadd.f32 -0.055555556, %v831_v29 }
 0x13d   : > { %v866_v25 = vmul.f32 %v860_v54, %v3754_v4  ;;  %v867_v21 = vmul.f32 %v861_v44, %v3727_v43  ;;  %v868_v28 = vmul.f32 %v862_v52, %v3729_v48  ;;  %v2544_v40 = vadd.f32 -0.055555556, %v832_v51 }
 0x13e   : > { %v2545_v41 = vadd.f32 -0.055555556, %v833_v39  ;;  %v879_v2 = vsub.f32 1.0, %v3793_v0  ;;  %v880_v53 = vsub.f32 1.0, %v3796_v42  ;;  %v3879_v31 = vsub.f32 %v905_v55, %v911_v26 }
 0x13f   : > { %v881_v29 = vsub.f32 1.0, %v3804_v49  ;;  %v3882_v22 = vsub.f32 %v906_v61, %v912_v23  ;;  %v3884_v34 = vsub.f32 %v907_v20, %v913_v56  ;;  %v3886_v43 = vsub.f32 %v908_v30, %v914_v12 }
 0x140   : > { %v869_v48 = vmul.f32 %v863_v60, %v3744_v11  ;;  %v2546_v51 = vadd.f32 -0.055555556, %v834_v50  ;;  %v2547_v39 = vadd.f32 -0.055555556, %v835_v3  ;;  %v882_v0 = vsub.f32 1.0, %v3807_v57 }
 0x141   : > { %v2548_v42 = vadd.f32 -0.055555556, %v836_v17  ;;  %v883_v49 = vsub.f32 1.0, %v3810_v5  ;;  %v884_v54 = vsub.f32 1.0, %v3815_v59  ;;  %v921_v44 = vand.u32 2147483647, %v3859_v19 }
 0x142   : > { %v885_v52 = vmul.f32 %v2543_v13, %v879_v2  ;;  %v886_v55 = vmul.f32 %v2544_v40, %v880_v53  ;;  %v922_v11 = vand.u32 2147483647, %v3861_v16  ;;  %v923_v50 = vand.u32 2147483647, %v3879_v31 }
 0x143   : > { %v887_v61 = vmul.f32 %v2545_v41, %v881_v29  ;;  %v924_v3 = vand.u32 2147483647, %v3882_v22  ;;  %v5346_v57 = vand.u32 2147483647, %v3884_v34  ;;  %v5345_v20 = vand.u32 2147483647, %v3886_v43 }
 0x144   : > { %v810_v17 = vadd.f32 %v804_v24, %v3821_v10  ;;  %v870_v5 = vmul.f32 %v864_v36, %v3749_v7  ;;  %v871_v59 = vmul.f32 %v865_v8, %v3751_v18  ;;  %v888_v30 = vmul.f32 %v2546_v51, %v882_v0  ;;  %v1000_v51 = vld [vmem:[%s3333_s0 + $0xd] sm:$0x1] }
 0x145   : > { %v872_v26 = vmul.f32 %v866_v25, %v3754_v4  ;;  %v889_v23 = vmul.f32 %v2547_v39, %v883_v49  ;;  %v890_v60 = vmul.f32 %v2548_v42, %v884_v54  ;;  %vm927_vm13 = vcmp.le.f32.partialorder %v921_v44, 0.11111111  ;;  %v1001_v49 = vld [vmem:[%s3333_s0 + $0x15] sm:$0x1] }
 0x146   : > { %v891_v13 = vadd.f32 %v885_v52, %v867_v21  ;;  %v892_v56 = vadd.f32 %v886_v55, %v868_v28  ;;  %vm928_vm15 = vcmp.le.f32.partialorder %v922_v11, 0.11111111  ;;  %vm929_vm0 = vcmp.le.f32.partialorder %v923_v50, 0.11111111  ;;  %v993_v21 = vld [vmem:[%s3331_s26 + $0x5] sm:$0x1] }
 0x147   : > { %v893_v12 = vadd.f32 %v887_v61, %v869_v48  ;;  %vm930_vm1 = vcmp.le.f32.partialorder %v924_v3, 0.11111111  ;;  %vm931_vm2 = vcmp.le.f32.partialorder %v5346_v57, 0.11111111  ;;  %vm932_vm3 = vcmp.le.f32.partialorder %v5345_v20, 0.11111111 }
 0x148   : > { %v811_v7 = vadd.f32 %v3841_v47, %v3828_v27  ;;  %v812_v18 = vadd.f32 %v3843_v45, %v3836_v32  ;;  %v894_v4 = vadd.f32 %v888_v30, %v870_v5  ;;  %v3921_v10 = vsel %vm927_vm13, 1.0, %v5343_v33  ;;  %v999_v27 = vld [vmem:[%s3333_s0 + $0x5] sm:$0x1]  ;;  %v994_v28 = vld [vmem:[%s3331_s26 + $0xd] sm:$0x1] }
 0x149   : > { %v895_v24 = vadd.f32 %v889_v23, %v871_v59  ;;  %v896_v36 = vadd.f32 %v890_v60, %v872_v26  ;;  %v3924_v8 = vsel %vm928_vm15, 1.0, %v5343_v33  ;;  %v3927_v25 = vsel %vm929_vm0, 1.0, %v5343_v33  ;;  %v995_v48 = vld [vmem:[%s3331_s26 + $0x15] sm:$0x1] }
 0x14a   : > { %v3932_v47 = vsel %vm930_vm1, 1.0, %v5343_v33  ;;  %v3935_v32 = vsel %vm931_vm2, 1.0, %v5343_v33  ;;  %v3938_v45 = vsel %vm932_vm3, 1.0, %v5343_v33  ;;  %v1104_v40 = vand.u32 2139095040, %v3407_v46 }
 0x14b   : > { %v3943_v41 = vadd.f32 %v891_v13, %v3846_v9  ;;  %v3946_v2 = vadd.f32 %v892_v56, %v3852_v38  ;;  %v3949_v53 = vadd.f32 %v893_v12, %v3854_v35  ;;  %v945_v29 = vmul.f32 4.5, %v3921_v10 }
 0x14c   : > { %v3954_v39 = vadd.f32 %v894_v4, %v810_v17  ;;  %v946_v0 = vmul.f32 4.5, %v3924_v8  ;;  %v947_v42 = vmul.f32 4.5, %v3927_v25  ;;  %v1105_v54 = vshrl.u32 %v1104_v40, 23 }
 0x14d   : > { %5429 = vst [vmem:[#allocation31_spill] sm:$0xff] %v3946_v2  ;;  %v3959_v9 = vadd.f32 %v895_v24, %v811_v7  ;;  %v948_v38 = vmul.f32 4.5, %v3932_v47  ;;  %v949_v52 = vmul.f32 4.5, %v3935_v32  ;;  %v950_v35 = vmul.f32 4.5, %v3938_v45 }
 0x14e   : > { %5430 = vst [vmem:[#allocation32_spill] sm:$0xff] %v3949_v53  ;;  %v3964_v55 = vadd.f32 %v896_v36, %v812_v18  ;;  %v3966_v61 = vsub.f32 %v993_v21, %v999_v27  ;;  %v2573_v17 = vadd.s32 4294967169, %v1105_v54  ;;  %v1108_v5 = vand.u32 8388607, %v5342_v58 }
 0x14f   : > { %5431 = vst [vmem:[#allocation33_spill] sm:$0xff] %v3954_v39  ;;  %v951_v59 = vmul.f32 %v945_v29, %v3859_v19  ;;  %v3971_v30 = vadd.f32 -0.055555556, %v921_v44  ;;  %v3973_v26 = vsub.f32 %v994_v28, %v1000_v51  ;;  %v3975_v23 = vsub.f32 %v995_v48, %v1001_v49 }
 0x150   : > { %5432 = vst [vmem:[#allocation34_spill] sm:$0xff] %v3959_v9  ;;  %v3978_v60 = vmul.f32 %v946_v0, %v3861_v16  ;;  %v3981_v13 = vmul.f32 %v947_v42, %v3879_v31  ;;  %v3983_v56 = vadd.f32 -0.055555556, %v922_v11  ;;  %v1111_v12 = vadd.s32 1, %v2573_v17 }
 0x151   : > { %5433 = vst [vmem:[#allocation35_spill] sm:$0xff] %v3964_v55  ;;  %v3986_v7 = vmul.f32 %v948_v38, %v3882_v22  ;;  %v3989_v18 = vmul.f32 %v949_v52, %v3884_v34  ;;  %v3992_v44 = vmul.f32 %v950_v35, %v3886_v43  ;;  %v1259_v4 = vand.u32 2139095040, %v3426_v62 }
 0x152   : > { %v1109_v24 = vor.u32 8388608, %v1108_v5  ;;  %vm1112_vm4 = vcmp.gt.s32.totalorder %v1111_v12, 0  ;;  %v3996_v27 = vmul.f32 %v951_v59, %v3859_v19  ;;  %v5353_v28 = vand.u32 2147483647, %v3426_v62 }
 0x153   : > { %v1113_v36 = vsel %vm1112_vm4, %v1111_v12, 0  ;;  %v1260_v21 = vshrl.u32 %v1259_v4, 23  ;;  %v4001_v40 = vadd.f32 -0.055555556, %v923_v50  ;;  %v5358_v0 = vmov 683565275  }
 0x154   : > { %v1115_v11 = vand.u32 31, %v1113_v36  ;;  %v4003_v29 = vshrl.u32 %v1113_v36, 5  ;;  %v5347_v49 = vmov 2475754826   ;;  %v5349_v38 = vmov 2131351028  }
 0x155   : > { %v2576_v48 = vadd.s32 4294967169, %v1260_v21  ;;  %v4010_v52 = vadd.f32 -0.055555556, %v924_v3  ;;  %v5351_v35 = vmov 2102212464   ;;  %v4014_v59 = vshll.u32 %v1109_v24, 8 }
 0x156   : > { %v1116_v51 = vsub.s32 32, %v1115_v11  ;;  %v1118_v42 = vshll.u32 %v5358_v0, %v1115_v11  ;;  %v1121_v54 = vshll.u32 %v5347_v49, %v1115_v11  ;;  %v1124_v19 = vshll.u32 %v5349_v38, %v1115_v11 }
 0x157   : > { %v1127_v50 = vshll.u32 %v5351_v35, %v1115_v11  ;;  %v5356_v17 = vmov 920167782   ;;  %v1263_v21 = vand.u32 8388607, %v5353_v28  ;;  %v5354_v58 = vmov 1326507024  }
 0x158   : > { %v1130_v5 = vshll.u32 %v5356_v17, %v1115_v11  ;;  %v1119_v12 = vshrl.u32 %v5347_v49, %v1116_v51  ;;  %v1122_v4 = vshrl.u32 %v5349_v38, %v1116_v51  ;;  %v1125_v36 = vshrl.u32 %v5351_v35, %v1116_v51 }
 0x159   : > { %v1128_v3 = vshrl.u32 %v5356_v17, %v1116_v51  ;;  %v1131_v33 = vshrl.u32 %v5354_v58, %v1116_v51  ;;  %vm1133_vm5 = vcmp.lt.s32.totalorder %v4003_v29, 1  ;;  %vm1136_vm6 = vcmp.lt.s32.totalorder %v4003_v29, 4 }
 0x15a   : > { %v1120_v24 = vor.u32 %v1119_v12, %v1118_v42  ;;  %v1123_v11 = vor.u32 %v1122_v4, %v1121_v54  ;;  %v1126_v20 = vor.u32 %v1125_v36, %v1124_v19  ;;  %v1266_v57 = vadd.s32 1, %v2576_v48 }
 0x15b   : > { %v1129_v49 = vor.u32 %v1128_v3, %v1127_v50  ;;  %v1132_v38 = vor.u32 %v1131_v33, %v1130_v5  ;;  %vm1135_vm7 = vcmp.lt.s32.totalorder %v4003_v29, 3  ;;  %v1150_v35 = vand.u32 65535, %v4014_v59 }
 0x15c   : > { %vm1134_vm8 = vcmp.lt.s32.totalorder %v4003_v29, 2  ;;  %v1141_v28 = vsel %vm1133_vm5, %v1120_v24, %v1123_v11  ;;  %v1145_v58 = vsel %vm1133_vm5, %v1123_v11, %v1126_v20  ;;  %v1264_v17 = vor.u32 8388608, %v1263_v21 }
 0x15d   : > { %v1117_v42 = vshrl.u32 %v5358_v0, %v1116_v51  ;;  %v1142_v48 = vsel %vm1136_vm6, %v1129_v49, 920167782  ;;  %v1146_v33 = vsel %vm1136_vm6, %v1132_v38, 1326507024  ;;  %vm1267_vm10 = vcmp.gt.s32.totalorder %v1266_v57, 0 }
 0x15e   : > { %v1143_v54 = vsel %vm1135_vm7, %v1126_v20, %v1142_v48  ;;  %v1147_v19 = vsel %vm1135_vm7, %v1129_v49, %v1146_v33  ;;  %v1151_v50 = vshrl.u32 %v4014_v59, 16  ;;  %v1268_v5 = vsel %vm1267_vm10, %v1266_v57, 0 }
 0x15f   : > { %v1138_v12 = vsel %vm1136_vm6, %v1126_v20, 2102212464  ;;  %v1144_v51 = vsel %vm1134_vm8, %v1141_v28, %v1143_v54  ;;  %v1148_v4 = vsel %vm1134_vm8, %v1145_v58, %v1147_v19  ;;  %v4048_v38 = vshrl.u32 %v1268_v5, 5 }
 0x160   : > { %v1152_v36 = vand.u32 65535, %v1148_v4  ;;  %v1153_v21 = vshrl.u32 %v1148_v4, 16  ;;  %v1174_v3 = vand.u32 65535, %v1144_v51  ;;  %v1175_v48 = vshrl.u32 %v1144_v51, 16 }
 0x161   : > { %v4052_v49 = vmul.f32 %v3978_v60, %v3861_v16  ;;  %v4056_v57 = vsel %vm1133_vm5, %v1117_v42, %v1120_v24  ;;  %v4058_v20 = vshll.u32 %v1264_v17, 8  ;;  %v1414_v28 = vand.u32 2139095040, %v3428_v63 }
 0x162   : > { %v1154_v33 = vmul.u32 %v1152_v36, %v1150_v35  ;;  %v1155_v58 = vmul.u32 %v1153_v21, %v1150_v35  ;;  %v1156_v54 = vmul.u32 %v1152_v36, %v1151_v50  ;;  %v1270_v19 = vand.u32 31, %v1268_v5 }
 0x163   : > { %v1139_v4 = vsel %vm1135_vm7, %v1123_v11, %v1138_v12  ;;  %v1176_v51 = vmul.u32 %v1174_v3, %v1150_v35  ;;  %v1177_v0 = vmul.u32 %v1175_v48, %v1150_v35  ;;  %v1178_v6 = vmul.u32 %v1174_v3, %v1151_v50 }
 0x164   : > { %v1157_v16 = vmul.u32 %v1153_v21, %v1151_v50  ;;  %v1158_v60 = vshll.u32 %v1155_v58, 16  ;;  %v1160_v37 = vshll.u32 %v1156_v54, 16  ;;  %v1179_v15 = vmul.u32 %v1175_v48, %v1151_v50 }
 0x165   : > { %vm1288_vm11 = vcmp.lt.s32.totalorder %v4048_v38, 1  ;;  %v1159_v17 = vshrl.u32 %v1155_v58, 16  ;;  %v1161_v24 = vshrl.u32 %v1156_v54, 16  ;;  %v1180_v42 = vshll.u32 %v1177_v0, 16 }
 0x166   : > { %v1182_v62 = vshll.u32 %v1178_v6, 16  ;;  %vm1162_vm12 = vc.u32 %v1154_v33, %v1158_v60  ;;  %v1164_v14 = vadd.s32 %v1158_v60, %v1154_v33  ;;  %v1181_v36 = vshrl.u32 %v1177_v0, 16 }
 0x167   : > { %v4064_v5 = vsub.s32 32, %v1270_v19  ;;  %v5434_v46 = vmov 0   ;;  %vm1184_vm13 = vc.u32 %v1176_v51, %v1180_v42  ;;  %v1186_v35 = vadd.s32 %v1180_v42, %v1176_v51 }
 0x168   : > { %v1163_v11 = vsel %vm1162_vm12, 1, %v5434_v46  ;;  %v5435_v12 = vmov 683565275   ;;  %vm1289_vm15 = vcmp.lt.s32.totalorder %v4048_v38, 2  ;;  %vm1166_vm0 = vc.u32 %v1164_v14, %v1160_v37 }
 0x169   : > { %v1273_v21 = vshll.u32 %v5435_v12, %v1270_v19  ;;  %v1165_v50 = vadd.s32 %v1163_v11, %v1157_v16  ;;  %v1185_v3 = vsel %vm1184_vm13, 1, %v5434_v46  ;;  %v5436_v48 = vmov 2475754826  }
 0x16a   : > { %v1276_v58 = vshll.u32 %v5436_v48, %v1270_v19  ;;  %v1167_v54 = vsel %vm1166_vm0, 1, %v5434_v46  ;;  %v1183_v33 = vshrl.u32 %v1178_v6, 16  ;;  %v1187_v0 = vadd.s32 %v1185_v3, %v1179_v15 }
 0x16b   : > { %vm1188_vm1 = vc.u32 %v1186_v35, %v1182_v62  ;;  %v1169_v60 = vadd.s32 %v1167_v54, %v1165_v50  ;;  %v1274_v51 = vshrl.u32 %v5436_v48, %v4064_v5  ;;  %v5437_v42 = vmov 2131351028  }
 0x16c   : > { %v1189_v1 = vsel %vm1188_vm1, 1, %v5434_v46  ;;  %v1277_v55 = vshrl.u32 %v5437_v42, %v4064_v5  ;;  %v1279_v14 = vshll.u32 %v5437_v42, %v1270_v19  ;;  %v5438_v37 = vmov 2102212464  }
 0x16d   : > { %v1191_v16 = vadd.s32 %v1189_v1, %v1187_v0  ;;  %v1280_v11 = vshrl.u32 %v5438_v37, %v4064_v5  ;;  %v1282_v9 = vshll.u32 %v5438_v37, %v1270_v19  ;;  %v1170_v6 = vadd.s32 %v1169_v60, %v1159_v17 }
 0x16e   : > { %v4081_v15 = vor.u32 %v1274_v51, %v1273_v21  ;;  %v4083_v50 = vor.u32 %v1277_v55, %v1276_v58  ;;  %v5439_v3 = vmov 920167782   ;;  %v5440_v0 = vmov 1326507024  }
 0x16f   : > { %v1283_v54 = vshrl.u32 %v5439_v3, %v4064_v5  ;;  %v1192_v39 = vadd.s32 %v1191_v16, %v1181_v36  ;;  %v4087_v53 = vor.u32 %v1280_v11, %v1279_v14  ;;  %v1285_v1 = vshll.u32 %v5439_v3, %v1270_v19 }
 0x170   : > { %v1286_v42 = vshrl.u32 %v5440_v0, %v4064_v5  ;;  %v4092_v48 = vadd.s32 %v1186_v35, %v1182_v62  ;;  %vm1290_vm2 = vcmp.lt.s32.totalorder %v4048_v38, 3  ;;  %vm1291_vm3 = vcmp.lt.s32.totalorder %v4048_v38, 4 }
 0x171   : > { %v1284_v2 = vor.u32 %v1283_v54, %v1282_v9  ;;  %v4096_v55 = vadd.s32 %v1170_v6, %v1161_v24  ;;  %v1193_v17 = vadd.s32 %v1192_v39, %v1183_v33  ;;  %v1296_v36 = vsel %vm1288_vm11, %v4081_v15, %v4083_v50 }
 0x172   : > { %v1287_v21 = vor.u32 %v1286_v42, %v1285_v1  ;;  %v4104_v19 = vmul.f32 %v3981_v13, %v3879_v31  ;;  %v4108_v62 = vmul.f32 %v3986_v7, %v3882_v22  ;;  %v1415_v24 = vshrl.u32 %v1414_v28, 23 }
 0x173   : > { %v1297_v9 = vsel %vm1291_vm3, %v1284_v2, 920167782  ;;  %v1140_v39 = vsel %vm1134_vm8, %v4056_v57, %v1139_v4  ;;  %v1197_v35 = vadd.s32 1, %v1193_v17  ;;  %v1300_v31 = vsel %vm1288_vm11, %v4083_v50, %v4087_v53 }
 0x174   : > { %v1298_v58 = vsel %vm1290_vm2, %v4087_v53, %v1297_v9  ;;  %v1301_v13 = vsel %vm1291_vm3, %v1287_v21, 1326507024  ;;  %v1305_v7 = vand.u32 65535, %v4058_v20  ;;  %v1306_v29 = vshrl.u32 %v4058_v20, 16 }
 0x175   : > { %v1299_v22 = vsel %vm1289_vm15, %v1296_v36, %v1298_v58  ;;  %vm1196_vm4 = vc.u32 %v4096_v55, %v4092_v48  ;;  %v1302_v57 = vsel %vm1290_vm2, %v1284_v2, %v1301_v13  ;;  %v4134_v33 = vmul.f32 %v3989_v18, %v3884_v34 }
 0x176   : > { %v1329_v28 = vand.u32 65535, %v1299_v22  ;;  %v1330_v4 = vshrl.u32 %v1299_v22, 16  ;;  %v4138_v60 = vmul.f32 %v3992_v44, %v3886_v43  ;;  %v5441_v51 = vand.u32 2147483647, %v3884_v34 }
 0x177   : > { %v1303_v16 = vsel %vm1289_vm15, %v1300_v31, %v1302_v57  ;;  %v1194_v14 = vmul.u32 %v4014_v59, %v1140_v39  ;;  %v5442_v54 = vand.u32 2147483647, %v3886_v43  ;;  %v1198_v1 = vsel %vm1196_vm4, %v1197_v35, %v1193_v17 }
 0x178   : > { %v2559_v42 = vadd.f32 -0.055555556, %v5441_v51  ;;  %v1307_v11 = vand.u32 65535, %v1303_v16  ;;  %v1308_v2 = vshrl.u32 %v1303_v16, 16  ;;  %v4145_v6 = vmul.u32 %v1330_v4, %v1305_v7 }
 0x179   : > { %v2560_v18 = vadd.f32 -0.055555556, %v5442_v54  ;;  %v4149_v21 = vmul.u32 %v1329_v28, %v1306_v29  ;;  %v2579_v44 = vadd.s32 4294967169, %v1415_v24  ;;  %v1331_v58 = vmul.u32 %v1329_v28, %v1305_v7 }
 0x17a   : > { %v1309_v36 = vmul.u32 %v1307_v11, %v1305_v7  ;;  %v4151_v34 = vmul.u32 %v1308_v2, %v1305_v7  ;;  %v4153_v9 = vmul.u32 %v1307_v11, %v1306_v29  ;;  %v969_v59 = vsub.f32 1.0, %v3921_v10  ;;  %v996_v10 = vld [vmem:[%s3331_s26 + $0x1d] sm:$0x1] }
 0x17b   : > { %v970_v39 = vsub.f32 1.0, %v3924_v8  ;;  %v971_v31 = vsub.f32 1.0, %v3927_v25  ;;  %v1335_v43 = vshll.u32 %v4145_v6, 16  ;;  %v4159_v17 = vadd.s32 %v1198_v1, %v1194_v14  ;;  %v1002_v8 = vld [vmem:[%s3333_s0 + $0x1d] sm:$0x1] }
 0x17c   : > { %v1313_v24 = vshll.u32 %v4151_v34, 16  ;;  %v1315_v35 = vshll.u32 %v4153_v9, 16  ;;  %v1334_v22 = vmul.u32 %v1330_v4, %v1306_v29  ;;  %v972_v13 = vsub.f32 1.0, %v3932_v47 }
 0x17d   : > { %v1312_v57 = vmul.u32 %v1308_v2, %v1306_v29  ;;  %v1337_v7 = vshll.u32 %v4149_v21, 16  ;;  %v1421_v28 = vadd.s32 1, %v2579_v44  ;;  %vm1339_vm6 = vc.u32 %v1331_v58, %v1335_v43  ;;  %v997_v44 = vld [vmem:[%s3331_s26 + $0x25] sm:$0x1] }
 0x17e   : > { %vm1317_vm5 = vc.u32 %v1309_v36, %v1313_v24  ;;  %v1319_v25 = vadd.s32 %v1313_v24, %v1309_v36  ;;  %v4167_v51 = vadd.s32 %v1335_v43, %v1331_v58  ;;  %v973_v16 = vsub.f32 1.0, %v3935_v32  ;;  %v1003_v36 = vld [vmem:[%s3333_s0 + $0x25] sm:$0x1]  ;;  %v998_v58 = vld [vmem:[%s3331_s26 + $0x2d] sm:$0x1] }
 0x17f   : > { %v974_v4 = vsub.f32 1.0, %v3938_v45  ;;  %v1318_v47 = vsel %vm1317_vm5, 1, %v5434_v46  ;;  %v1340_v29 = vsel %vm1339_vm6, 1, %v5434_v46  ;;  %v975_v14 = vmul.f32 %v3971_v30, %v969_v59  ;;  %v1004_v59 = vld [vmem:[%s3333_s0 + $0x2d] sm:$0x1] }
 0x180   : > { %v1200_v11 = vadd.s32 536870912, %v4159_v17  ;;  %vm4175_vm7 = vc.u32 %v1319_v25, %v1315_v35  ;;  %v1342_v54 = vadd.s32 %v1340_v29, %v1334_v22  ;;  %v976_v1 = vmul.f32 %v3983_v56, %v970_v39 }
 0x181   : > { %v977_v32 = vmul.f32 %v4001_v40, %v971_v31  ;;  %v4183_v45 = vsub.f32 %v996_v10, %v1002_v8  ;;  %vm1343_vm8 = vc.u32 %v4167_v51, %v1337_v7  ;;  %v978_v30 = vmul.f32 %v4010_v52, %v972_v13 }
 0x182   : > { %v1320_v43 = vadd.s32 %v1318_v47, %v1312_v57  ;;  %v1344_v24 = vsel %vm1343_vm8, 1, %v5434_v46  ;;  %vm1422_vm10 = vcmp.gt.s32.totalorder %v1421_v28, 0  ;;  %v979_v35 = vmul.f32 %v2559_v42, %v973_v16 }
 0x183   : > { %v980_v56 = vmul.f32 %v2560_v18, %v974_v4  ;;  %v1322_v40 = vsel %vm4175_vm7, 1, %v5434_v46  ;;  %v1423_v39 = vsel %vm1422_vm10, %v1421_v28, 0  ;;  %v4195_v31 = vsub.f32 %v997_v44, %v1003_v36 }
 0x184   : > { %v4197_v22 = vshrl.u32 %v1200_v11, 30  ;;  %v1336_v10 = vshrl.u32 %v4145_v6, 16  ;;  %v1346_v52 = vadd.s32 %v1344_v24, %v1342_v54  ;;  %v981_v13 = vadd.f32 %v975_v14, %v3996_v27 }
 0x185   : > { %v4201_v57 = vsub.f32 %v998_v58, %v1004_v59  ;;  %v5378_v8 = vand.u32 2147483647, %v3966_v61  ;;  %v1425_v42 = vand.u32 31, %v1423_v39  ;;  %v982_v18 = vadd.f32 %v976_v1, %v4052_v49  ;;  %v5447_v1 = vld [vmem:[#allocation31_spill] sm:$0xff] }
 0x186   : > { %5445 = vst [vmem:[#allocation36_spill] sm:$0xff] %v4197_v22  ;;  %v4206_v25 = vadd.f32 %v977_v32, %v4104_v19  ;;  %v1314_v28 = vshrl.u32 %v4151_v34, 16  ;;  %v1324_v16 = vadd.s32 %v1322_v40, %v1320_v43  ;;  %v4210_v4 = vadd.f32 %v978_v30, %v4108_v62 }
 0x187   : > { %v4213_v6 = vadd.f32 %v979_v35, %v4134_v33  ;;  %v4216_v27 = vadd.f32 %v980_v56, %v4138_v60  ;;  %v5372_v47 = vand.u32 2147483647, %v3428_v63  ;;  %v1202_v29 = vshll.u32 %v4197_v22, 30  ;;  %v5472_v63 = vld [vmem:[#allocation26_spill] sm:$0xff] }
 0x188   : > { %v1272_v49 = vshrl.u32 %v5435_v12, %v4064_v5  ;;  %v1338_v19 = vshrl.u32 %v4149_v21, 16  ;;  %v1347_v34 = vadd.s32 %v1346_v52, %v1336_v10  ;;  %v4224_v14 = vadd.f32 %v981_v13, %v3943_v41 }
 0x189   : > { %v5377_v62 = vand.u32 2147483647, %v3973_v26  ;;  %v1293_v33 = vsel %vm1291_vm3, %v4087_v53, 2102212464  ;;  %v4230_v60 = vsub.s32 32, %v1425_v42  ;;  %v1316_v5 = vshrl.u32 %v4153_v9, 16 }
 0x18a   : > { %5446 = vst [vmem:[#allocation37_spill] sm:$0xff] %v4224_v14  ;;  %v5376_v11 = vand.u32 2147483647, %v3975_v23  ;;  %v5375_v2 = vand.u32 2147483647, %v4183_v45  ;;  %v1325_v54 = vadd.s32 %v1324_v16, %v1314_v28  ;;  %v4236_v32 = vadd.f32 %v982_v18, %v5447_v1 }
 0x18b   : > { %v5374_v41 = vand.u32 2147483647, %v4195_v31  ;;  %v5373_v44 = vand.u32 2147483647, %v4201_v57  ;;  %v1418_v36 = vand.u32 8388607, %v5372_v47  ;;  %v4243_v53 = vsub.s32 %v4159_v17, %v1202_v29 }
 0x18c   : > { %5448 = vst [vmem:[#allocation31_spill] sm:$0xff] %v4236_v32  ;;  %v1292_v30 = vsel %vm1288_vm11, %v1272_v49, %v4081_v15  ;;  %v1294_v9 = vsel %vm1290_vm2, %v4083_v50, %v1293_v33  ;;  %v1348_v58 = vadd.s32 %v1347_v34, %v1338_v19  ;;  %v5449_v59 = vmov 2475754826  }
 0x18d   : > { %v1431_v43 = vshll.u32 %v5449_v59, %v1425_v42  ;;  %v5450_v24 = vmov 2131351028   ;;  %v1435_v17 = vshrl.u32 %v5438_v37, %v4230_v60  ;;  %vm4259_vm12 = vcmp.le.f32.partialorder %v5378_v8, 0.11111111 }
 0x18e   : > { %v1432_v35 = vshrl.u32 %v5450_v24, %v4230_v60  ;;  %v1434_v56 = vshll.u32 %v5450_v24, %v1425_v42  ;;  %v4263_v15 = vadd.s32 %v1325_v54, %v1316_v5  ;;  %v4268_v50 = vadd.s32 %v4167_v51, %v1337_v7 }
 0x18f   : > { %v4270_v10 = vshrl.u32 %v1423_v39, 5  ;;  %vm4274_vm11 = vcmp.le.f32.partialorder %v5377_v62, 0.11111111  ;;  %v1295_v13 = vsel %vm1289_vm15, %v1292_v30, %v1294_v9  ;;  %v1419_v18 = vor.u32 8388608, %v1418_v36 }
 0x190   : > { %v1440_v28 = vshll.u32 %v5439_v3, %v1425_v42  ;;  %v1205_v16 = vsub.s32 0, %v4243_v53  ;;  %v1437_v21 = vshll.u32 %v5438_v37, %v1425_v42  ;;  %v1438_v7 = vshrl.u32 %v5439_v3, %v4230_v60 }
 0x191   : > { %v1441_v51 = vshrl.u32 %v5440_v0, %v4230_v60  ;;  %vm1204_vm13 = vcmp.lt.s32.totalorder %v4243_v53, 0  ;;  %v1352_v39 = vadd.s32 1, %v1348_v58  ;;  %v4288_v29 = vor.u32 %v1432_v35, %v1431_v43 }
 0x192   : > { %v4290_v38 = vor.u32 %v1435_v17, %v1434_v56  ;;  %vm4294_vm15 = vcmp.le.f32.partialorder %v5376_v11, 0.11111111  ;;  %vm1351_vm0 = vc.u32 %v4263_v15, %v4268_v50  ;;  %vm1443_vm1 = vcmp.lt.s32.totalorder %v4270_v10, 1 }
 0x193   : > { %v1442_v19 = vor.u32 %v1441_v51, %v1440_v28  ;;  %v1428_v34 = vshll.u32 %v5435_v12, %v1425_v42  ;;  %v1429_v33 = vshrl.u32 %v5449_v59, %v4230_v60  ;;  %vm1446_vm2 = vcmp.lt.s32.totalorder %v4270_v10, 4 }
 0x194   : > { %v4305_v5 = vshll.u32 %v1419_v18, 8  ;;  %v1206_v54 = vsel %vm1204_vm13, %v1205_v16, %v4243_v53  ;;  %v1349_v1 = vmul.u32 %v4058_v20, %v1295_v13  ;;  %v1439_v36 = vor.u32 %v1438_v7, %v1437_v21  ;;  %v5462_v7 = vld [vmem:[#allocation32_spill] sm:$0xff] }
 0x195   : > { %vm1445_vm3 = vcmp.lt.s32.totalorder %v4270_v10, 3  ;;  %v1353_v30 = vsel %vm1351_vm0, %v1352_v39, %v1348_v58  ;;  %vm1444_vm4 = vcmp.lt.s32.totalorder %v4270_v10, 2  ;;  %v1455_v42 = vsel %vm1443_vm1, %v4288_v29, %v4290_v38 }
 0x196   : > { %v1456_v9 = vsel %vm1446_vm2, %v1442_v19, 1326507024  ;;  %vm4319_vm5 = vcmp.le.f32.partialorder %v5375_v2, 0.11111111  ;;  %vm4325_vm6 = vcmp.le.f32.partialorder %v5374_v41, 0.11111111  ;;  %v1207_v17 = vclz %v1206_v54 }
 0x197   : > { %v5461_v58 = vmov 0.0   ;;  %v4339_v13 = vor.u32 %v1429_v33, %v1428_v34  ;;  %v1457_v18 = vsel %vm1445_vm3, %v1439_v36, %v1456_v9  ;;  %v1460_v28 = vand.u32 65535, %v4305_v5 }
 0x198   : > { %v4332_v35 = vsel %vm4259_vm12, 1.0, %v5461_v58  ;;  %v4337_v56 = vsel %vm4274_vm11, 1.0, %v5461_v58  ;;  %v4344_v16 = vadd.s32 %v1353_v30, %v1349_v1  ;;  %v1452_v40 = vsel %vm1446_vm2, %v1439_v36, 920167782 }
 0x199   : > { %v1458_v21 = vsel %vm1444_vm4, %v1455_v42, %v1457_v18  ;;  %v1461_v52 = vshrl.u32 %v4305_v5, 16  ;;  %v4353_v51 = vadd.f32 %v4206_v25, %v5462_v7  ;;  %vm1022_vm7 = vcmp.le.f32.partialorder %v5373_v44, 0.11111111  ;;  %v5464_v18 = vld [vmem:[#allocation33_spill] sm:$0xff]  ;;  %v5466_v7 = vld [vmem:[#allocation34_spill] sm:$0xff]  ;;  %v5468_v44 = vld [vmem:[#allocation35_spill] sm:$0xff] }
 0x19a   : > { %v1462_v39 = vand.u32 65535, %v1458_v21  ;;  %v1463_v19 = vshrl.u32 %v1458_v21, 16  ;;  %v4360_v34 = vsel %vm4294_vm15, 1.0, %v5461_v58  ;;  %v4365_v33 = vsel %vm4319_vm5, 1.0, %v5461_v58 }
 0x19b   : > { %5463 = vst [vmem:[#allocation32_spill] sm:$0xff] %v4353_v51  ;;  %v4370_v25 = vsel %vm4325_vm6, 1.0, %v5461_v58  ;;  %v1035_v54 = vmul.f32 4.5, %v4332_v35  ;;  %v1036_v1 = vmul.f32 4.5, %v4337_v56  ;;  %v1451_v49 = vsel %vm1443_vm1, %v4339_v13, %v4288_v29 }
 0x19c   : > { %v1453_v36 = vsel %vm1445_vm3, %v4290_v38, %v1452_v40  ;;  %v1465_v30 = vmul.u32 %v1463_v19, %v1460_v28  ;;  %v4382_v42 = vsel %vm1022_vm7, 1.0, %v5461_v58  ;;  %v2574_v9 = vadd.s32 4294967294, %v1207_v17 }
 0x19d   : > { %v1355_v43 = vadd.s32 536870912, %v4344_v16  ;;  %v4385_v20 = vmul.u32 %v1462_v39, %v1461_v52  ;;  %v4389_v21 = vadd.f32 %v4210_v4, %v5464_v18  ;;  %v4393_v47 = vadd.f32 %v4213_v6, %v5466_v7 }
 0x19e   : > { %v4397_v40 = vadd.f32 %v4216_v27, %v5468_v44  ;;  %v1037_v41 = vmul.f32 4.5, %v4360_v34  ;;  %v1038_v17 = vmul.f32 4.5, %v4365_v33  ;;  %v1454_v2 = vsel %vm1444_vm4, %v1451_v49, %v1453_v36 }
 0x19f   : > { %5465 = vst [vmem:[#allocation33_spill] sm:$0xff] %v4389_v21  ;;  %v1464_v11 = vmul.u32 %v1462_v39, %v1460_v28  ;;  %v1468_v62 = vshll.u32 %v1465_v30, 16  ;;  %v1039_v4 = vmul.f32 4.5, %v4370_v25  ;;  %v1040_v18 = vmul.f32 4.5, %v4382_v42 }
 0x1a0   : > { %5467 = vst [vmem:[#allocation34_spill] sm:$0xff] %v4393_v47  ;;  %v1041_v6 = vmul.f32 %v1035_v54, %v3966_v61  ;;  %v1042_v7 = vmul.f32 %v1036_v1, %v3973_v26  ;;  %vm2575_vm8 = vcmp.lt.s32.totalorder %v2574_v9, 0  ;;  %v4407_v27 = vshrl.u32 %v1355_v43, 30 }
 0x1a1   : > { %5469 = vst [vmem:[#allocation35_spill] sm:$0xff] %v4397_v40  ;;  %v1467_v44 = vmul.u32 %v1463_v19, %v1461_v52  ;;  %v1470_v8 = vshll.u32 %v4385_v20, 16  ;;  %v5470_v40 = vand.u32 2147483647, %v3966_v61  ;;  %v5471_v39 = vand.u32 2147483647, %v3973_v26 }
 0x1a2   : > { %v1484_v36 = vand.u32 65535, %v1454_v2  ;;  %v1485_v47 = vshrl.u32 %v1454_v2, 16  ;;  %v1043_v54 = vmul.f32 %v1037_v41, %v3975_v23  ;;  %v1044_v1 = vmul.f32 %v1038_v17, %v4183_v45 }
 0x1a3   : > { %v4412_v58 = vadd.f32 -0.055555556, %v5470_v40  ;;  %v4416_v49 = vadd.f32 -0.055555556, %v5471_v39  ;;  %vm1472_vm10 = vc.u32 %v1464_v11, %v1468_v62  ;;  %v1474_v43 = vadd.s32 %v1468_v62, %v1464_v11 }
 0x1a4   : > { %v1045_v19 = vmul.f32 %v1039_v4, %v4195_v31  ;;  %v1046_v21 = vmul.f32 %v1040_v18, %v4201_v57  ;;  %v4422_v51 = vsel %vm2575_vm8, 0, %v2574_v9  ;;  %v1473_v40 = vsel %vm1472_vm10, 1, %v5434_v46 }
 0x1a5   : > { %v1357_v32 = vshll.u32 %v4407_v27, 30  ;;  %v1475_v39 = vadd.s32 %v1473_v40, %v1467_v44  ;;  %vm1476_vm12 = vc.u32 %v1474_v43, %v1470_v8  ;;  %v1569_v2 = vand.u32 2139095040, %v5472_v63 }
 0x1a6   : > { %v4428_v41 = vmul.f32 %v1041_v6, %v3966_v61  ;;  %v1477_v17 = vsel %vm1476_vm12, 1, %v5434_v46  ;;  %v1486_v62 = vmul.u32 %v1484_v36, %v1460_v28  ;;  %v1487_v11 = vmul.u32 %v1485_v47, %v1460_v28 }
 0x1a7   : > { %v1215_v4 = vsub.s32 4294967266, %v4422_v51  ;;  %v1469_v18 = vshrl.u32 %v1465_v30, 16  ;;  %v1479_v9 = vadd.s32 %v1477_v17, %v1475_v39  ;;  %v1488_v14 = vmul.u32 %v1484_v36, %v1461_v52 }
 0x1a8   : > { %v4433_v22 = vmul.f32 %v1042_v7, %v3973_v26  ;;  %v1427_v8 = vshrl.u32 %v5435_v12, %v4230_v60  ;;  %v1489_v44 = vmul.u32 %v1485_v47, %v1461_v52  ;;  %v1490_v43 = vshll.u32 %v1487_v11, 16 }
 0x1a9   : > { %v1195_v61 = vadd.s32 %v4092_v48, %v4096_v55  ;;  %v4440_v6 = vsub.s32 %v4344_v16, %v1357_v32  ;;  %v1492_v28 = vshll.u32 %v1488_v14, 16  ;;  %v1570_v40 = vshrl.u32 %v1569_v2, 23 }
 0x1aa   : > { %v1211_v30 = vsub.s32 32, %v4422_v51  ;;  %v1448_v26 = vsel %vm1446_vm2, %v4290_v38, 2102212464  ;;  %vm1494_vm11 = vc.u32 %v1486_v62, %v1490_v43  ;;  %v1496_v7 = vadd.s32 %v1490_v43, %v1486_v62 }
 0x1ab   : > { %v1216_v36 = vadd.s32 127, %v1215_v4  ;;  %v1471_v47 = vshrl.u32 %v4385_v20, 16  ;;  %v1480_v60 = vadd.s32 %v1479_v9, %v1469_v18  ;;  %v1495_v52 = vsel %vm1494_vm11, 1, %v5434_v46 }
 0x1ac   : > { %v1447_v48 = vsel %vm1443_vm1, %v1427_v8, %v4339_v13  ;;  %v1491_v55 = vshrl.u32 %v1487_v11, 16  ;;  %v1497_v32 = vadd.s32 %v1495_v52, %v1489_v44  ;;  %vm1498_vm13 = vc.u32 %v1496_v7, %v1492_v28 }
 0x1ad   : > { %v1360_v16 = vsub.s32 0, %v4440_v6  ;;  %v1449_v38 = vsel %vm1445_vm3, %v4288_v29, %v1448_v26  ;;  %v1499_v39 = vsel %vm1498_vm13, 1, %v5434_v46  ;;  %v2582_v2 = vadd.s32 4294967169, %v1570_v40 }
 0x1ae   : > { %v5473_v20 = vand.u32 2147483647, %v3975_v23  ;;  %vm1359_vm15 = vcmp.lt.s32.totalorder %v4440_v6, 0  ;;  %v1493_v62 = vshrl.u32 %v1488_v14, 16  ;;  %v1501_v13 = vadd.s32 %v1499_v39, %v1497_v32 }
 0x1af   : > { %v1212_v11 = vshll.u32 %v4243_v53, %v4422_v51  ;;  %v1213_v4 = vshrl.u32 %v1195_v61, %v1211_v30  ;;  %v4463_v18 = vadd.s32 %v1480_v60, %v1471_v47  ;;  %v4465_v9 = vadd.s32 %v1496_v7, %v1492_v28 }
 0x1b0   : > { %v4458_v17 = vadd.f32 -0.055555556, %v5473_v20  ;;  %v1217_v29 = vshll.u32 %v1216_v36, 23  ;;  %v1450_v8 = vsel %vm1444_vm4, %v1447_v48, %v1449_v38  ;;  %v1502_v44 = vadd.s32 %v1501_v13, %v1491_v55 }
 0x1b1   : > { %v1576_v43 = vadd.s32 1, %v2582_v2  ;;  %v4470_v40 = vmul.f32 %v1043_v54, %v3975_v23  ;;  %v4473_v14 = vmul.f32 %v1044_v1, %v4183_v45  ;;  %v5474_v26 = vand.u32 2147483647, %v4183_v45 }
 0x1b2   : > { %v1361_v51 = vsel %vm1359_vm15, %v1360_v16, %v4440_v6  ;;  %v4479_v61 = vmul.f32 %v1045_v19, %v4195_v31  ;;  %v4482_v28 = vmul.f32 %v1046_v21, %v4201_v57  ;;  %v1503_v10 = vadd.s32 %v1502_v44, %v1493_v62  ;;  %v5477_v44 = vld [vmem:[#allocation23_spill] sm:$0xff] }
 0x1b3   : > { %v2570_v53 = vadd.f32 -0.055555556, %v5474_v26  ;;  %vm1577_vm0 = vcmp.gt.s32.totalorder %v1576_v43, 0  ;;  %v1059_v30 = vsub.f32 1.0, %v4332_v35  ;;  %v1504_v23 = vmul.u32 %v4305_v5, %v1450_v8 }
 0x1b4   : > { %vm1506_vm1 = vc.u32 %v4463_v18, %v4465_v9  ;;  %v1578_v54 = vsel %vm1577_vm0, %v1576_v43, 0  ;;  %v1214_v45 = vor.u32 %v1213_v4, %v1212_v11  ;;  %v1218_v1 = vor.u32 4788187, %v1217_v29 }
 0x1b5   : > { %v1362_v7 = vclz %v1361_v51  ;;  %v1507_v36 = vadd.s32 1, %v1503_v10  ;;  %v5475_v19 = vand.u32 2147483647, %v4195_v31  ;;  %v1060_v21 = vsub.f32 1.0, %v4337_v56 }
 0x1b6   : > { %v5385_v60 = vand.u32 2147483647, %v5472_v63  ;;  %v1580_v52 = vand.u32 31, %v1578_v54  ;;  %v5476_v35 = vand.u32 2147483647, %v4201_v57  ;;  %v1061_v5 = vsub.f32 1.0, %v4360_v34 }
 0x1b7   : > { %v2571_v47 = vadd.f32 -0.055555556, %v5475_v19  ;;  %v1062_v55 = vsub.f32 1.0, %v4365_v33  ;;  %v1508_v32 = vsel %vm1506_vm1, %v1507_v36, %v1503_v10  ;;  %v1063_v16 = vsub.f32 1.0, %v4370_v25 }
 0x1b8   : > { %v2572_v48 = vadd.f32 -0.055555556, %v5476_v35  ;;  %v1064_v38 = vsub.f32 1.0, %v4382_v42  ;;  %v1509_v39 = vadd.s32 %v1508_v32, %v1504_v23  ;;  %v4498_v31 = vsub.s32 32, %v1580_v52 }
 0x1b9   : > { %v1065_v56 = vmul.f32 %v4412_v58, %v1059_v30  ;;  %v1219_v2 = vand.u32 2147483647, %v1218_v1  ;;  %v1221_v20 = vcvt.s32.f32 %v1214_v45  ;;  %v2577_v62 = vadd.s32 4294967294, %v1362_v7 }
 0x1ba   : > { %v1066_v57 = vmul.f32 %v4416_v49, %v1060_v21  ;;  %v1510_v13 = vadd.s32 536870912, %v1509_v39  ;;  %v1573_v34 = vand.u32 8388607, %v5385_v60  ;;  %v4504_v33 = vshrl.u32 %v1578_v54, 5 }
 0x1bb   : > { %v1583_v25 = vshll.u32 %v5435_v12, %v1580_v52  ;;  %v1584_v42 = vshrl.u32 %v5449_v59, %v4498_v31  ;;  %v1586_v11 = vshll.u32 %v5449_v59, %v1580_v52  ;;  %v1587_v58 = vshrl.u32 %v5450_v24, %v4498_v31 }
 0x1bc   : > { %v4512_v4 = vshrl.u32 %v1510_v13, 30  ;;  %v1589_v49 = vshll.u32 %v5450_v24, %v1580_v52  ;;  %v1590_v29 = vshrl.u32 %v5438_v37, %v4498_v31  ;;  %v1592_v8 = vshll.u32 %v5438_v37, %v1580_v52 }
 0x1bd   : > { %vm1103_vm2 = vcmp.lt.s32.totalorder %v5477_v44, 0  ;;  %v1222_v43 = vmul.f32 %v1221_v20, %v1219_v2  ;;  %vm2578_vm3 = vcmp.lt.s32.totalorder %v2577_v62, 0  ;;  %v1593_v26 = vshrl.u32 %v5439_v3, %v4498_v31 }
 0x1be   : > { %v1512_v51 = vshll.u32 %v4512_v4, 30  ;;  %v1574_v10 = vor.u32 8388608, %v1573_v34  ;;  %v1595_v30 = vshll.u32 %v5439_v3, %v1580_v52  ;;  %v1596_v23 = vshrl.u32 %v5440_v0, %v4498_v31 }
 0x1bf   : > { %v1067_v54 = vmul.f32 %v4458_v17, %v1061_v5  ;;  %v5478_v45 = vand.u32 2147483647, %v5477_v44  ;;  %v4532_v7 = vor.u32 %v1584_v42, %v1583_v25  ;;  %v4534_v36 = vor.u32 %v1587_v58, %v1586_v11 }
 0x1c0   : > { %v1594_v19 = vor.u32 %v1593_v26, %v1592_v8  ;;  %v1068_v21 = vmul.f32 %v2570_v53, %v1062_v55  ;;  %v1069_v35 = vmul.f32 %v2571_v47, %v1063_v16  ;;  %v1591_v32 = vor.u32 %v1590_v29, %v1589_v49  ;;  %v5481_v16 = vld [vmem:[#allocation27_spill] sm:$0xff] }
 0x1c1   : > { %vm4528_vm4 = vcmp.le.f32.partialorder %v5478_v45, 0.7853982  ;;  %vm1598_vm5 = vcmp.lt.s32.totalorder %v4504_v33, 1  ;;  %v1223_v52 = vxor.u32 2147483648, %v1222_v43  ;;  %v4538_v2 = vsel %vm2578_vm3, 0, %v2577_v62 }
 0x1c2   : > { %vm1600_vm6 = vcmp.lt.s32.totalorder %v4504_v33, 3  ;;  %vm1601_vm7 = vcmp.lt.s32.totalorder %v4504_v33, 4  ;;  %v4542_v17 = vsub.s32 %v1509_v39, %v1512_v51  ;;  %v1597_v5 = vor.u32 %v1596_v23, %v1595_v30 }
 0x1c3   : > { %vm1599_vm8 = vcmp.lt.s32.totalorder %v4504_v33, 2  ;;  %v4545_v20 = vshll.u32 %v1574_v10, 8  ;;  %v4547_v53 = vmul.f32 %v2572_v48, %v1064_v38  ;;  %v1606_v47 = vsel %vm1598_vm5, %v4532_v7, %v4534_v36 }
 0x1c4   : > { %v1607_v55 = vsel %vm1601_vm7, %v1594_v19, 920167782  ;;  %v1724_v62 = vand.u32 2139095040, %v5481_v16  ;;  %v4557_v39 = vadd.f32 %v1065_v56, %v4428_v41  ;;  %v4560_v13 = vadd.f32 %v1066_v57, %v4433_v22 }
 0x1c5   : > { %v1370_v34 = vsub.s32 4294967266, %v4538_v2  ;;  %v1608_v48 = vsel %vm1600_vm6, %v1591_v32, %v1607_v55  ;;  %v1224_v38 = vsel %vm1103_vm2, %v1223_v52, %v1222_v43  ;;  %v1350_v25 = vadd.s32 %v4268_v50, %v4263_v15 }
 0x1c6   : > { %v1609_v42 = vsel %vm1599_vm8, %v1606_v47, %v1608_v48  ;;  %v1610_v41 = vsel %vm1598_vm5, %v4534_v36, %v1591_v32  ;;  %v1515_v22 = vsub.s32 0, %v4542_v17  ;;  %v1611_v56 = vsel %vm1601_vm7, %v1597_v5, 1326507024 }
 0x1c7   : > { %v1615_v57 = vand.u32 65535, %v4545_v20  ;;  %v1640_v11 = vshrl.u32 %v1609_v42, 16  ;;  %v1366_v58 = vsub.s32 32, %v4538_v2  ;;  %vm1514_vm10 = vcmp.lt.s32.totalorder %v4542_v17, 0 }
 0x1c8   : > { %v1612_v15 = vsel %vm1600_vm6, %v1594_v19, %v1611_v56  ;;  %v1725_v50 = vshrl.u32 %v1724_v62, 23  ;;  %v4582_v49 = vadd.s32 127, %v1370_v34  ;;  %v1616_v8 = vshrl.u32 %v4545_v20, 16 }
 0x1c9   : > { %v1613_v29 = vsel %vm1599_vm8, %v1610_v41, %v1612_v15  ;;  %v1639_v43 = vand.u32 65535, %v1609_v42  ;;  %v4588_v26 = vadd.f32 %v1067_v54, %v4470_v40  ;;  %v4591_v51 = vadd.f32 %v1068_v21, %v4473_v14 }
 0x1ca   : > { %v1617_v10 = vand.u32 65535, %v1613_v29  ;;  %v1618_v30 = vshrl.u32 %v1613_v29, 16  ;;  %v4594_v23 = vadd.f32 %v1069_v35, %v4479_v61  ;;  %v4599_v45 = vsel %vm4528_vm4, %v5477_v44, %v1224_v38 }
 0x1cb   : > { %5482 = vst [vmem:[#allocation26_spill] sm:$0xff] %v4588_v26  ;;  %v1516_v19 = vsel %vm1514_vm10, %v1515_v22, %v4542_v17  ;;  %v1642_v52 = vmul.u32 %v1640_v11, %v1615_v57  ;;  %v1367_v40 = vshll.u32 %v4440_v6, %v4538_v2  ;;  %v1368_v54 = vshrl.u32 %v1350_v25, %v1366_v58 }
 0x1cc   : > { %5483 = vst [vmem:[#allocation23_spill] sm:$0xff] %v4591_v51  ;;  %v1582_v14 = vshrl.u32 %v5435_v12, %v4498_v31  ;;  %v2585_v21 = vadd.s32 4294967169, %v1725_v50  ;;  %v1372_v5 = vshll.u32 %v4582_v49, 23  ;;  %v1619_v61 = vmul.u32 %v1617_v10, %v1615_v57 }
 0x1cd   : > { %5484 = vst [vmem:[#allocation27_spill] sm:$0xff] %v4594_v23  ;;  %v1620_v35 = vmul.u32 %v1618_v30, %v1615_v57  ;;  %v1643_v47 = vmul.u32 %v1639_v43, %v1616_v8  ;;  %v1517_v55 = vclz %v1516_v19  ;;  %v1603_v62 = vsel %vm1601_vm7, %v1591_v32, 2102212464  ;;  %v5485_v19 = vld [vmem:[#allocation36_spill] sm:$0xff] }
 0x1ce   : > { %v1621_v34 = vmul.u32 %v1617_v10, %v1616_v8  ;;  %v1641_v48 = vmul.u32 %v1639_v43, %v1615_v57  ;;  %v1622_v38 = vmul.u32 %v1618_v30, %v1616_v8  ;;  %v1645_v41 = vshll.u32 %v1642_v52, 16 }
 0x1cf   : > { %v1623_v42 = vshll.u32 %v1620_v35, 16  ;;  %v5384_v6 = vand.u32 2147483647, %v5481_v16  ;;  %v1602_v31 = vsel %vm1598_vm5, %v1582_v14, %v4532_v7  ;;  %v1644_v25 = vmul.u32 %v1640_v11, %v1616_v8 }
 0x1d0   : > { %v1625_v2 = vshll.u32 %v1621_v34, 16  ;;  %v1731_v22 = vadd.s32 1, %v2585_v21  ;;  %v1604_v56 = vsel %vm1600_vm6, %v4534_v36, %v1603_v62  ;;  %v1647_v58 = vshll.u32 %v1643_v47, 16 }
 0x1d1   : > { %vm1627_vm12 = vc.u32 %v1619_v61, %v1623_v42  ;;  %v1629_v32 = vadd.s32 %v1623_v42, %v1619_v61  ;;  %v2580_v57 = vadd.s32 4294967294, %v1517_v55  ;;  %v1624_v15 = vshrl.u32 %v1620_v35, 16 }
 0x1d2   : > { %v1628_v50 = vsel %vm1627_vm12, 1, %v5434_v46  ;;  %vm1649_vm11 = vc.u32 %v1641_v48, %v1645_v41  ;;  %v1651_v7 = vadd.s32 %v1645_v41, %v1641_v48  ;;  %v1646_v8 = vshrl.u32 %v1642_v52, 16 }
 0x1d3   : > { %v1630_v49 = vadd.s32 %v1628_v50, %v1622_v38  ;;  %vm1631_vm13 = vc.u32 %v1629_v32, %v1625_v2  ;;  %v1650_v29 = vsel %vm1649_vm11, 1, %v5434_v46  ;;  %vm1732_vm15 = vcmp.gt.s32.totalorder %v1731_v22, 0 }
 0x1d4   : > { %v1632_v11 = vsel %vm1631_vm13, 1, %v5434_v46  ;;  %v1652_v43 = vadd.s32 %v1650_v29, %v1644_v25  ;;  %v1626_v10 = vshrl.u32 %v1621_v34, 16  ;;  %vm1653_vm0 = vc.u32 %v1651_v7, %v1647_v58 }
 0x1d5   : > { %v1634_v36 = vadd.s32 %v1632_v11, %v1630_v49  ;;  %v1733_v30 = vsel %vm1732_vm15, %v1731_v22, 0  ;;  %v1225_v14 = vsub.s32 4, %v5485_v19  ;;  %v1605_v21 = vsel %vm1599_vm8, %v1602_v31, %v1604_v56 }
 0x1d6   : > { %v1654_v61 = vsel %vm1653_vm0, 1, %v5434_v46  ;;  %v1735_v35 = vand.u32 31, %v1733_v30  ;;  %vm2581_vm1 = vcmp.lt.s32.totalorder %v2580_v57, 0  ;;  %v1648_v62 = vshrl.u32 %v1643_v47, 16 }
 0x1d7   : > { %v1635_v55 = vadd.s32 %v1634_v36, %v1624_v15  ;;  %v1656_v48 = vadd.s32 %v1654_v61, %v1652_v43  ;;  %v4625_v52 = vmul.f32 %v4599_v45, %v4599_v45  ;;  %v1369_v34 = vor.u32 %v1368_v54, %v1367_v40  ;;  %v5487_v61 = vld [vmem:[#allocation24_spill] sm:$0xff] }
 0x1d8   : > { %v4627_v38 = vadd.s32 %v1651_v7, %v1647_v58  ;;  %v4629_v42 = vsub.s32 32, %v1735_v35  ;;  %v1373_v41 = vor.u32 4788187, %v1372_v5  ;;  %v1728_v31 = vand.u32 8388607, %v5384_v6 }
 0x1d9   : > { %v4631_v2 = vadd.s32 %v1635_v55, %v1626_v10  ;;  %v1657_v33 = vadd.s32 %v1656_v48, %v1646_v8  ;;  %v4635_v25 = vsel %vm2581_vm1, 0, %v2580_v57  ;;  %v1659_v47 = vmul.u32 %v4545_v20, %v1605_v21 }
 0x1da   : > { %v4638_v22 = vshrl.u32 %v1733_v30, 5  ;;  %v1738_v56 = vshll.u32 %v5435_v12, %v1735_v35  ;;  %v1741_v54 = vshll.u32 %v5449_v59, %v1735_v35  ;;  %v1744_v32 = vshll.u32 %v5450_v24, %v1735_v35 }
 0x1db   : > { %v1658_v40 = vadd.s32 %v1657_v33, %v1648_v62  ;;  %v1747_v5 = vshll.u32 %v5438_v37, %v1735_v35  ;;  %vm1661_vm3 = vc.u32 %v4631_v2, %v4627_v38  ;;  %v1739_v58 = vshrl.u32 %v5449_v59, %v4629_v42 }
 0x1dc   : > { %v1742_v20 = vshrl.u32 %v5450_v24, %v4629_v42  ;;  %v1745_v57 = vshrl.u32 %v5438_v37, %v4629_v42  ;;  %v1748_v50 = vshrl.u32 %v5439_v3, %v4629_v42  ;;  %v1750_v49 = vshll.u32 %v5439_v3, %v1735_v35 }
 0x1dd   : > { %v1662_v15 = vadd.s32 1, %v1658_v40  ;;  %v1751_v29 = vshrl.u32 %v5440_v0, %v4629_v42  ;;  %v4659_v7 = vadd.f32 %v4547_v53, %v4482_v28  ;;  %v1226_v11 = vsel %vm1103_vm2, %v1225_v14, %v5485_v19 }
 0x1de   : > { %v1374_v8 = vand.u32 2147483647, %v1373_v41  ;;  %v1376_v43 = vcvt.s32.f32 %v1369_v34  ;;  %v1230_v10 = vmul.f32 -0.001358992, %v4625_v52  ;;  %v1729_v30 = vor.u32 8388608, %v1728_v31 }
 0x1df   : > { %5486 = vst [vmem:[#allocation36_spill] sm:$0xff] %v4659_v7  ;;  %v1663_v36 = vsel %vm1661_vm3, %v1662_v15, %v1658_v40  ;;  %v1749_v21 = vor.u32 %v1748_v50, %v1747_v5  ;;  %vm1258_vm5 = vcmp.lt.s32.totalorder %v5487_v61, 0  ;;  %v1525_v35 = vsub.s32 4294967266, %v4635_v25 }
 0x1e0   : > { %v1664_v55 = vadd.s32 %v1663_v36, %v1659_v47  ;;  %v4667_v62 = vor.u32 %v1739_v58, %v1738_v56  ;;  %v4669_v28 = vor.u32 %v1742_v20, %v1741_v54  ;;  %v4671_v53 = vor.u32 %v1745_v57, %v1744_v32 }
 0x1e1   : > { %v1752_v48 = vor.u32 %v1751_v29, %v1750_v49  ;;  %vm1753_vm2 = vcmp.lt.s32.totalorder %v4638_v22, 1  ;;  %vm1756_vm6 = vcmp.lt.s32.totalorder %v4638_v22, 4  ;;  %v1237_v19 = vmul.f32 -0.00019511016, %v4625_v52 }
 0x1e2   : > { %v1377_v14 = vmul.f32 %v1376_v43, %v1374_v8  ;;  %v1665_v34 = vadd.s32 536870912, %v1664_v55  ;;  %vm1755_vm7 = vcmp.lt.s32.totalorder %v4638_v22, 3  ;;  %v1228_v41 = vsel %vm4528_vm4, 0, %v1226_v11 }
 0x1e3   : > { %v5488_v33 = vand.u32 2147483647, %v5487_v61  ;;  %v1505_v47 = vadd.s32 %v4465_v9, %v4463_v18  ;;  %v1521_v56 = vsub.s32 32, %v4635_v25  ;;  %v1762_v40 = vsel %vm1756_vm6, %v1749_v21, 920167782 }
 0x1e4   : > { %v1526_v54 = vadd.s32 127, %v1525_v35  ;;  %v4690_v32 = vshrl.u32 %v1665_v34, 30  ;;  %vm1754_vm10 = vcmp.lt.s32.totalorder %v4638_v22, 2  ;;  %v1761_v1 = vsel %vm1753_vm2, %v4667_v62, %v4669_v28 }
 0x1e5   : > { %vm4681_vm8 = vcmp.le.f32.partialorder %v5488_v33, 0.7853982  ;;  %v1231_v5 = vadd.f32 0.041655596, %v1230_v10  ;;  %v1763_v18 = vsel %vm1755_vm7, %v4671_v53, %v1762_v40  ;;  %v1766_v9 = vsel %vm1756_vm6, %v1752_v48, 1326507024 }
 0x1e6   : > { %v4702_v58 = vshll.u32 %v1729_v30, 8  ;;  %v1238_v20 = vadd.f32 0.008332121, %v1237_v19  ;;  %v1378_v57 = vxor.u32 2147483648, %v1377_v14  ;;  %v1667_v15 = vshll.u32 %v4690_v32, 30 }
 0x1e7   : > { %v1765_v50 = vsel %vm1753_vm2, %v4669_v28, %v4671_v53  ;;  %v1522_v49 = vshll.u32 %v4542_v17, %v4635_v25  ;;  %v1523_v29 = vshrl.u32 %v1505_v47, %v1521_v56  ;;  %v1764_v11 = vsel %vm1754_vm10, %v1761_v1, %v1763_v18 }
 0x1e8   : > { %v1767_v8 = vsel %vm1755_vm7, %v1749_v21, %v1766_v9  ;;  %v4715_v43 = vadd.s32 3, %v1228_v41  ;;  %v1380_v10 = vsub.s32 4, %v4407_v27  ;;  %v1527_v36 = vshll.u32 %v1526_v54, 23 }
 0x1e9   : > { %v4718_v30 = vsub.s32 %v1664_v55, %v1667_v15  ;;  %v1232_v35 = vmul.f32 %v1231_v5, %v4625_v52  ;;  %v1768_v48 = vsel %vm1754_vm10, %v1765_v50, %v1767_v8  ;;  %v1770_v17 = vand.u32 65535, %v4702_v58 }
 0x1ea   : > { %v1771_v25 = vshrl.u32 %v4702_v58, 16  ;;  %v1239_v19 = vmul.f32 %v1238_v20, %v4625_v52  ;;  %v1795_v34 = vshrl.u32 %v1764_v11, 16  ;;  %v1379_v55 = vsel %vm1258_vm5, %v1378_v57, %v1377_v14 }
 0x1eb   : > { %vm1669_vm4 = vcmp.lt.s32.totalorder %v4718_v30, 0  ;;  %v1670_v21 = vsub.s32 0, %v4718_v30  ;;  %v4730_v41 = vor.u32 %v1523_v29, %v1522_v49  ;;  %v1772_v33 = vand.u32 65535, %v1768_v48 }
 0x1ec   : > { %v1773_v47 = vshrl.u32 %v1768_v48, 16  ;;  %v4735_v56 = vsel %vm1258_vm5, %v1380_v10, %v4407_v27  ;;  %v1528_v40 = vor.u32 4788187, %v1527_v36  ;;  %v1794_v1 = vand.u32 65535, %v1764_v11 }
 0x1ed   : > { %v1671_v54 = vsel %vm1669_vm4, %v1670_v21, %v4718_v30  ;;  %v1774_v18 = vmul.u32 %v1772_v33, %v1770_v17  ;;  %v1776_v20 = vmul.u32 %v1772_v33, %v1771_v25  ;;  %v1233_v15 = vadd.f32 -0.4999988, %v1232_v35 }
 0x1ee   : > { %v1672_v5 = vclz %v1671_v54  ;;  %v1775_v9 = vmul.u32 %v1773_v47, %v1770_v17  ;;  %v1240_v50 = vadd.f32 -0.16666654, %v1239_v19  ;;  %v4741_v14 = vsel %vm4681_vm8, %v5487_v61, %v1379_v55 }
 0x1ef   : > { %v1797_v57 = vmul.u32 %v1795_v34, %v1770_v17  ;;  %v1531_v49 = vcvt.s32.f32 %v4730_v41  ;;  %v1777_v29 = vmul.u32 %v1773_v47, %v1771_v25  ;;  %v1529_v10 = vand.u32 2147483647, %v1528_v40  ;;  %v5491_v40 = vld [vmem:[#allocation28_spill] sm:$0xff] }
 0x1f0   : > { %v2583_v27 = vadd.s32 4294967294, %v1672_v5  ;;  %v1778_v8 = vshll.u32 %v1775_v9, 16  ;;  %v1660_v11 = vadd.s32 %v4627_v38, %v4631_v2  ;;  %v1737_v36 = vshrl.u32 %v5435_v12, %v4629_v42 }
 0x1f1   : > { %v1780_v35 = vshll.u32 %v1776_v20, 16  ;;  %v1798_v19 = vmul.u32 %v1794_v1, %v1771_v25  ;;  %v1796_v33 = vmul.u32 %v1794_v1, %v1770_v17  ;;  %v1800_v41 = vshll.u32 %v1797_v57, 16 }
 0x1f2   : > { %vm2584_vm12 = vcmp.lt.s32.totalorder %v2583_v27, 0  ;;  %vm1782_vm11 = vc.u32 %v1774_v18, %v1778_v8  ;;  %v1784_v48 = vadd.s32 %v1778_v8, %v1774_v18  ;;  %v1879_v6 = vand.u32 2139095040, %v5491_v40 }
 0x1f3   : > { %v1675_v21 = vsel %vm2584_vm12, 0, %v2583_v27  ;;  %v1783_v55 = vsel %vm1782_vm11, 1, %v5434_v46  ;;  %v1758_v38 = vsel %vm1756_vm6, %v4671_v53, 2102212464  ;;  %v1779_v42 = vshrl.u32 %v1775_v9, 16 }
 0x1f4   : > { %v1676_v54 = vsub.s32 32, %v1675_v21  ;;  %v1680_v47 = vsub.s32 4294967266, %v1675_v21  ;;  %v1785_v5 = vadd.s32 %v1783_v55, %v1777_v29  ;;  %vm1786_vm13 = vc.u32 %v1784_v48, %v1780_v35 }
 0x1f5   : > { %v1799_v2 = vmul.u32 %v1795_v34, %v1771_v25  ;;  %v1781_v18 = vshrl.u32 %v1776_v20, 16  ;;  %v1787_v27 = vsel %vm1786_vm13, 1, %v5434_v46  ;;  %v1802_v8 = vshll.u32 %v1798_v19, 16 }
 0x1f6   : > { %v1681_v60 = vadd.s32 127, %v1680_v47  ;;  %v1789_v7 = vadd.s32 %v1787_v27, %v1785_v5  ;;  %v1801_v17 = vshrl.u32 %v1797_v57, 16  ;;  %vm1804_vm15 = vc.u32 %v1796_v33, %v1800_v41 }
 0x1f7   : > { %v1806_v1 = vadd.s32 %v1800_v41, %v1796_v33  ;;  %v1677_v29 = vshll.u32 %v4718_v30, %v1675_v21  ;;  %v1678_v55 = vshrl.u32 %v1660_v11, %v1676_v54  ;;  %v1805_v23 = vsel %vm1804_vm15, 1, %v5434_v46 }
 0x1f8   : > { %v1880_v51 = vshrl.u32 %v1879_v6, 23  ;;  %v1682_v26 = vshll.u32 %v1681_v60, 23  ;;  %v1790_v53 = vadd.s32 %v1789_v7, %v1779_v42  ;;  %v1807_v9 = vadd.s32 %v1805_v23, %v1799_v2  ;;  %v5493_v42 = vld [vmem:[#allocation25_spill] sm:$0xff] }
 0x1f9   : > { %vm1808_vm0 = vc.u32 %v1806_v1, %v1802_v8  ;;  %v1757_v25 = vsel %vm1753_vm2, %v1737_v36, %v4667_v62  ;;  %v1759_v34 = vsel %vm1755_vm7, %v4669_v28, %v1758_v38  ;;  %v1383_v30 = vsel %vm4681_vm8, 0, %v4735_v56 }
 0x1fa   : > { %v1809_v20 = vsel %vm1808_vm0, 1, %v5434_v46  ;;  %v2588_v57 = vadd.s32 4294967169, %v1880_v51  ;;  %v4768_v60 = vmul.f32 %v4741_v14, %v4741_v14  ;;  %v1803_v23 = vshrl.u32 %v1798_v19, 16 }
 0x1fb   : > { %v1811_v6 = vadd.s32 %v1809_v20, %v1807_v9  ;;  %v1532_v7 = vmul.f32 %v1531_v49, %v1529_v10  ;;  %v4770_v11 = vadd.s32 %v1790_v53, %v1781_v18  ;;  %v4772_v62 = vadd.s32 %v1806_v1, %v1802_v8 }
 0x1fc   : > { %v1886_v36 = vadd.s32 1, %v2588_v57  ;;  %v1679_v28 = vor.u32 %v1678_v55, %v1677_v29  ;;  %v1683_v35 = vor.u32 4788187, %v1682_v26  ;;  %v1760_v51 = vsel %vm1754_vm10, %v1757_v25, %v1759_v34 }
 0x1fd   : > { %v1812_v48 = vadd.s32 %v1811_v6, %v1801_v17  ;;  %v1234_v31 = vmul.f32 %v1233_v15, %v4625_v52  ;;  %v1241_v56 = vmul.f32 %v1240_v50, %v4625_v52  ;;  %v1400_v21 = vadd.s32 3, %v1383_v30  ;;  %v5492_v50 = vld [vmem:[#allocation37_spill] sm:$0xff] }
 0x1fe   : > { %vm1887_vm1 = vcmp.gt.s32.totalorder %v1886_v36, 0  ;;  %v1385_v19 = vmul.f32 -0.001358992, %v4768_v60  ;;  %v1392_v49 = vmul.f32 -0.00019511016, %v4768_v60  ;;  %v1814_v41 = vmul.u32 %v4702_v58, %v1760_v51 }
 0x1ff   : > { %v1813_v10 = vadd.s32 %v1812_v48, %v1803_v23  ;;  %v1888_v33 = vsel %vm1887_vm1, %v1886_v36, 0  ;;  %vm1816_vm3 = vc.u32 %v4770_v11, %v4772_v62  ;;  %v5386_v26 = vand.u32 2147483647, %v5491_v40 }
 0x200   : > { %v1890_v22 = vand.u32 31, %v1888_v33  ;;  %v1533_v54 = vxor.u32 2147483648, %v1532_v7  ;;  %v1684_v15 = vand.u32 2147483647, %v1683_v35  ;;  %v1686_v47 = vcvt.s32.f32 %v1679_v28 }
 0x201   : > { %v1817_v52 = vadd.s32 1, %v1813_v10  ;;  %v4786_v5 = vadd.f32 %v4557_v39, %v5492_v50  ;;  %v4789_v38 = vand.u32 3, %v4715_v43  ;;  %vm1413_vm5 = vcmp.lt.s32.totalorder %v5493_v42, 0 }
 0x202   : > { %v4792_v58 = vsub.s32 32, %v1890_v22  ;;  %v4794_v2 = vadd.f32 1.0, %v1234_v31  ;;  %v4796_v18 = vand.u32 3, %v1400_v21  ;;  %v5494_v27 = vand.u32 2147483647, %v5493_v42 }
 0x203   : > { %v1818_v17 = vsel %vm1816_vm3, %v1817_v52, %v1813_v10  ;;  %v1242_v39 = vadd.f32 1.0, %v1241_v56  ;;  %v1386_v1 = vadd.f32 0.041655596, %v1385_v19  ;;  %v1393_v29 = vadd.f32 0.008332121, %v1392_v49 }
 0x204   : > { %vm4800_vm2 = vcmp.le.f32.partialorder %v5494_v27, 0.7853982  ;;  %v1819_v43 = vadd.s32 %v1818_v17, %v1814_v41  ;;  %v1534_v55 = vsel %vm1413_vm5, %v1533_v54, %v1532_v7  ;;  %v1687_v53 = vmul.f32 %v1686_v47, %v1684_v15 }
 0x205   : > { %v1883_v9 = vand.u32 8388607, %v5386_v26  ;;  %v1902_v25 = vshll.u32 %v5438_v37, %v1890_v22  ;;  %v4809_v20 = vshrl.u32 %v1888_v33, 5  ;;  %v1896_v57 = vshll.u32 %v5449_v59, %v1890_v22 }
 0x206   : > { %v1820_v34 = vadd.s32 536870912, %v1819_v43  ;;  %v1903_v30 = vshrl.u32 %v5439_v3, %v4792_v58  ;;  %v1897_v23 = vshrl.u32 %v5450_v24, %v4792_v58  ;;  %v1899_v6 = vshll.u32 %v5450_v24, %v1890_v22 }
 0x207   : > { %v1900_v7 = vshrl.u32 %v5438_v37, %v4792_v58  ;;  %v1905_v36 = vshll.u32 %v5439_v3, %v1890_v22  ;;  %v1387_v28 = vmul.f32 %v1386_v1, %v4768_v60  ;;  %v1893_v51 = vshll.u32 %v5435_v12, %v1890_v22 }
 0x208   : > { %v4821_v35 = vshrl.u32 %v1820_v34, 30  ;;  %v1894_v48 = vshrl.u32 %v5449_v59, %v4792_v58  ;;  %v4829_v31 = vsel %vm4800_vm2, %v5493_v42, %v1534_v55  ;;  %v1884_v24 = vor.u32 8388608, %v1883_v9 }
 0x209   : > { %v1904_v56 = vor.u32 %v1903_v30, %v1902_v25  ;;  %v1906_v37 = vshrl.u32 %v5440_v0, %v4792_v58  ;;  %v1394_v3 = vmul.f32 %v1393_v29, %v4768_v60  ;;  %vm1568_vm6 = vcmp.lt.s32.totalorder %v5472_v63, 0 }
 0x20a   : > { %v1688_v21 = vxor.u32 2147483648, %v1687_v53  ;;  %v1822_v19 = vshll.u32 %v4821_v35, 30  ;;  %v4836_v49 = vor.u32 %v1897_v23, %v1896_v57  ;;  %v4838_v59 = vor.u32 %v1900_v7, %v1899_v6 }
 0x20b   : > { %v1907_v10 = vor.u32 %v1906_v37, %v1905_v36  ;;  %vm1911_vm7 = vcmp.lt.s32.totalorder %v4809_v20, 4  ;;  %v4843_v33 = vmul.f32 %v4829_v31, %v4829_v31  ;;  %v4845_v0 = vor.u32 %v1894_v48, %v1893_v51 }
 0x20c   : > { %v1823_v41 = vsub.s32 %v1819_v43, %v1822_v19  ;;  %vm1908_vm8 = vcmp.lt.s32.totalorder %v4809_v20, 1  ;;  %v1388_v22 = vadd.f32 -0.4999988, %v1387_v28  ;;  %vm1910_vm10 = vcmp.lt.s32.totalorder %v4809_v20, 3 }
 0x20d   : > { %v1917_v54 = vsel %vm1911_vm7, %v1904_v56, 920167782  ;;  %v4851_v15 = vshll.u32 %v1884_v24, 8  ;;  %v5497_v47 = vand.u32 2147483647, %v5472_v63  ;;  %v1689_v50 = vsel %vm1568_vm6, %v1688_v21, %v1687_v53 }
 0x20e   : > { %vm1824_vm12 = vcmp.lt.s32.totalorder %v1823_v41, 0  ;;  %v1825_v27 = vsub.s32 0, %v1823_v41  ;;  %v1540_v17 = vmul.f32 -0.001358992, %v4843_v33  ;;  %vm1909_vm11 = vcmp.lt.s32.totalorder %v4809_v20, 2 }
 0x20f   : > { %vm4855_vm4 = vcmp.le.f32.partialorder %v5497_v47, 0.7853982  ;;  %v1920_v1 = vsel %vm1908_vm8, %v4836_v49, %v4838_v59  ;;  %v1921_v29 = vsel %vm1911_vm7, %v1907_v10, 1326507024  ;;  %v1547_v43 = vmul.f32 -0.00019511016, %v4843_v33 }
 0x210   : > { %v1826_v55 = vsel %vm1824_vm12, %v1825_v27, %v1823_v41  ;;  %v1916_v53 = vsel %vm1908_vm8, %v4845_v0, %v4836_v49  ;;  %v1918_v9 = vsel %vm1910_vm10, %v4838_v59, %v1917_v54  ;;  %v4880_v25 = vsel %vm4855_vm4, %v5472_v63, %v1689_v50 }
 0x211   : > { %v1827_v34 = vclz %v1826_v55  ;;  %v1922_v57 = vsel %vm1910_vm10, %v1904_v56, %v1921_v29  ;;  %v1925_v30 = vand.u32 65535, %v4851_v15  ;;  %v4886_v23 = vmul.f32 %v1242_v39, %v4599_v45 }
 0x212   : > { %v4888_v6 = vadd.f32 -0.16666654, %v1394_v3  ;;  %v1923_v7 = vsel %vm1909_vm11, %v1920_v1, %v1922_v57  ;;  %v1926_v36 = vshrl.u32 %v4851_v15, 16  ;;  %v1919_v51 = vsel %vm1909_vm11, %v1916_v53, %v1918_v9 }
 0x213   : > { %v2586_v28 = vadd.s32 4294967294, %v1827_v34  ;;  %v1927_v48 = vand.u32 65535, %v1923_v7  ;;  %v1928_v24 = vshrl.u32 %v1923_v7, 16  ;;  %v4896_v56 = vmul.f32 %v1388_v22, %v4768_v60 }
 0x214   : > { %v1548_v45 = vadd.f32 0.008332121, %v1547_v43  ;;  %v4901_v39 = vmul.f32 %v4880_v25, %v4880_v25  ;;  %v4903_v3 = vadd.f32 0.041655596, %v1540_v17  ;;  %v1815_v21 = vadd.s32 %v4772_v62, %v4770_v11 }
 0x215   : > { %vm2587_vm13 = vcmp.lt.s32.totalorder %v2586_v28, 0  ;;  %v1930_v19 = vmul.u32 %v1928_v24, %v1925_v30  ;;  %v1931_v54 = vmul.u32 %v1927_v48, %v1926_v36  ;;  %v1949_v47 = vand.u32 65535, %v1919_v51 }
 0x216   : > { %v1830_v10 = vsel %vm2587_vm13, 0, %v2586_v28  ;;  %v1950_v50 = vshrl.u32 %v1919_v51, 16  ;;  %v1929_v29 = vmul.u32 %v1927_v48, %v1925_v30  ;;  %v1549_v43 = vmul.f32 %v1548_v45, %v4843_v33 }
 0x217   : > { %v1831_v22 = vsub.s32 32, %v1830_v10  ;;  %v1832_v27 = vshll.u32 %v1823_v41, %v1830_v10  ;;  %v1835_v1 = vsub.s32 4294967266, %v1830_v10  ;;  %v1695_v55 = vmul.f32 -0.001358992, %v4901_v39 }
 0x218   : > { %v1702_v17 = vmul.f32 -0.00019511016, %v4901_v39  ;;  %v1892_v53 = vshrl.u32 %v5435_v12, %v4792_v58  ;;  %v1932_v9 = vmul.u32 %v1928_v24, %v1926_v36  ;;  %v1933_v34 = vshll.u32 %v1930_v19, 16 }
 0x219   : > { %v1833_v11 = vshrl.u32 %v1815_v21, %v1831_v22  ;;  %v1836_v62 = vadd.s32 127, %v1835_v1  ;;  %vm1723_vm15 = vcmp.lt.s32.totalorder %v5481_v16, 0  ;;  %v1934_v57 = vshrl.u32 %v1930_v19, 16 }
 0x21a   : > { %v1935_v7 = vshll.u32 %v1931_v54, 16  ;;  %v1951_v41 = vmul.u32 %v1949_v47, %v1925_v30  ;;  %v1952_v28 = vmul.u32 %v1950_v50, %v1925_v30  ;;  %v5500_v51 = vand.u32 2147483647, %v5481_v16 }
 0x21b   : > { %v1834_v45 = vor.u32 %v1833_v11, %v1832_v27  ;;  %v1837_v10 = vshll.u32 %v1836_v62, 23  ;;  %vm1937_vm1 = vc.u32 %v1929_v29, %v1933_v34  ;;  %v1939_v12 = vadd.s32 %v1933_v34, %v1929_v29 }
 0x21c   : > { %vm4915_vm0 = vcmp.le.f32.partialorder %v5500_v51, 0.7853982  ;;  %v1938_v58 = vsel %vm1937_vm1, 1, %v5434_v46  ;;  %v1953_v24 = vmul.u32 %v1949_v47, %v1926_v36  ;;  %v1954_v21 = vmul.u32 %v1950_v50, %v1926_v36 }
 0x21d   : > { %v1955_v22 = vshll.u32 %v1952_v28, 16  ;;  %v1838_v1 = vor.u32 4788187, %v1837_v10  ;;  %v1841_v19 = vcvt.s32.f32 %v1834_v45  ;;  %v1940_v26 = vadd.s32 %v1938_v58, %v1932_v9 }
 0x21e   : > { %vm1941_vm3 = vc.u32 %v1939_v12, %v1935_v7  ;;  %v1703_v30 = vadd.f32 0.008332121, %v1702_v17  ;;  %v1913_v51 = vsel %vm1911_vm7, %v4838_v59, 2102212464  ;;  %v1957_v27 = vshll.u32 %v1953_v24, 16 }
 0x21f   : > { %v1942_v37 = vsel %vm1941_vm3, 1, %v5434_v46  ;;  %v1839_v11 = vand.u32 2147483647, %v1838_v1  ;;  %vm1959_vm12 = vc.u32 %v1951_v41, %v1955_v22  ;;  %v1961_v29 = vadd.s32 %v1955_v22, %v1951_v41 }
 0x220   : > { %v1944_v62 = vadd.s32 %v1942_v37, %v1940_v26  ;;  %v1690_v47 = vsub.s32 4, %v4690_v32  ;;  %v1936_v36 = vshrl.u32 %v1931_v54, 16  ;;  %v1956_v50 = vshrl.u32 %v1952_v28, 16 }
 0x221   : > { %v1960_v34 = vsel %vm1959_vm12, 1, %v5434_v46  ;;  %v1842_v9 = vmul.f32 %v1841_v19, %v1839_v11  ;;  %vm1963_vm13 = vc.u32 %v1961_v29, %v1957_v27  ;;  %v1696_v45 = vadd.f32 0.041655596, %v1695_v55 }
 0x222   : > { %v1945_v7 = vadd.s32 %v1944_v62, %v1934_v57  ;;  %v1962_v17 = vadd.s32 %v1960_v34, %v1954_v21  ;;  %v1912_v59 = vsel %vm1908_vm8, %v1892_v53, %v4845_v0  ;;  %v1914_v26 = vsel %vm1910_vm10, %v4836_v49, %v1913_v51 }
 0x223   : > { %v1964_v37 = vsel %vm1963_vm13, 1, %v5434_v46  ;;  %v1704_v54 = vmul.f32 %v1703_v30, %v4901_v39  ;;  %v1843_v41 = vxor.u32 2147483648, %v1842_v9  ;;  %v1958_v28 = vshrl.u32 %v1953_v24, 16 }
 0x224   : > { %v1966_v10 = vadd.s32 %v1964_v37, %v1962_v17  ;;  %v1396_v57 = vmul.f32 %v4888_v6, %v4768_v60  ;;  %v1542_v55 = vmul.f32 %v4903_v3, %v4843_v33  ;;  %v4938_v12 = vadd.s32 %v1945_v7, %v1936_v36 }
 0x225   : > { %v4940_v0 = vadd.s32 %v1961_v29, %v1957_v27  ;;  %v5503_v49 = vsub.s32 4, %v4512_v4  ;;  %v1844_v53 = vsel %vm1723_vm15, %v1843_v41, %v1842_v9  ;;  %v1915_v58 = vsel %vm1909_vm11, %v1912_v59, %v1914_v26 }
 0x226   : > { %v1967_v60 = vadd.s32 %v1966_v10, %v1956_v50  ;;  %v1550_v6 = vadd.f32 -0.16666654, %v1549_v43  ;;  %v1697_v3 = vmul.f32 %v1696_v45, %v4901_v39  ;;  %v1845_v24 = vsub.s32 4, %v4821_v35 }
 0x227   : > { %v1536_v46 = vsel %vm1413_vm5, %v5503_v49, %v4512_v4  ;;  %v4956_v21 = vsel %vm4915_vm0, %v5481_v16, %v1844_v53  ;;  %vm1251_vm7 = vcmp.eq.s32.totalorder %v4789_v38, 2  ;;  %v1691_v4 = vsel %vm1568_vm6, %v1690_v47, %v4690_v32 }
 0x228   : > { %v1705_v22 = vadd.f32 -0.16666654, %v1704_v54  ;;  %v1849_v20 = vmul.f32 %v4956_v21, %v4956_v21  ;;  %v1968_v43 = vadd.s32 %v1967_v60, %v1958_v28  ;;  %v1397_v1 = vadd.f32 1.0, %v1396_v57 }
 0x229   : > { %v1543_v19 = vadd.f32 -0.4999988, %v1542_v55  ;;  %v1969_v30 = vmul.u32 %v4851_v15, %v1915_v58  ;;  %vm1971_vm5 = vc.u32 %v4938_v12, %v4940_v0  ;;  %vm1248_vm8 = vcmp.eq.s32.totalorder %v4789_v38, 0 }
 0x22a   : > { %vm1406_vm10 = vcmp.eq.s32.totalorder %v4796_v18, 2  ;;  %v1538_v51 = vsel %vm4800_vm2, 0, %v1536_v46  ;;  %v1850_v32 = vmul.f32 -0.001358992, %v1849_v20  ;;  %v1857_v27 = vmul.f32 -0.00019511016, %v1849_v20 }
 0x22b   : > { %v1972_v11 = vadd.s32 1, %v1968_v43  ;;  %vm1403_vm6 = vcmp.eq.s32.totalorder %v4796_v18, 0  ;;  %v1551_v62 = vmul.f32 %v1550_v6, %v4843_v33  ;;  %v1693_v15 = vsel %vm4855_vm4, 0, %v1691_v4 }
 0x22c   : > { %v1698_v29 = vadd.f32 -0.4999988, %v1697_v3  ;;  %v1846_v47 = vsel %vm1723_vm15, %v1845_v24, %v4821_v35  ;;  %v1706_v36 = vmul.f32 %v1705_v22, %v4901_v39  ;;  %v1851_v50 = vadd.f32 0.041655596, %v1850_v32 }
 0x22d   : > { %v1858_v8 = vadd.f32 0.008332121, %v1857_v27  ;;  %v1973_v34 = vsel %vm1971_vm5, %v1972_v11, %v1968_v43  ;;  %v1252_v9 = vxor.u32 2147483648, %v4794_v2  ;;  %v1390_v7 = vadd.f32 1.0, %v4896_v56 }
 0x22e   : > { %v1398_v17 = vmul.f32 %v1397_v1, %v4741_v14  ;;  %v1974_v45 = vadd.s32 %v1973_v34, %v1969_v30  ;;  %v1544_v52 = vmul.f32 %v1543_v19, %v4843_v33  ;;  %v1555_v59 = vadd.s32 3, %v1538_v51 }
 0x22f   : > { %v1852_v26 = vmul.f32 %v1851_v50, %v1849_v20  ;;  %v1859_v37 = vmul.f32 %v1858_v8, %v1849_v20  ;;  %vm1247_vm2 = vcmp.lt.s32.totalorder %v4789_v38, 2  ;;  %v1552_v35 = vadd.f32 1.0, %v1551_v62 }
 0x230   : > { %v1710_v54 = vadd.s32 3, %v1693_v15  ;;  %v1848_v41 = vsel %vm4915_vm0, 0, %v1846_v47  ;;  %v1975_v28 = vadd.s32 536870912, %v1974_v45  ;;  %vm1402_vm4 = vcmp.lt.s32.totalorder %v4796_v18, 2 }
 0x231   : > { %v1699_v56 = vmul.f32 %v1698_v29, %v4901_v39  ;;  %v1707_v10 = vadd.f32 1.0, %v1706_v36  ;;  %v1853_v14 = vadd.f32 -0.4999988, %v1852_v26  ;;  %v1860_v57 = vadd.f32 -0.16666654, %v1859_v37 }
 0x232   : > { %v1249_v33 = vxor.u32 2147483648, %v4886_v23  ;;  %v1404_v55 = vxor.u32 2147483648, %v1398_v17  ;;  %v1407_v49 = vxor.u32 2147483648, %v1390_v7  ;;  %v4989_v46 = vshrl.u32 %v1975_v28, 30 }
 0x233   : > { %v1556_v53 = vand.u32 3, %v1555_v59  ;;  %v1854_v58 = vmul.f32 %v1853_v14, %v1849_v20  ;;  %v1861_v60 = vmul.f32 %v1860_v57, %v1849_v20  ;;  %v1865_v6 = vadd.s32 3, %v1848_v41  ;;  %v5507_v57 = vld [vmem:[#allocation31_spill] sm:$0xff] }
 0x234   : > { %v1253_v48 = vsel %vm1251_vm7, %v1252_v9, %v4886_v23  ;;  %v1545_v3 = vadd.f32 1.0, %v1544_v52  ;;  %v1553_v39 = vmul.f32 %v1552_v35, %v4829_v31  ;;  %v1977_v24 = vshll.u32 %v4989_v46, 30 }
 0x235   : > { %v1700_v4 = vadd.f32 1.0, %v1699_v56  ;;  %v1708_v22 = vmul.f32 %v1707_v10, %v4880_v25  ;;  %v1711_v43 = vand.u32 3, %v1710_v54  ;;  %v1862_v1 = vadd.f32 1.0, %v1861_v60  ;;  %v5510_v60 = vld [vmem:[#allocation33_spill] sm:$0xff] }
 0x236   : > { %v1250_v19 = vsel %vm1248_vm8, %v4794_v2, %v1249_v33  ;;  %v1408_v20 = vsel %vm1406_vm10, %v1407_v49, %v1398_v17  ;;  %v1855_v30 = vadd.f32 1.0, %v1854_v58  ;;  %v5002_v51 = vsub.s32 %v1974_v45, %v1977_v24  ;;  %v5508_v49 = vld [vmem:[#allocation32_spill] sm:$0xff] }
 0x237   : > { %vm1244_vm11 = vweird.f32 %v5477_v44  ;;  %vm1399_vm15 = vweird.f32 %v5487_v61  ;;  %v1405_v31 = vsel %vm1403_vm6, %v1390_v7, %v1404_v55  ;;  %vm1558_vm0 = vcmp.eq.s32.totalorder %v1556_v53, 0  ;;  %v5052_v55 = vld [vmem:[%s446_s29] sm:$0x1]  ;;  %v5074_v24 = vld [vmem:[%s446_s29 + $0x3] sm:$0x1] }
 0x238   : > { %v1863_v25 = vmul.f32 %v1862_v1, %v4956_v21  ;;  %v1866_v23 = vand.u32 3, %v1865_v6  ;;  %v1559_v32 = vxor.u32 2147483648, %v1553_v39  ;;  %v1562_v2 = vxor.u32 2147483648, %v1545_v3  ;;  %v5511_v6 = vld [vmem:[#allocation23_spill] sm:$0xff] }
 0x239   : > { %vm1979_vm1 = vcmp.lt.s32.totalorder %v5002_v51, 0  ;;  %v1980_v27 = vsub.s32 0, %v5002_v51  ;;  %vm1561_vm3 = vcmp.eq.s32.totalorder %v1556_v53, 2  ;;  %vm1713_vm12 = vcmp.eq.s32.totalorder %v1711_v43, 0 }
 0x23a   : > { %v1714_v11 = vxor.u32 2147483648, %v1708_v22  ;;  %v1717_v62 = vxor.u32 2147483648, %v1700_v4  ;;  %vm1716_vm13 = vcmp.eq.s32.totalorder %v1711_v43, 2  ;;  %v1869_v15 = vxor.u32 2147483648, %v1863_v25 }
 0x23b   : > { %v1872_v29 = vxor.u32 2147483648, %v1855_v30  ;;  %v1981_v47 = vsel %vm1979_vm1, %v1980_v27, %v5002_v51  ;;  %v1254_v21 = vsel %vm1247_vm2, %v1250_v19, %v1253_v48  ;;  %vm1868_vm7 = vcmp.eq.s32.totalorder %v1866_v23, 0  ;;  %v5080_v19 = vld [vmem:[%s446_s29 + $0x4] sm:$0x1] }
 0x23c   : > { %vm1871_vm5 = vcmp.eq.s32.totalorder %v1866_v23, 2  ;;  %v1982_v36 = vclz %v1981_v47  ;;  %v1409_v50 = vsel %vm1402_vm4, %v1405_v31, %v1408_v20  ;;  %vm1557_vm8 = vcmp.lt.s32.totalorder %v1556_v53, 2  ;;  %v5509_v53 = vld [vmem:[#allocation26_spill] sm:$0xff]  ;;  %v5104_v47 = vld [vmem:[%s446_s29 + $0x9] sm:$0x1] }
 0x23d   : > { %v1560_v8 = vsel %vm1558_vm0, %v1545_v3, %v1559_v32  ;;  %v1563_v34 = vsel %vm1561_vm3, %v1562_v2, %v1553_v39  ;;  %vm1712_vm10 = vcmp.lt.s32.totalorder %v1711_v43, 2  ;;  %v1715_v9 = vsel %vm1713_vm12, %v1700_v4, %v1714_v11  ;;  %v5072_v39 = vld [vmem:[%s446_s29 + $0x2] sm:$0x1]  ;;  %v5512_v20 = vld [vmem:[#allocation34_spill] sm:$0xff] }
 0x23e   : > { %v1718_v7 = vsel %vm1716_vm13, %v1717_v62, %v1708_v22  ;;  %v2589_v17 = vadd.s32 4294967294, %v1982_v36  ;;  %vm1554_vm6 = vweird.f32 %v5493_v42  ;;  %vm1867_vm2 = vcmp.lt.s32.totalorder %v1866_v23, 2  ;;  %v5054_v42 = vld [vmem:[%s446_s29 + $0x1] sm:$0x1]  ;;  %v5092_v23 = vld [vmem:[%s446_s29 + $0x7] sm:$0x1] }
 0x23f   : > { %v1870_v38 = vsel %vm1868_vm7, %v1855_v30, %v1869_v15  ;;  %v1873_v45 = vsel %vm1871_vm5, %v1872_v29, %v1863_v25  ;;  %v1564_v52 = vsel %vm1557_vm8, %v1560_v8, %v1563_v34  ;;  %vm1709_vm1 = vweird.f32 %v5472_v63  ;;  %v5082_v63 = vld [vmem:[%s446_s29 + $0x5] sm:$0x1]  ;;  %v5090_v25 = vld [vmem:[%s446_s29 + $0x6] sm:$0x1]  ;;  %v5098_v62 = vld [vmem:[%s446_s29 + $0x8] sm:$0x1] }
 0x240   : > { %v1970_v18 = vadd.s32 %v4940_v0, %v4938_v12  ;;  %vm2590_vm4 = vcmp.lt.s32.totalorder %v2589_v17, 0  ;;  %v1719_v59 = vsel %vm1712_vm10, %v1715_v9, %v1718_v7  ;;  %vm1864_vm0 = vweird.f32 %v5481_v16  ;;  %v5513_v16 = vld [vmem:[#allocation27_spill] sm:$0xff]  ;;  %v5100_v15 = vld [vmem:[%s446_s29 + $0xa] sm:$0x1]  ;;  %v2738_v9 = vld [vmem:[%s3333_s0 + $0xe] sm:$0x1] }
 0x241   : > { %v1985_v26 = vsel %vm2590_vm4, 0, %v2589_v17  ;;  %v2000_v37 = vsub.s32 4, %v4989_v46  ;;  %v1874_v35 = vsel %vm1867_vm2, %v1870_v38, %v1873_v45  ;;  %v5029_v56 = vsel %vm1244_vm11, nan, %v1254_v21  ;;  %v5106_v21 = vld [vmem:[%s446_s29 + $0xb] sm:$0x1] }
 0x242   : > { %v1986_v54 = vsub.s32 32, %v1985_v26  ;;  %v1987_v41 = vshll.u32 %v5002_v51, %v1985_v26  ;;  %v1990_v28 = vsub.s32 4294967266, %v1985_v26  ;;  %v5033_v12 = vsel %vm1399_vm15, nan, %v1409_v50  ;;  %v2737_v36 = vld [vmem:[%s3333_s0 + $0x6] sm:$0x1] }
 0x243   : > { %v5037_v0 = vsel %vm1554_vm6, nan, %v1564_v52  ;;  %v5504_v10 = vand.u32 2147483647, %v5491_v40  ;;  %v5047_v33 = vadd.f32 %v4560_v13, %v5507_v57  ;;  %vm1878_vm11 = vcmp.lt.s32.totalorder %v5491_v40, 0  ;;  %v2739_v7 = vld [vmem:[%s3333_s0 + $0x16] sm:$0x1] }
 0x244   : > { %v1988_v44 = vshrl.u32 %v1970_v18, %v1986_v54  ;;  %v1991_v61 = vadd.s32 127, %v1990_v28  ;;  %v5058_v58 = vadd.f32 %v5509_v53, %v5508_v49  ;;  %v5062_v48 = vadd.f32 %v5511_v6, %v5510_v60  ;;  %v2740_v17 = vld [vmem:[%s3333_s0 + $0x1e] sm:$0x1] }
 0x245   : > { %vm5041_vm3 = vcmp.le.f32.partialorder %v5504_v10, 0.7853982  ;;  %v5066_v13 = vsel %vm1709_vm1, nan, %v1719_v59  ;;  %v5070_v3 = vsel %vm1864_vm0, nan, %v1874_v35  ;;  %v2001_v43 = vsel %vm1878_vm11, %v2000_v37, %v4989_v46 }
 0x246   : > { %v1989_v4 = vor.u32 %v1988_v44, %v1987_v41  ;;  %v1992_v22 = vshll.u32 %v1991_v61, 23  ;;  %v2031_v1 = vand.u32 2147483647, %v5029_v56  ;;  %v5086_v30 = vadd.f32 %v5513_v16, %v5512_v20  ;;  %v2741_v20 = vld [vmem:[%s3333_s0 + $0x26] sm:$0x1] }
 0x247   : > { %v2032_v51 = vand.u32 2147483647, %v5033_v12  ;;  %v2033_v31 = vand.u32 2147483647, %v5037_v0  ;;  %v2169_v46 = vsub.f32 %v5052_v55, %v5054_v42  ;;  %v2034_v27 = vand.u32 2147483647, %v5066_v13 }
 0x248   : > { %v1993_v32 = vor.u32 4788187, %v1992_v22  ;;  %v1996_v2 = vcvt.s32.f32 %v1989_v4  ;;  %v2035_v11 = vand.u32 2147483647, %v5070_v3  ;;  %v2003_v29 = vsel %vm5041_vm3, 0, %v2001_v43 }
 0x249   : > { %vm2163_vm15 = vcmp.gt.f32.partialorder %v2737_v36, 0.0  ;;  %v2170_v50 = vsub.f32 %v5072_v39, %v5074_v24  ;;  %v2175_v8 = vsub.f32 %v5054_v42, %v5052_v55  ;;  %vm2037_vm12 = vcmp.le.f32.partialorder %v2031_v1, 0.11111111  ;;  %v2742_v16 = vld [vmem:[%s3333_s0 + $0x2e] sm:$0x1] }
 0x24a   : > { %v1994_v34 = vand.u32 2147483647, %v1993_v32  ;;  %vm2164_vm13 = vcmp.gt.f32.partialorder %v2738_v9, 0.0  ;;  %vm2165_vm7 = vcmp.gt.f32.partialorder %v2739_v7, 0.0  ;;  %vm2038_vm5 = vcmp.le.f32.partialorder %v2032_v51, 0.11111111 }
 0x24b   : > { %vm2039_vm8 = vcmp.le.f32.partialorder %v2033_v31, 0.11111111  ;;  %vm2166_vm10 = vcmp.gt.f32.partialorder %v2740_v17, 0.0  ;;  %v2171_v38 = vsub.f32 %v5080_v19, %v5082_v63  ;;  %vm2040_vm6 = vcmp.le.f32.partialorder %v2034_v27, 0.11111111 }
 0x24c   : > { %v1997_v45 = vmul.f32 %v1996_v2, %v1994_v34  ;;  %vm2041_vm2 = vcmp.le.f32.partialorder %v2035_v11, 0.11111111  ;;  %v2172_v52 = vsub.f32 %v5090_v25, %v5092_v23  ;;  %v5514_v18 = vmov 0.0  }
 0x24d   : > { %v5131_v59 = vsel %vm2037_vm12, 1.0, %v5514_v18  ;;  %v2173_v26 = vsub.f32 %v5098_v62, %v5104_v47  ;;  %v2174_v37 = vsub.f32 %v5100_v15, %v5106_v21  ;;  %v2176_v35 = vsub.f32 %v5074_v24, %v5072_v39 }
 0x24e   : > { %v1998_v54 = vxor.u32 2147483648, %v1997_v45  ;;  %v2020_v41 = vadd.s32 3, %v2003_v29  ;;  %v2592_v28 = vsel %vm2038_vm5, 1.0, %v5514_v18  ;;  %v2593_v10 = vsel %vm2039_vm8, 1.0, %v5514_v18 }
 0x24f   : > { %v2594_v57 = vsel %vm2040_vm6, 1.0, %v5514_v18  ;;  %v2595_v44 = vsel %vm2041_vm2, 1.0, %v5514_v18  ;;  %v2177_v61 = vsub.f32 %v5082_v63, %v5080_v19  ;;  %v2178_v55 = vsub.f32 %v5092_v23, %v5090_v25 }
 0x250   : > { %v1999_v42 = vsel %vm1878_vm11, %v1998_v54, %v1997_v45  ;;  %v2055_v49 = vmul.f32 4.5, %v5131_v59  ;;  %v2179_v53 = vsub.f32 %v5104_v47, %v5098_v62  ;;  %v2180_v60 = vsub.f32 %v5106_v21, %v5100_v15  ;;  %v5515_v47 = vld [vmem:[#allocation30_spill] sm:$0xff] }
 0x251   : > { %v5157_v6 = vsel %vm5041_vm3, %v5491_v40, %v1999_v42  ;;  %v2056_v39 = vmul.f32 4.5, %v2592_v28  ;;  %v2057_v24 = vmul.f32 4.5, %v2593_v10  ;;  %v5160_v4 = vsel %vm2163_vm15, %v2169_v46, %v2175_v8 }
 0x252   : > { %v2004_v22 = vmul.f32 %v5157_v6, %v5157_v6  ;;  %v5164_v43 = vand.u32 3, %v2020_v41  ;;  %v2058_v19 = vmul.f32 4.5, %v2594_v57  ;;  %v2059_v63 = vmul.f32 4.5, %v2595_v44 }
 0x253   : > { %vm2167_vm1 = vcmp.gt.f32.partialorder %v2741_v20, 0.0  ;;  %vm2168_vm4 = vcmp.gt.f32.partialorder %v2742_v16, 0.0  ;;  %v2597_v14 = vadd.f32 -0.055555556, %v2031_v1  ;;  %v5171_v25 = vsel %vm2164_vm13, %v2170_v50, %v2176_v35 }
 0x254   : > { %v5174_v23 = vsel %vm2165_vm7, %v2171_v38, %v2177_v61  ;;  %v5177_v46 = vsel %vm2166_vm10, %v2172_v52, %v2178_v55  ;;  %v2005_v32 = vmul.f32 -0.001358992, %v2004_v22  ;;  %v2012_v2 = vmul.f32 -0.00019511016, %v2004_v22 }
 0x255   : > { %v2061_v29 = vmul.f32 %v2055_v49, %v5029_v56  ;;  %v2079_v36 = vsub.f32 1.0, %v5131_v59  ;;  %v2062_v8 = vmul.f32 %v2056_v39, %v5033_v12  ;;  %v2063_v34 = vmul.f32 %v2057_v24, %v5037_v0 }
 0x256   : > { %v2598_v1 = vadd.f32 -0.055555556, %v2032_v51  ;;  %v2080_v50 = vsub.f32 1.0, %v2592_v28  ;;  %v2006_v9 = vadd.f32 0.041655596, %v2005_v32  ;;  %v2064_v17 = vmul.f32 %v2058_v19, %v5066_v13 }
 0x257   : > { %v2013_v7 = vadd.f32 0.008332121, %v2012_v2  ;;  %v2065_v38 = vmul.f32 %v2059_v63, %v5070_v3  ;;  %v2599_v45 = vadd.f32 -0.055555556, %v2033_v31  ;;  %v2600_v52 = vadd.f32 -0.055555556, %v2034_v27 }
 0x258   : > { %v2081_v59 = vsub.f32 1.0, %v2593_v10  ;;  %v2082_v35 = vsub.f32 1.0, %v2594_v57  ;;  %v2007_v54 = vmul.f32 %v2006_v9, %v2004_v22  ;;  %v2601_v51 = vadd.f32 -0.055555556, %v2035_v11 }
 0x259   : > { %v2014_v41 = vmul.f32 %v2013_v7, %v2004_v22  ;;  %v2083_v28 = vsub.f32 1.0, %v2595_v44  ;;  %vm2023_vm0 = vcmp.eq.s32.totalorder %v5164_v43, 0  ;;  %vm2026_vm3 = vcmp.eq.s32.totalorder %v5164_v43, 2 }
 0x25a   : > { %v2068_v61 = vmul.f32 %v2062_v8, %v5033_v12  ;;  %v2086_v55 = vmul.f32 %v2598_v1, %v2080_v50  ;;  %v2008_v42 = vadd.f32 -0.4999988, %v2007_v54  ;;  %vm2022_vm11 = vcmp.lt.s32.totalorder %v5164_v43, 2 }
 0x25b   : > { %v2015_v31 = vadd.f32 -0.16666654, %v2014_v41  ;;  %v2067_v27 = vmul.f32 %v2061_v29, %v5029_v56  ;;  %v2069_v10 = vmul.f32 %v2063_v34, %v5037_v0  ;;  %vm2019_vm15 = vweird.f32 %v5491_v40 }
 0x25c   : > { %v2070_v11 = vmul.f32 %v2064_v17, %v5066_v13  ;;  %v2085_v57 = vmul.f32 %v2597_v14, %v2079_v36  ;;  %v2087_v44 = vmul.f32 %v2599_v45, %v2081_v59  ;;  %v2088_v49 = vmul.f32 %v2600_v52, %v2082_v35 }
 0x25d   : > { %v2009_v39 = vmul.f32 %v2008_v42, %v2004_v22  ;;  %v2016_v24 = vmul.f32 %v2015_v31, %v2004_v22  ;;  %v2071_v12 = vmul.f32 %v2065_v38, %v5070_v3  ;;  %v2089_v19 = vmul.f32 %v2601_v51, %v2083_v28 }
 0x25e   : > { %v2092_v63 = vadd.f32 %v2086_v55, %v2068_v61  ;;  %v5206_v56 = vsel %vm2167_vm1, %v2173_v26, %v2179_v53  ;;  %v5212_v0 = vsel %vm2168_vm4, %v2174_v37, %v2180_v60  ;;  %v2193_v13 = vand.u32 2147483647, %v5160_v4 }
 0x25f   : > { %v2010_v14 = vadd.f32 1.0, %v2009_v39  ;;  %v2017_v22 = vadd.f32 1.0, %v2016_v24  ;;  %v2194_v3 = vand.u32 2147483647, %v5171_v25  ;;  %v2195_v32 = vand.u32 2147483647, %v5174_v23 }
 0x260   : > { %v2091_v2 = vadd.f32 %v2085_v57, %v2067_v27  ;;  %v2093_v29 = vadd.f32 %v2087_v44, %v2069_v10  ;;  %v2094_v62 = vadd.f32 %v2088_v49, %v2070_v11  ;;  %v2104_v26 = vrot.slane %v5515_v47, 1 }
 0x261   : > { %v2018_v53 = vmul.f32 %v2017_v22, %v5157_v6  ;;  %v2027_v20 = vxor.u32 2147483648, %v2010_v14  ;;  %v2095_v15 = vadd.f32 %v2089_v19, %v2071_v12  ;;  %v2105_v21 = vrot.slane %v5515_v47, 2  ;;  %v5517_v22 = vld [vmem:[#allocation36_spill] sm:$0xff] }
 0x262   : > { %v2098_v37 = vadd.f32 %v2092_v63, %v5047_v33  ;;  %v2196_v60 = vand.u32 2147483647, %v5177_v46  ;;  %v2197_v16 = vand.u32 2147483647, %v5206_v56  ;;  %v2198_v36 = vand.u32 2147483647, %v5212_v0 }
 0x263   : > { %v2024_v8 = vxor.u32 2147483648, %v2018_v53  ;;  %v2028_v34 = vsel %vm2026_vm3, %v2027_v20, %v2018_v53  ;;  %v2199_v1 = vsub.f32 0.0, %v2193_v13  ;;  %v2200_v50 = vsub.f32 0.0, %v2194_v3 }
 0x264   : > { %v2201_v9 = vsub.f32 0.0, %v2195_v32  ;;  %v2202_v6 = vsub.f32 0.0, %v2196_v60  ;;  %v2203_v7 = vsub.f32 0.0, %v2197_v16  ;;  %v2204_v17 = vsub.f32 0.0, %v2198_v36 }
 0x265   : > { %v2025_v38 = vsel %vm2023_vm0, %v2010_v14, %v2024_v8  ;;  %v2099_v33 = vadd.f32 %v2093_v29, %v5058_v58  ;;  %v2205_v45 = vmul.f32 1.442695, %v2199_v1  ;;  %v2207_v52 = vmul.f32 1.442695, %v2200_v50  ;;  %v5516_v14 = vld [vmem:[#allocation35_spill] sm:$0xff] }
 0x266   : > { %v2029_v59 = vsel %vm2022_vm11, %v2025_v38, %v2028_v34  ;;  %v2116_v35 = vmul.f32 %v2104_v26, %v2098_v37  ;;  %v2209_v54 = vmul.f32 1.442695, %v2201_v9  ;;  %v2211_v41 = vmul.f32 1.442695, %v2202_v6 }
 0x267   : > { %v2030_v51 = vsel %vm2019_vm15, nan, %v2029_v59  ;;  %v2097_v28 = vadd.f32 %v2091_v2, %v4786_v5  ;;  %2713 = vpow2.f32 %v2205_v45  ;;  %v2213_v61 = vmul.f32 1.442695, %v2203_v7 }
 0x268   : > { %v2036_v55 = vand.u32 2147483647, %v2030_v51  ;;  %v2100_v58 = vadd.f32 %v2094_v62, %v5062_v48  ;;  %2715 = vpow2.f32 %v2207_v52  ;;  %v2215_v42 = vmul.f32 1.442695, %v2204_v17 }
 0x269   : > { %v2101_v43 = vadd.f32 %v2095_v15, %v5086_v30  ;;  %v2106_v31 = vrot.slane %v5515_v47, 3  ;;  %v2117_v27 = vmul.f32 %v2105_v21, %v2099_v33  ;;  %2717 = vpow2.f32 %v2209_v54 }
 0x26a   : > { %vm2042_vm12 = vcmp.le.f32.partialorder %v2036_v55, 0.11111111  ;;  %v2602_v40 = vadd.f32 -0.055555556, %v2036_v55  ;;  %v2127_v10 = vrot.slane %v2116_v35, 7  ;;  %2719 = vpow2.f32 %v2211_v41 }
 0x26b   : > { %v2596_v5 = vsel %vm2042_vm12, 1.0, %v5514_v18  ;;  %v2107_v11 = vrot.slane %v5515_v47, 4  ;;  %vm2128_vm13 = vcmask 1041409   ;;  %2721 = vpow2.f32 %v2213_v61 }
 0x26c   : > { %v2060_v48 = vmul.f32 4.5, %v2596_v5  ;;  %v2084_v57 = vsub.f32 1.0, %v2596_v5  ;;  %v2115_v30 = vmul.f32 %v2097_v28, %v5515_v47  ;;  %2723 = vpow2.f32 %v2215_v42 }
 0x26d   : > { %v2714_v44 = vpop.eup %2713  ;;  %v2118_v49 = vmul.f32 %v2106_v31, %v2100_v58  ;;  %v2130_v39 = vrot.slane %v2117_v27, 6  ;;  %vm2131_vm7 = vcmask 1042434   ;;  %v1082_v3 = vadd.f32 %v5517_v22, %v5516_v14 }
 0x26e   : > { %v2716_v24 = vpop.eup %2715  ;;  %v2066_v12 = vmul.f32 %v2060_v48, %v2030_v51  ;;  %v2090_v19 = vmul.f32 %v2602_v40, %v2084_v57  ;;  %v2129_v18 = vsel %vm2128_vm13, %v2127_v10, %v2115_v30  ;;  %v2217_v63 = vadd.f32 1.0, %v2714_v44 }
 0x26f   : > { %v2718_v13 = vpop.eup %2717  ;;  %v2108_v32 = vrot.slane %v5515_v47, 5  ;;  %v2218_v2 = vadd.f32 1.0, %v2716_v24  ;;  %v2119_v53 = vmul.f32 %v2107_v11, %v2101_v43  ;;  %v2132_v37 = vsel %vm2131_vm7, %v2130_v39, %v2129_v18 }
 0x270   : > { %v2720_v29 = vpop.eup %2719  ;;  %v2072_v62 = vmul.f32 %v2066_v12, %v2030_v51  ;;  %v2219_v20 = vadd.f32 1.0, %v2718_v13  ;;  %2725 = vlog2.f32 %v2217_v63  ;;  %vm2134_vm5 = vcmask 1043459  }
 0x271   : > { %v2722_v15 = vpop.eup %2721  ;;  %v2220_v60 = vadd.f32 1.0, %v2720_v29  ;;  %2727 = vlog2.f32 %v2218_v2  ;;  %v2133_v8 = vrot.slane %v2118_v49, 5  ;;  %vm2137_vm8 = vcmask 1044484  }
 0x272   : > { %v2724_v16 = vpop.eup %2723  ;;  %v2096_v36 = vadd.f32 %v2090_v19, %v2072_v62  ;;  %v2221_v34 = vadd.f32 1.0, %v2722_v15  ;;  %2729 = vlog2.f32 %v2219_v20  ;;  %v2136_v6 = vrot.slane %v2119_v53, 4 }
 0x273   : > { %v2222_v1 = vadd.f32 1.0, %v2724_v16  ;;  %2731 = vlog2.f32 %v2220_v60  ;;  %v2135_v9 = vsel %vm2134_vm5, %v2133_v8, %v2132_v37  ;;  %v2187_v38 = vmax.f32 %v5160_v4, 0.0 }
 0x274   : > { %v2102_v50 = vadd.f32 %v2096_v36, %v1082_v3  ;;  %2733 = vlog2.f32 %v2221_v34  ;;  %v2188_v33 = vmax.f32 %v5171_v25, 0.0  ;;  %v2138_v52 = vsel %vm2137_vm8, %v2136_v6, %v2135_v9 }
 0x275   : > { %2735 = vlog2.f32 %v2222_v1  ;;  %vm2140_vm10 = vcmask 1045509   ;;  %v2189_v59 = vmax.f32 %v5174_v23, 0.0  ;;  %v2190_v51 = vmax.f32 %v5177_v46, 0.0 }
 0x276   : > { %v2726_v7 = vpop.eup %2725  ;;  %v2120_v17 = vmul.f32 %v2108_v32, %v2102_v50  ;;  %v2191_v55 = vmax.f32 %v5206_v56, 0.0  ;;  %v2192_v58 = vmax.f32 %v5212_v0, 0.0 }
 0x277   : > { %v2728_v45 = vpop.eup %2727  ;;  %v2224_v35 = vmul.f32 0.6931472, %v2726_v7 }
 0x278   : > { %v2730_v54 = vpop.eup %2729  ;;  %v2139_v41 = vrot.slane %v2120_v17, 3  ;;  %v2226_v28 = vmul.f32 0.6931472, %v2728_v45 }
 0x279   : > { %v2732_v61 = vpop.eup %2731  ;;  %v2228_v4 = vmul.f32 0.6931472, %v2730_v54  ;;  %v2235_v27 = vadd.f32 %v2224_v35, %v2187_v38 }
 0x27a   : > { %v2734_v42 = vpop.eup %2733  ;;  %v2141_v25 = vsel %vm2140_vm10, %v2139_v41, %v2138_v52  ;;  %v2230_v43 = vmul.f32 0.6931472, %v2732_v61  ;;  %v2236_v40 = vadd.f32 %v2226_v28, %v2188_v33 }
 0x27b   : > { %v2736_v10 = vpop.eup %2735  ;;  %v2143_v5 = vsel %vm517_vm9, %v2141_v25, 0.0  ;;  %v2232_v48 = vmul.f32 0.6931472, %v2734_v42  ;;  %v2237_v57 = vadd.f32 %v2228_v4, %v2189_v59  ;;  %v2241_v12 = vmul.f32 %v2235_v27, %v5515_v47 }
 0x27c   : > { %v2144_v46 = vsel %vm540_vm14, %v2143_v5, 0.0  ;;  %v2234_v30 = vmul.f32 0.6931472, %v2736_v10  ;;  %v2238_v44 = vadd.f32 %v2230_v43, %v2190_v51  ;;  %v2242_v56 = vmul.f32 %v2236_v40, %v2104_v26 }
 0x27d   : > { %v2145_v0 = vrot.slane %v2144_v46, 4  ;;  %v2239_v49 = vadd.f32 %v2232_v48, %v2191_v55  ;;  %v2243_v39 = vmul.f32 %v2237_v57, %v2105_v21 }
 0x27e   : > { %v2240_v24 = vadd.f32 %v2234_v30, %v2192_v58  ;;  %v2244_v19 = vmul.f32 %v2238_v44, %v2106_v31  ;;  %v2253_v18 = vrot.slane %v2242_v56, 7 }
 0x27f   : > { %v2146_v63 = vadd.f32 %v2145_v0, %v2144_v46  ;;  %v2245_v13 = vmul.f32 %v2239_v49, %v2107_v11  ;;  %v2255_v14 = vrot.slane %v2243_v39, 6 }
 0x280   : > { %v2246_v26 = vmul.f32 %v2240_v24, %v2108_v32  ;;  %v2254_v22 = vsel %vm2128_vm13, %v2253_v18, %v2241_v12  ;;  %v2257_v3 = vrot.slane %v2244_v19, 5 }
 0x281   : > { %v2147_v21 = vrot.slane %v2146_v63, 2  ;;  %v2256_v2 = vsel %vm2131_vm7, %v2255_v14, %v2254_v22  ;;  %v2259_v29 = vrot.slane %v2245_v13, 4 }
 0x282   : > { %v2258_v31 = vsel %vm2134_vm5, %v2257_v3, %v2256_v2  ;;  %v2261_v62 = vrot.slane %v2246_v26, 3 }
 0x283   : > { %v2148_v53 = vadd.f32 %v2147_v21, %v2146_v63  ;;  %v2260_v11 = vsel %vm2137_vm8, %v2259_v29, %v2258_v31 }
 0x284   : > { %v2262_v20 = vsel %vm2140_vm10, %v2261_v62, %v2260_v11 }
 0x285   : > { %v2149_v47 = vrot.slane %v2148_v53, 1  ;;  %v2264_v32 = vsel %vm517_vm9, %v2262_v20, 0.0 }
 0x286   : > { %v2265_v15 = vsel %vm540_vm14, %v2264_v32, 0.0 }
 0x287   : > { %v2150_v37 = vadd.f32 %v2149_v47, %v2148_v53  ;;  %v2266_v60 = vrot.slane %v2265_v15, 4 }
 0x289   : > { %v2267_v16 = vadd.f32 %v2266_v60, %v2265_v15  ;;  %2273 = vst [vmem:[%s3646_s13 + $0x1] sm:$0x1] %v2150_v37 }
 0x28b   : > { %v2268_v36 = vrot.slane %v2267_v16, 2 }
 0x28d   : > { %v2269_v8 = vadd.f32 %v2268_v36, %v2267_v16 }
 0x28f   : > { %v2270_v34 = vrot.slane %v2269_v8, 1 }
 0x291   : > { %v2271_v1 = vadd.f32 %v2270_v34, %v2269_v8 }
 0x293   : > { %2274 = vst [vmem:[%s3646_s13 + $0x2] sm:$0x1] %v2271_v1 }
 0x294   : > { %2980 = shalt.err (!%p2977_p4)
}
 0x295   : > { %2628 = dma.vmem_to_hbm [thread:$0]  (%p3232_p12), %s2289_s10, 64, %s2291_s5, %s2276_s9  }
 0x296 PF: > { %p2660_p8 = scmp.ge.s32.totalorder %s3031_s27, 2  ;;  %s2302_s7 = sand.u32 1, %s3019_s24  }
 0x297   : > { %s2303_s17 = scalar_lea.sflag [#allocation4], %s2302_s7 }
 0x298   : > { %p2654_p9 = pnand %p2660_p8, %p3236_p13 }
 0x29a   : > { %p2655_p10 = pneg %p2654_p9 }
 0x29c   : > { %3014 = dma.done.wait (%p2655_p10), %s2303_s17, 64  }
 0x29d   : > { %3016 = vsyncadd (%p2655_p10), %s2303_s17, 4294967232  ;;  %s5520_s27 = sld [smem:[#allocation21_spill]]  ;;  %s5523_s24 = smov %s3023_s25 }
 0x29e   : > { %s5521_s0 = sld [smem:[#allocation20_spill]] }
 0x29f   : > { %s5522_s26 = sld [smem:[#allocation22_spill]] }
 0x2a3   : > { %p27_p7 = scmp.ge.s32.totalorder %s5520_s27, 5  }
 0x2a4   : > { %s5524_s25 = smov %s5521_s0 }
 0x2a5   :  { %29 = sbr.rel (!%p27_p7) target bundleno = 16 (0x10), region = 157 }
 0x2aa   :  { %2309 = vsyncpa [#allocation3], 1 }
 0x2ab   :  { %2311 = vsyncpa [#allocation3 + $0x1], 1 }
 0x2ac   :  { %2312 = vsyncpa [#allocation6], 1 }
 0x2ad   :  { %2314 = vsyncpa [#allocation6 + $0x1], 1 }
 0x2ae   :  { %2315 = vsyncpa [#allocation9], 1 }
 0x2af   :  { %2317 = vsyncpa [#allocation9 + $0x1], 1 }
 0x2b0   :  { %2318 = vsyncpa [#allocation12], 1 }
 0x2b1   :  { %2320 = vsyncpa [#allocation12 + $0x1], 1 }
 0x2b2   :  { %2321 = vsyncpa [#allocation4], 1 }
 0x2b3   :  { %2323 = vsyncpa [#allocation4 + $0x1], 1 }

</bundles_post_ra>
